<compile_context>
chip_gen: v7x
topology: tpu7x:2x2x1
jax: 0.10.0
libtpu: 0.0.40
codegen_flags: <defaults>
</compile_context>

<pallas_src>
import jax
import jax.numpy as jnp
from jax.experimental import pallas as pl
from jax.experimental.pallas import tpu as pltpu

_H = 128  # lane-dense padded width of the MLP head (120 / 84 / num_classes -> 128)


# ----------------------------- Pallas kernel ------------------------------- #

def _make_kernel(O1, C_in, K1, T1h):
    """Kernel factory closing over the static conv1 geometry.

    Layout: batch lives on the lane (minor) axis everywhere; features/time live
    on sublanes, so every vreg in the tropical stage is lane-dense once the
    batch block reaches 128.
    """

    def kernel(xe_ref, xo_ref, wmin_ref, wmax_ref, a_ref, b1_ref,
               fc2w_ref, fc2b_ref, fc3w_ref, fc3b_ref, o_ref):
        # ---- tropical conv1 (2p) fused with avg_pool1d(2, 2) ----------------
        # even stream = conv positions 2u, odd stream = 2u+1; their (unscaled)
        # sum IS the pooled output (the 0.5 is folded into a_ref downstream).
        xe = [xe_ref[c] for c in range(C_in)]        # (Ue, BB) per channel
        xo = [xo_ref[c] for c in range(C_in)]

        def taps(c, k):
            m, r = divmod(k, 2)
            if r == 0:    # x_pad[2u+k] = xe[u+m],   x_pad[2u+1+k] = xo[u+m]
                return xe[c][m:m + T1h, :], xo[c][m:m + T1h, :]
            else:         # x_pad[2u+k] = xo[u+m],   x_pad[2u+1+k] = xe[u+m+1]
                return xo[c][m:m + T1h, :], xe[c][m + 1:m + 1 + T1h, :]

        # TODO(synk): for configs with large C_in*K1 (e.g. the default
        # first_layer_kernel_size=80) switch this fully-unrolled loop to
        # lax.fori_loop(..., unroll=small) with taps expressed as sublane rolls.
        rows = []
        for o in range(O1):                           # O1 * C_in * K1 is tiny
            mn_e = mx_e = mn_o = mx_o = None
            for c in range(C_in):
                base = (o * C_in + c) * K1
                for k in range(K1):
                    te, to = taps(c, k)
                    wn = wmin_ref[base + k]           # SMEM scalar -> VPU splat
                    wx = wmax_ref[base + k]
                    if mn_e is None:
                        mn_e, mx_e = te + wn, te + wx
                        mn_o, mx_o = to + wn, to + wx
                    else:
                        mn_e = jnp.minimum(mn_e, te + wn)
                        mx_e = jnp.maximum(mx_e, te + wx)
                        mn_o = jnp.minimum(mn_o, to + wn)
                        mx_o = jnp.maximum(mx_o, to + wx)
            rows.append((mn_e + mx_e) + (mn_o + mx_o))            # (T1h, BB)
        s1 = jnp.concatenate(rows, axis=0)                         # (O1*T1h, BB)

        # ---- conv2 + avg_pool2 + flatten + fc1: ONE pre-folded matmul -------
        z1 = jnp.dot(a_ref[...], s1, preferred_element_type=jnp.float32)
        h1 = jnp.maximum(z1 + b1_ref[...], 0.0)                    # (H, BB)
        h2 = jnp.maximum(
            jnp.dot(fc2w_ref[...], h1, preferred_element_type=jnp.float32)
            + fc2b_ref[...], 0.0)
        o_ref[...] = (jnp.dot(fc3w_ref[...], h2,
                              preferred_element_type=jnp.float32)
                      + fc3b_ref[...])

    return kernel


# ------------------------------ JAX wrapper -------------------------------- #

def parallel_tropical_lenet4(x, params, padding=2):
    """Forward pass. x: (B, C_in, L) float32, NCW like PyTorch."""
    wmin, wmax, w2, b2, w1, b1, w2f, b2f, w3, b3 = params
    B, C_in, L = x.shape
    O1, _, K1 = wmin.shape
    O2, C1, K2 = w2.shape
    assert C1 == O1
    H = _H
    H1, H2, NC = w1.shape[1], w2f.shape[1], w3.shape[1]
    assert max(H1, H2, NC) <= H

    Lp = L + 2 * padding
    T1 = Lp - K1 + 1
    assert T1 % 2 == 0, "fused avg_pool expects an even conv1 output length"
    T1h = T1 // 2
    T2 = T1h - K2 + 1
    assert T2 % 2 == 0, "fused avg_pool expects an even conv2 output length"
    T2h = T2 // 2
    assert w1.shape[0] == O2 * T2h, "linear_size must equal O2 * pooled length"

    # ---- batch blocking: batch becomes the lane axis -------------------------
    if B >= 128:
        block_b = 128
    else:
        block_b = max(8, ((B + 7) // 8) * 8)
    n_blocks = pl.cdiv(B, block_b)
    Bp = n_blocks * block_b

    # Input: zero-pad, move batch to lanes, split even/odd time phases so the
    # pooled conv1 uses only unit-stride sublane slices.
    xp = jnp.pad(x, ((0, Bp - B), (0, 0), (padding, padding)))   # (Bp, C_in, Lp)
    x_t = jnp.transpose(xp, (1, 2, 0))                           # (C_in, Lp, Bp)
    xe = x_t[:, 0::2, :]                                         # (C_in, Ue, Bp)
    xo = x_t[:, 1::2, :]                                         # (C_in, Uo, Bp)
    Ue, Uo = xe.shape[1], xo.shape[1]

    # ---- trace-time weight folding (all on weights; nothing per-activation) --
    wmin_flat = wmin.reshape(-1)                                 # (O1*C_in*K1,)
    wmax_flat = wmax.reshape(-1)

    # conv2 + avg_pool2 + flatten + fc1 as a single linear map acting on the
    # UNscaled pooled conv1 features; both 0.5 pooling factors folded in.
    Nf = C1 * T1h
    eye = jnp.eye(Nf, dtype=jnp.float32).reshape(Nf, C1, T1h)
    idx2 = jnp.arange(T2)[:, None] + jnp.arange(K2)[None, :]
    win = eye[:, :, idx2]                                        # (Nf, C1, T2, K2)
    conv_b = jnp.einsum('nctk,ock->not', win, w2)                # (Nf, O2, T2)
    pooled_b = conv_b[:, :, 0::2] + conv_b[:, :, 1::2]           # (Nf, O2, T2h)
    a_fold = 0.25 * (pooled_b.reshape(Nf, O2 * T2h) @ w1)        # (Nf, H1)
    b1_eff = b1 + jnp.repeat(b2, T2h) @ w1                       # conv2 bias folded

    # MLP head in transposed (feature-major, batch-on-lanes) layout, 128 lanes.
    a_t = jnp.pad(a_fold, ((0, 0), (0, H - H1))).T               # (H, Nf)
    b1c = jnp.pad(b1_eff, (0, H - H1)).reshape(H, 1)
    fc2w = jnp.pad(w2f, ((0, H - H1), (0, H - H2))).T            # (H, H)
    fc2b = jnp.pad(b2f, (0, H - H2)).reshape(H, 1)
    fc3w = jnp.pad(w3, ((0, H - H2), (0, H - NC))).T             # (H, H)
    fc3b = jnp.pad(b3, (0, H - NC)).reshape(H, 1)

    kernel = _make_kernel(O1, C_in, K1, T1h)

    def _full(shape):
        n = len(shape)
        return pl.BlockSpec(shape, lambda i, _n=n: (0,) * _n)

    in_specs = [
        pl.BlockSpec((C_in, Ue, block_b), lambda i: (0, 0, i)),
        pl.BlockSpec((C_in, Uo, block_b), lambda i: (0, 0, i)),
        pl.BlockSpec(memory_space=pltpu.MemorySpace.SMEM),       # wmin scalars
        pl.BlockSpec(memory_space=pltpu.MemorySpace.SMEM),       # wmax scalars
        _full(a_t.shape), _full(b1c.shape),
        _full(fc2w.shape), _full(fc2b.shape),
        _full(fc3w.shape), _full(fc3b.shape),
    ]
    out_specs = pl.BlockSpec((H, block_b), lambda i: (0, i))

    flops = int(Bp * (8 * O1 * C_in * K1 * T1h       # tropical running min/max
                      + 2 * H * Nf                    # fused conv2/pool2/fc1
                      + 4 * H * H))                   # fc2 + fc3
    bytes_accessed = int(4 * (xe.size + xo.size + wmin_flat.size + wmax_flat.size
                              + a_t.size + b1c.size + fc2w.size + fc2b.size
                              + fc3w.size + fc3b.size + H * Bp))

    out_t = pl.pallas_call(
        kernel,
        out_shape=jax.ShapeDtypeStruct((H, Bp), jnp.float32),
        grid=(n_blocks,),
        in_specs=in_specs,
        out_specs=out_specs,
        compiler_params=pltpu.CompilerParams(dimension_semantics=("parallel",)),
        cost_estimate=pl.CostEstimate(flops=flops, transcendentals=0,
                                      bytes_accessed=bytes_accessed),
    )(xe, xo, wmin_flat, wmax_flat, a_t, b1c, fc2w, fc2b, fc3w, fc3b)

    return out_t[:NC, :B].T                                      # (B, num_classes)


# --------------------------- pure-JAX reference ----------------------------- #

def _reference_forward(x, params, padding=2):
    """Straightforward jnp implementation (same assumed tropical semantics)."""
    wmin, wmax, w2, b2, w1, b1, w2f, b2f, w3, b3 = params
    B, C_in, L = x.shape
    O1, _, K1 = wmin.shape
    O2, C1, K2 = w2.shape
    xp = jnp.pad(x, ((0, 0), (0, 0), (padding, padding)))
    T1 = xp.shape[-1] - K1 + 1
    idx1 = jnp.arange(T1)[:, None] + jnp.arange(K1)[None, :]
    win1 = xp[:, :, idx1]                                        # (B, C, T1, K1)
    e_min = win1[:, None] + wmin[None, :, :, None, :]            # (B, O1, C, T1, K1)
    e_max = win1[:, None] + wmax[None, :, :, None, :]
    conv1 = jnp.min(e_min, axis=(2, 4)) + jnp.max(e_max, axis=(2, 4))
    p1 = 0.5 * (conv1[:, :, 0::2] + conv1[:, :, 1::2])           # (B, O1, T1/2)
    T2 = p1.shape[-1] - K2 + 1
    idx2 = jnp.arange(T2)[:, None] + jnp.arange(K2)[None, :]
    win2 = p1[:, :, idx2]                                        # (B, C1, T2, K2)
    conv2 = jnp.einsum('bctk,ock->bot', win2, w2) + b2[None, :, None]
    p2 = 0.5 * (conv2[:, :, 0::2] + conv2[:, :, 1::2])           # (B, O2, T2/2)
    flat = p2.reshape(B, -1)                                     # NCW flatten
    h1 = jax.nn.relu(flat @ w1 + b1)
    h2 = jax.nn.relu(h1 @ w2f + b2f)
    return h2 @ w3 + b3


# --------------------------------- params ----------------------------------- #

def init_params(key, input_channels, num_classes, linear_size, k1, k2):
    keys = jax.random.split(key, 10)

    def u(k, shape, scale):
        return (jax.random.uniform(k, shape, jnp.float32) * 2.0 - 1.0) * scale

    wmin = u(keys[0], (6, input_channels, k1), 0.5)
    wmax = u(keys[1], (6, input_channels, k1), 0.5)
    s2 = 1.0 / float(6 * k2) ** 0.5
    w2 = u(keys[2], (16, 6, k2), s2)
    b2 = u(keys[3], (16,), s2)
    s1 = 1.0 / float(linear_size) ** 0.5
    w1 = u(keys[4], (linear_size, 120), s1)
    b1 = u(keys[5], (120,), s1)
    sf2 = 1.0 / 120.0 ** 0.5
    w2f = u(keys[6], (120, 84), sf2)
    b2f = u(keys[7], (84,), sf2)
    sf3 = 1.0 / 84.0 ** 0.5
    w3 = u(keys[8], (84, num_classes), sf3)
    b3 = u(keys[9], (num_classes,), sf3)
    return (wmin, wmax, w2, b2, w1, b1, w2f, b2f, w3, b3)


if __name__ == "__main__":
    # Small config: C_in=2, L=32, K1=5 (padding=2), K2=3, num_classes=10.
    # Shape trace: conv1(pad=2) -> 32, pool -> 16, conv2 -> 14, pool -> 7,
    # flatten -> 16 * 7 = 112 (= linear_size).
    B, C_in, L = 4, 2, 32
    K1, K2 = 5, 3
    num_classes = 10
    linear_size = 16 * 7

    key = jax.random.PRNGKey(0)
    kx, kp = jax.random.split(key)
    x = jax.random.normal(kx, (B, C_in, L), jnp.float32)
    params = init_params(kp, C_in, num_classes, linear_size, K1, K2)

    out = jax.block_until_ready(jax.jit(parallel_tropical_lenet4)(x, params))
    assert out.shape == (B, num_classes) and out.dtype == jnp.float32

    ref = jax.block_until_ready(_reference_forward(x, params))
    assert bool(jnp.allclose(out, ref, rtol=1e-3, atol=1e-3)), (
        "Pallas kernel diverges from the pure-JAX reference")
    print("KERNEL_OK")
</pallas_src>

<mosaic_0001>
module attributes {stable_mosaic.version = 11 : i64} {
  func.func @kernel(%arg0: i32, %arg1: memref<2x18x8xf32, #tpu.memory_space<vmem>>, %arg2: memref<2x18x8xf32, #tpu.memory_space<vmem>>, %arg3: memref<60xf32, #tpu.memory_space<smem>>, %arg4: memref<60xf32, #tpu.memory_space<smem>>, %arg5: memref<128x96xf32, #tpu.memory_space<vmem>>, %arg6: memref<128x1xf32, #tpu.memory_space<vmem>>, %arg7: memref<128x128xf32, #tpu.memory_space<vmem>>, %arg8: memref<128x1xf32, #tpu.memory_space<vmem>>, %arg9: memref<128x128xf32, #tpu.memory_space<vmem>>, %arg10: memref<128x1xf32, #tpu.memory_space<vmem>>, %arg11: memref<128x8xf32, #tpu.memory_space<vmem>>) attributes {dimension_semantics = [#tpu.dimension_semantics<parallel>], iteration_bounds = array<i64: 1>, scalar_prefetch = 0 : i64, scratch_operands = 0 : i64, tpu.core_type = #tpu.core_type<tc>, window_params = [{transform_indices = @transform_0, window_bounds = array<i64: 2, 18, 8>}, {transform_indices = @transform_1, window_bounds = array<i64: 2, 18, 8>}, {transform_indices = @transform_2, window_bounds = array<i64: 60>}, {transform_indices = @transform_3, window_bounds = array<i64: 60>}, {pipeline_mode = #tpu.pipeline_mode<synchronous>, transform_indices = @transform_4, window_bounds = array<i64: 128, 96>}, {pipeline_mode = #tpu.pipeline_mode<synchronous>, transform_indices = @transform_5, window_bounds = array<i64: 128, 1>}, {pipeline_mode = #tpu.pipeline_mode<synchronous>, transform_indices = @transform_6, window_bounds = array<i64: 128, 128>}, {pipeline_mode = #tpu.pipeline_mode<synchronous>, transform_indices = @transform_7, window_bounds = array<i64: 128, 1>}, {pipeline_mode = #tpu.pipeline_mode<synchronous>, transform_indices = @transform_8, window_bounds = array<i64: 128, 128>}, {pipeline_mode = #tpu.pipeline_mode<synchronous>, transform_indices = @transform_9, window_bounds = array<i64: 128, 1>}, {transform_indices = @transform_10, window_bounds = array<i64: 128, 8>}]} {
    %c0 = arith.constant 0 : index
    %c0_0 = arith.constant 0 : index
    %c0_1 = arith.constant 0 : index
    %0 = vector.load %arg1[%c0, %c0_0, %c0_1] : memref<2x18x8xf32, #tpu.memory_space<vmem>>, vector<1x18x8xf32>
    %1 = vector.shape_cast %0 : vector<1x18x8xf32> to vector<18x8xf32>
    %c1 = arith.constant 1 : index
    %c0_2 = arith.constant 0 : index
    %c0_3 = arith.constant 0 : index
    %2 = vector.load %arg1[%c1, %c0_2, %c0_3] : memref<2x18x8xf32, #tpu.memory_space<vmem>>, vector<1x18x8xf32>
    %3 = vector.shape_cast %2 : vector<1x18x8xf32> to vector<18x8xf32>
    %c0_4 = arith.constant 0 : index
    %c0_5 = arith.constant 0 : index
    %c0_6 = arith.constant 0 : index
    %4 = vector.load %arg2[%c0_4, %c0_5, %c0_6] : memref<2x18x8xf32, #tpu.memory_space<vmem>>, vector<1x18x8xf32>
    %5 = vector.shape_cast %4 : vector<1x18x8xf32> to vector<18x8xf32>
    %c1_7 = arith.constant 1 : index
    %c0_8 = arith.constant 0 : index
    %c0_9 = arith.constant 0 : index
    %6 = vector.load %arg2[%c1_7, %c0_8, %c0_9] : memref<2x18x8xf32, #tpu.memory_space<vmem>>, vector<1x18x8xf32>
    %7 = vector.shape_cast %6 : vector<1x18x8xf32> to vector<18x8xf32>
    %8 = vector.extract_strided_slice %1 {offsets = [0, 0], sizes = [16, 8], strides = [1, 1]} : vector<18x8xf32> to vector<16x8xf32>
    %9 = vector.extract_strided_slice %5 {offsets = [0, 0], sizes = [16, 8], strides = [1, 1]} : vector<18x8xf32> to vector<16x8xf32>
    %c0_10 = arith.constant 0 : index
    %10 = memref.load %arg3[%c0_10] : memref<60xf32, #tpu.memory_space<smem>>
    %c0_11 = arith.constant 0 : index
    %11 = memref.load %arg4[%c0_11] : memref<60xf32, #tpu.memory_space<smem>>
    %12 = vector.broadcast %10 : f32 to vector<16x8xf32>
    %13 = arith.addf %8, %12 : vector<16x8xf32>
    %14 = vector.broadcast %11 : f32 to vector<16x8xf32>
    %15 = arith.addf %8, %14 : vector<16x8xf32>
    %16 = vector.broadcast %10 : f32 to vector<16x8xf32>
    %17 = arith.addf %9, %16 : vector<16x8xf32>
    %18 = vector.broadcast %11 : f32 to vector<16x8xf32>
    %19 = arith.addf %9, %18 : vector<16x8xf32>
    %20 = vector.extract_strided_slice %5 {offsets = [0, 0], sizes = [16, 8], strides = [1, 1]} : vector<18x8xf32> to vector<16x8xf32>
    %21 = vector.extract_strided_slice %1 {offsets = [1, 0], sizes = [16, 8], strides = [1, 1]} : vector<18x8xf32> to vector<16x8xf32>
    %c1_12 = arith.constant 1 : index
    %22 = memref.load %arg3[%c1_12] : memref<60xf32, #tpu.memory_space<smem>>
    %c1_13 = arith.constant 1 : index
    %23 = memref.load %arg4[%c1_13] : memref<60xf32, #tpu.memory_space<smem>>
    %24 = vector.broadcast %22 : f32 to vector<16x8xf32>
    %25 = arith.addf %20, %24 : vector<16x8xf32>
    %26 = arith.minimumf %13, %25 : vector<16x8xf32>
    %27 = vector.broadcast %23 : f32 to vector<16x8xf32>
    %28 = arith.addf %20, %27 : vector<16x8xf32>
    %29 = arith.maximumf %15, %28 : vector<16x8xf32>
    %30 = vector.broadcast %22 : f32 to vector<16x8xf32>
    %31 = arith.addf %21, %30 : vector<16x8xf32>
    %32 = arith.minimumf %17, %31 : vector<16x8xf32>
    %33 = vector.broadcast %23 : f32 to vector<16x8xf32>
    %34 = arith.addf %21, %33 : vector<16x8xf32>
    %35 = arith.maximumf %19, %34 : vector<16x8xf32>
    %36 = vector.extract_strided_slice %1 {offsets = [1, 0], sizes = [16, 8], strides = [1, 1]} : vector<18x8xf32> to vector<16x8xf32>
    %37 = vector.extract_strided_slice %5 {offsets = [1, 0], sizes = [16, 8], strides = [1, 1]} : vector<18x8xf32> to vector<16x8xf32>
    %c2 = arith.constant 2 : index
    %38 = memref.load %arg3[%c2] : memref<60xf32, #tpu.memory_space<smem>>
    %c2_14 = arith.constant 2 : index
    %39 = memref.load %arg4[%c2_14] : memref<60xf32, #tpu.memory_space<smem>>
    %40 = vector.broadcast %38 : f32 to vector<16x8xf32>
    %41 = arith.addf %36, %40 : vector<16x8xf32>
    %42 = arith.minimumf %26, %41 : vector<16x8xf32>
    %43 = vector.broadcast %39 : f32 to vector<16x8xf32>
    %44 = arith.addf %36, %43 : vector<16x8xf32>
    %45 = arith.maximumf %29, %44 : vector<16x8xf32>
    %46 = vector.broadcast %38 : f32 to vector<16x8xf32>
    %47 = arith.addf %37, %46 : vector<16x8xf32>
    %48 = arith.minimumf %32, %47 : vector<16x8xf32>
    %49 = vector.broadcast %39 : f32 to vector<16x8xf32>
    %50 = arith.addf %37, %49 : vector<16x8xf32>
    %51 = arith.maximumf %35, %50 : vector<16x8xf32>
    %52 = vector.extract_strided_slice %5 {offsets = [1, 0], sizes = [16, 8], strides = [1, 1]} : vector<18x8xf32> to vector<16x8xf32>
    %53 = vector.extract_strided_slice %1 {offsets = [2, 0], sizes = [16, 8], strides = [1, 1]} : vector<18x8xf32> to vector<16x8xf32>
    %c3 = arith.constant 3 : index
    %54 = memref.load %arg3[%c3] : memref<60xf32, #tpu.memory_space<smem>>
    %c3_15 = arith.constant 3 : index
    %55 = memref.load %arg4[%c3_15] : memref<60xf32, #tpu.memory_space<smem>>
    %56 = vector.broadcast %54 : f32 to vector<16x8xf32>
    %57 = arith.addf %52, %56 : vector<16x8xf32>
    %58 = arith.minimumf %42, %57 : vector<16x8xf32>
    %59 = vector.broadcast %55 : f32 to vector<16x8xf32>
    %60 = arith.addf %52, %59 : vector<16x8xf32>
    %61 = arith.maximumf %45, %60 : vector<16x8xf32>
    %62 = vector.broadcast %54 : f32 to vector<16x8xf32>
    %63 = arith.addf %53, %62 : vector<16x8xf32>
    %64 = arith.minimumf %48, %63 : vector<16x8xf32>
    %65 = vector.broadcast %55 : f32 to vector<16x8xf32>
    %66 = arith.addf %53, %65 : vector<16x8xf32>
    %67 = arith.maximumf %51, %66 : vector<16x8xf32>
    %68 = vector.extract_strided_slice %1 {offsets = [2, 0], sizes = [16, 8], strides = [1, 1]} : vector<18x8xf32> to vector<16x8xf32>
    %69 = vector.extract_strided_slice %5 {offsets = [2, 0], sizes = [16, 8], strides = [1, 1]} : vector<18x8xf32> to vector<16x8xf32>
    %c4 = arith.constant 4 : index
    %70 = memref.load %arg3[%c4] : memref<60xf32, #tpu.memory_space<smem>>
    %c4_16 = arith.constant 4 : index
    %71 = memref.load %arg4[%c4_16] : memref<60xf32, #tpu.memory_space<smem>>
    %72 = vector.broadcast %70 : f32 to vector<16x8xf32>
    %73 = arith.addf %68, %72 : vector<16x8xf32>
    %74 = arith.minimumf %58, %73 : vector<16x8xf32>
    %75 = vector.broadcast %71 : f32 to vector<16x8xf32>
    %76 = arith.addf %68, %75 : vector<16x8xf32>
    %77 = arith.maximumf %61, %76 : vector<16x8xf32>
    %78 = vector.broadcast %70 : f32 to vector<16x8xf32>
    %79 = arith.addf %69, %78 : vector<16x8xf32>
    %80 = arith.minimumf %64, %79 : vector<16x8xf32>
    %81 = vector.broadcast %71 : f32 to vector<16x8xf32>
    %82 = arith.addf %69, %81 : vector<16x8xf32>
    %83 = arith.maximumf %67, %82 : vector<16x8xf32>
    %84 = vector.extract_strided_slice %3 {offsets = [0, 0], sizes = [16, 8], strides = [1, 1]} : vector<18x8xf32> to vector<16x8xf32>
    %85 = vector.extract_strided_slice %7 {offsets = [0, 0], sizes = [16, 8], strides = [1, 1]} : vector<18x8xf32> to vector<16x8xf32>
    %c5 = arith.constant 5 : index
    %86 = memref.load %arg3[%c5] : memref<60xf32, #tpu.memory_space<smem>>
    %c5_17 = arith.constant 5 : index
    %87 = memref.load %arg4[%c5_17] : memref<60xf32, #tpu.memory_space<smem>>
    %88 = vector.broadcast %86 : f32 to vector<16x8xf32>
    %89 = arith.addf %84, %88 : vector<16x8xf32>
    %90 = arith.minimumf %74, %89 : vector<16x8xf32>
    %91 = vector.broadcast %87 : f32 to vector<16x8xf32>
    %92 = arith.addf %84, %91 : vector<16x8xf32>
    %93 = arith.maximumf %77, %92 : vector<16x8xf32>
    %94 = vector.broadcast %86 : f32 to vector<16x8xf32>
    %95 = arith.addf %85, %94 : vector<16x8xf32>
    %96 = arith.minimumf %80, %95 : vector<16x8xf32>
    %97 = vector.broadcast %87 : f32 to vector<16x8xf32>
    %98 = arith.addf %85, %97 : vector<16x8xf32>
    %99 = arith.maximumf %83, %98 : vector<16x8xf32>
    %100 = vector.extract_strided_slice %7 {offsets = [0, 0], sizes = [16, 8], strides = [1, 1]} : vector<18x8xf32> to vector<16x8xf32>
    %101 = vector.extract_strided_slice %3 {offsets = [1, 0], sizes = [16, 8], strides = [1, 1]} : vector<18x8xf32> to vector<16x8xf32>
    %c6 = arith.constant 6 : index
    %102 = memref.load %arg3[%c6] : memref<60xf32, #tpu.memory_space<smem>>
    %c6_18 = arith.constant 6 : index
    %103 = memref.load %arg4[%c6_18] : memref<60xf32, #tpu.memory_space<smem>>
    %104 = vector.broadcast %102 : f32 to vector<16x8xf32>
    %105 = arith.addf %100, %104 : vector<16x8xf32>
    %106 = arith.minimumf %90, %105 : vector<16x8xf32>
    %107 = vector.broadcast %103 : f32 to vector<16x8xf32>
    %108 = arith.addf %100, %107 : vector<16x8xf32>
    %109 = arith.maximumf %93, %108 : vector<16x8xf32>
    %110 = vector.broadcast %102 : f32 to vector<16x8xf32>
    %111 = arith.addf %101, %110 : vector<16x8xf32>
    %112 = arith.minimumf %96, %111 : vector<16x8xf32>
    %113 = vector.broadcast %103 : f32 to vector<16x8xf32>
    %114 = arith.addf %101, %113 : vector<16x8xf32>
    %115 = arith.maximumf %99, %114 : vector<16x8xf32>
    %116 = vector.extract_strided_slice %3 {offsets = [1, 0], sizes = [16, 8], strides = [1, 1]} : vector<18x8xf32> to vector<16x8xf32>
    %117 = vector.extract_strided_slice %7 {offsets = [1, 0], sizes = [16, 8], strides = [1, 1]} : vector<18x8xf32> to vector<16x8xf32>
    %c7 = arith.constant 7 : index
    %118 = memref.load %arg3[%c7] : memref<60xf32, #tpu.memory_space<smem>>
    %c7_19 = arith.constant 7 : index
    %119 = memref.load %arg4[%c7_19] : memref<60xf32, #tpu.memory_space<smem>>
    %120 = vector.broadcast %118 : f32 to vector<16x8xf32>
    %121 = arith.addf %116, %120 : vector<16x8xf32>
    %122 = arith.minimumf %106, %121 : vector<16x8xf32>
    %123 = vector.broadcast %119 : f32 to vector<16x8xf32>
    %124 = arith.addf %116, %123 : vector<16x8xf32>
    %125 = arith.maximumf %109, %124 : vector<16x8xf32>
    %126 = vector.broadcast %118 : f32 to vector<16x8xf32>
    %127 = arith.addf %117, %126 : vector<16x8xf32>
    %128 = arith.minimumf %112, %127 : vector<16x8xf32>
    %129 = vector.broadcast %119 : f32 to vector<16x8xf32>
    %130 = arith.addf %117, %129 : vector<16x8xf32>
    %131 = arith.maximumf %115, %130 : vector<16x8xf32>
    %132 = vector.extract_strided_slice %7 {offsets = [1, 0], sizes = [16, 8], strides = [1, 1]} : vector<18x8xf32> to vector<16x8xf32>
    %133 = vector.extract_strided_slice %3 {offsets = [2, 0], sizes = [16, 8], strides = [1, 1]} : vector<18x8xf32> to vector<16x8xf32>
    %c8 = arith.constant 8 : index
    %134 = memref.load %arg3[%c8] : memref<60xf32, #tpu.memory_space<smem>>
    %c8_20 = arith.constant 8 : index
    %135 = memref.load %arg4[%c8_20] : memref<60xf32, #tpu.memory_space<smem>>
    %136 = vector.broadcast %134 : f32 to vector<16x8xf32>
    %137 = arith.addf %132, %136 : vector<16x8xf32>
    %138 = arith.minimumf %122, %137 : vector<16x8xf32>
    %139 = vector.broadcast %135 : f32 to vector<16x8xf32>
    %140 = arith.addf %132, %139 : vector<16x8xf32>
    %141 = arith.maximumf %125, %140 : vector<16x8xf32>
    %142 = vector.broadcast %134 : f32 to vector<16x8xf32>
    %143 = arith.addf %133, %142 : vector<16x8xf32>
    %144 = arith.minimumf %128, %143 : vector<16x8xf32>
    %145 = vector.broadcast %135 : f32 to vector<16x8xf32>
    %146 = arith.addf %133, %145 : vector<16x8xf32>
    %147 = arith.maximumf %131, %146 : vector<16x8xf32>
    %148 = vector.extract_strided_slice %3 {offsets = [2, 0], sizes = [16, 8], strides = [1, 1]} : vector<18x8xf32> to vector<16x8xf32>
    %149 = vector.extract_strided_slice %7 {offsets = [2, 0], sizes = [16, 8], strides = [1, 1]} : vector<18x8xf32> to vector<16x8xf32>
    %c9 = arith.constant 9 : index
    %150 = memref.load %arg3[%c9] : memref<60xf32, #tpu.memory_space<smem>>
    %c9_21 = arith.constant 9 : index
    %151 = memref.load %arg4[%c9_21] : memref<60xf32, #tpu.memory_space<smem>>
    %152 = vector.broadcast %150 : f32 to vector<16x8xf32>
    %153 = arith.addf %148, %152 : vector<16x8xf32>
    %154 = arith.minimumf %138, %153 : vector<16x8xf32>
    %155 = vector.broadcast %151 : f32 to vector<16x8xf32>
    %156 = arith.addf %148, %155 : vector<16x8xf32>
    %157 = arith.maximumf %141, %156 : vector<16x8xf32>
    %158 = vector.broadcast %150 : f32 to vector<16x8xf32>
    %159 = arith.addf %149, %158 : vector<16x8xf32>
    %160 = arith.minimumf %144, %159 : vector<16x8xf32>
    %161 = vector.broadcast %151 : f32 to vector<16x8xf32>
    %162 = arith.addf %149, %161 : vector<16x8xf32>
    %163 = arith.maximumf %147, %162 : vector<16x8xf32>
    %164 = arith.addf %154, %157 : vector<16x8xf32>
    %165 = arith.addf %160, %163 : vector<16x8xf32>
    %166 = arith.addf %164, %165 : vector<16x8xf32>
    %167 = vector.extract_strided_slice %1 {offsets = [0, 0], sizes = [16, 8], strides = [1, 1]} : vector<18x8xf32> to vector<16x8xf32>
    %168 = vector.extract_strided_slice %5 {offsets = [0, 0], sizes = [16, 8], strides = [1, 1]} : vector<18x8xf32> to vector<16x8xf32>
    %c10 = arith.constant 10 : index
    %169 = memref.load %arg3[%c10] : memref<60xf32, #tpu.memory_space<smem>>
    %c10_22 = arith.constant 10 : index
    %170 = memref.load %arg4[%c10_22] : memref<60xf32, #tpu.memory_space<smem>>
    %171 = vector.broadcast %169 : f32 to vector<16x8xf32>
    %172 = arith.addf %167, %171 : vector<16x8xf32>
    %173 = vector.broadcast %170 : f32 to vector<16x8xf32>
    %174 = arith.addf %167, %173 : vector<16x8xf32>
    %175 = vector.broadcast %169 : f32 to vector<16x8xf32>
    %176 = arith.addf %168, %175 : vector<16x8xf32>
    %177 = vector.broadcast %170 : f32 to vector<16x8xf32>
    %178 = arith.addf %168, %177 : vector<16x8xf32>
    %179 = vector.extract_strided_slice %5 {offsets = [0, 0], sizes = [16, 8], strides = [1, 1]} : vector<18x8xf32> to vector<16x8xf32>
    %180 = vector.extract_strided_slice %1 {offsets = [1, 0], sizes = [16, 8], strides = [1, 1]} : vector<18x8xf32> to vector<16x8xf32>
    %c11 = arith.constant 11 : index
    %181 = memref.load %arg3[%c11] : memref<60xf32, #tpu.memory_space<smem>>
    %c11_23 = arith.constant 11 : index
    %182 = memref.load %arg4[%c11_23] : memref<60xf32, #tpu.memory_space<smem>>
    %183 = vector.broadcast %181 : f32 to vector<16x8xf32>
    %184 = arith.addf %179, %183 : vector<16x8xf32>
    %185 = arith.minimumf %172, %184 : vector<16x8xf32>
    %186 = vector.broadcast %182 : f32 to vector<16x8xf32>
    %187 = arith.addf %179, %186 : vector<16x8xf32>
    %188 = arith.maximumf %174, %187 : vector<16x8xf32>
    %189 = vector.broadcast %181 : f32 to vector<16x8xf32>
    %190 = arith.addf %180, %189 : vector<16x8xf32>
    %191 = arith.minimumf %176, %190 : vector<16x8xf32>
    %192 = vector.broadcast %182 : f32 to vector<16x8xf32>
    %193 = arith.addf %180, %192 : vector<16x8xf32>
    %194 = arith.maximumf %178, %193 : vector<16x8xf32>
    %195 = vector.extract_strided_slice %1 {offsets = [1, 0], sizes = [16, 8], strides = [1, 1]} : vector<18x8xf32> to vector<16x8xf32>
    %196 = vector.extract_strided_slice %5 {offsets = [1, 0], sizes = [16, 8], strides = [1, 1]} : vector<18x8xf32> to vector<16x8xf32>
    %c12 = arith.constant 12 : index
    %197 = memref.load %arg3[%c12] : memref<60xf32, #tpu.memory_space<smem>>
    %c12_24 = arith.constant 12 : index
    %198 = memref.load %arg4[%c12_24] : memref<60xf32, #tpu.memory_space<smem>>
    %199 = vector.broadcast %197 : f32 to vector<16x8xf32>
    %200 = arith.addf %195, %199 : vector<16x8xf32>
    %201 = arith.minimumf %185, %200 : vector<16x8xf32>
    %202 = vector.broadcast %198 : f32 to vector<16x8xf32>
    %203 = arith.addf %195, %202 : vector<16x8xf32>
    %204 = arith.maximumf %188, %203 : vector<16x8xf32>
    %205 = vector.broadcast %197 : f32 to vector<16x8xf32>
    %206 = arith.addf %196, %205 : vector<16x8xf32>
    %207 = arith.minimumf %191, %206 : vector<16x8xf32>
    %208 = vector.broadcast %198 : f32 to vector<16x8xf32>
    %209 = arith.addf %196, %208 : vector<16x8xf32>
    %210 = arith.maximumf %194, %209 : vector<16x8xf32>
    %211 = vector.extract_strided_slice %5 {offsets = [1, 0], sizes = [16, 8], strides = [1, 1]} : vector<18x8xf32> to vector<16x8xf32>
    %212 = vector.extract_strided_slice %1 {offsets = [2, 0], sizes = [16, 8], strides = [1, 1]} : vector<18x8xf32> to vector<16x8xf32>
    %c13 = arith.constant 13 : index
    %213 = memref.load %arg3[%c13] : memref<60xf32, #tpu.memory_space<smem>>
    %c13_25 = arith.constant 13 : index
    %214 = memref.load %arg4[%c13_25] : memref<60xf32, #tpu.memory_space<smem>>
    %215 = vector.broadcast %213 : f32 to vector<16x8xf32>
    %216 = arith.addf %211, %215 : vector<16x8xf32>
    %217 = arith.minimumf %201, %216 : vector<16x8xf32>
    %218 = vector.broadcast %214 : f32 to vector<16x8xf32>
    %219 = arith.addf %211, %218 : vector<16x8xf32>
    %220 = arith.maximumf %204, %219 : vector<16x8xf32>
    %221 = vector.broadcast %213 : f32 to vector<16x8xf32>
    %222 = arith.addf %212, %221 : vector<16x8xf32>
    %223 = arith.minimumf %207, %222 : vector<16x8xf32>
    %224 = vector.broadcast %214 : f32 to vector<16x8xf32>
    %225 = arith.addf %212, %224 : vector<16x8xf32>
    %226 = arith.maximumf %210, %225 : vector<16x8xf32>
    %227 = vector.extract_strided_slice %1 {offsets = [2, 0], sizes = [16, 8], strides = [1, 1]} : vector<18x8xf32> to vector<16x8xf32>
    %228 = vector.extract_strided_slice %5 {offsets = [2, 0], sizes = [16, 8], strides = [1, 1]} : vector<18x8xf32> to vector<16x8xf32>
    %c14 = arith.constant 14 : index
    %229 = memref.load %arg3[%c14] : memref<60xf32, #tpu.memory_space<smem>>
    %c14_26 = arith.constant 14 : index
    %230 = memref.load %arg4[%c14_26] : memref<60xf32, #tpu.memory_space<smem>>
    %231 = vector.broadcast %229 : f32 to vector<16x8xf32>
    %232 = arith.addf %227, %231 : vector<16x8xf32>
    %233 = arith.minimumf %217, %232 : vector<16x8xf32>
    %234 = vector.broadcast %230 : f32 to vector<16x8xf32>
    %235 = arith.addf %227, %234 : vector<16x8xf32>
    %236 = arith.maximumf %220, %235 : vector<16x8xf32>
    %237 = vector.broadcast %229 : f32 to vector<16x8xf32>
    %238 = arith.addf %228, %237 : vector<16x8xf32>
    %239 = arith.minimumf %223, %238 : vector<16x8xf32>
    %240 = vector.broadcast %230 : f32 to vector<16x8xf32>
    %241 = arith.addf %228, %240 : vector<16x8xf32>
    %242 = arith.maximumf %226, %241 : vector<16x8xf32>
    %243 = vector.extract_strided_slice %3 {offsets = [0, 0], sizes = [16, 8], strides = [1, 1]} : vector<18x8xf32> to vector<16x8xf32>
    %244 = vector.extract_strided_slice %7 {offsets = [0, 0], sizes = [16, 8], strides = [1, 1]} : vector<18x8xf32> to vector<16x8xf32>
    %c15 = arith.constant 15 : index
    %245 = memref.load %arg3[%c15] : memref<60xf32, #tpu.memory_space<smem>>
    %c15_27 = arith.constant 15 : index
    %246 = memref.load %arg4[%c15_27] : memref<60xf32, #tpu.memory_space<smem>>
    %247 = vector.broadcast %245 : f32 to vector<16x8xf32>
    %248 = arith.addf %243, %247 : vector<16x8xf32>
    %249 = arith.minimumf %233, %248 : vector<16x8xf32>
    %250 = vector.broadcast %246 : f32 to vector<16x8xf32>
    %251 = arith.addf %243, %250 : vector<16x8xf32>
    %252 = arith.maximumf %236, %251 : vector<16x8xf32>
    %253 = vector.broadcast %245 : f32 to vector<16x8xf32>
    %254 = arith.addf %244, %253 : vector<16x8xf32>
    %255 = arith.minimumf %239, %254 : vector<16x8xf32>
    %256 = vector.broadcast %246 : f32 to vector<16x8xf32>
    %257 = arith.addf %244, %256 : vector<16x8xf32>
    %258 = arith.maximumf %242, %257 : vector<16x8xf32>
    %259 = vector.extract_strided_slice %7 {offsets = [0, 0], sizes = [16, 8], strides = [1, 1]} : vector<18x8xf32> to vector<16x8xf32>
    %260 = vector.extract_strided_slice %3 {offsets = [1, 0], sizes = [16, 8], strides = [1, 1]} : vector<18x8xf32> to vector<16x8xf32>
    %c16 = arith.constant 16 : index
    %261 = memref.load %arg3[%c16] : memref<60xf32, #tpu.memory_space<smem>>
    %c16_28 = arith.constant 16 : index
    %262 = memref.load %arg4[%c16_28] : memref<60xf32, #tpu.memory_space<smem>>
    %263 = vector.broadcast %261 : f32 to vector<16x8xf32>
    %264 = arith.addf %259, %263 : vector<16x8xf32>
    %265 = arith.minimumf %249, %264 : vector<16x8xf32>
    %266 = vector.broadcast %262 : f32 to vector<16x8xf32>
    %267 = arith.addf %259, %266 : vector<16x8xf32>
    %268 = arith.maximumf %252, %267 : vector<16x8xf32>
    %269 = vector.broadcast %261 : f32 to vector<16x8xf32>
    %270 = arith.addf %260, %269 : vector<16x8xf32>
    %271 = arith.minimumf %255, %270 : vector<16x8xf32>
    %272 = vector.broadcast %262 : f32 to vector<16x8xf32>
    %273 = arith.addf %260, %272 : vector<16x8xf32>
    %274 = arith.maximumf %258, %273 : vector<16x8xf32>
    %275 = vector.extract_strided_slice %3 {offsets = [1, 0], sizes = [16, 8], strides = [1, 1]} : vector<18x8xf32> to vector<16x8xf32>
    %276 = vector.extract_strided_slice %7 {offsets = [1, 0], sizes = [16, 8], strides = [1, 1]} : vector<18x8xf32> to vector<16x8xf32>
    %c17 = arith.constant 17 : index
    %277 = memref.load %arg3[%c17] : memref<60xf32, #tpu.memory_space<smem>>
    %c17_29 = arith.constant 17 : index
    %278 = memref.load %arg4[%c17_29] : memref<60xf32, #tpu.memory_space<smem>>
    %279 = vector.broadcast %277 : f32 to vector<16x8xf32>
    %280 = arith.addf %275, %279 : vector<16x8xf32>
    %281 = arith.minimumf %265, %280 : vector<16x8xf32>
    %282 = vector.broadcast %278 : f32 to vector<16x8xf32>
    %283 = arith.addf %275, %282 : vector<16x8xf32>
    %284 = arith.maximumf %268, %283 : vector<16x8xf32>
    %285 = vector.broadcast %277 : f32 to vector<16x8xf32>
    %286 = arith.addf %276, %285 : vector<16x8xf32>
    %287 = arith.minimumf %271, %286 : vector<16x8xf32>
    %288 = vector.broadcast %278 : f32 to vector<16x8xf32>
    %289 = arith.addf %276, %288 : vector<16x8xf32>
    %290 = arith.maximumf %274, %289 : vector<16x8xf32>
    %291 = vector.extract_strided_slice %7 {offsets = [1, 0], sizes = [16, 8], strides = [1, 1]} : vector<18x8xf32> to vector<16x8xf32>
    %292 = vector.extract_strided_slice %3 {offsets = [2, 0], sizes = [16, 8], strides = [1, 1]} : vector<18x8xf32> to vector<16x8xf32>
    %c18 = arith.constant 18 : index
    %293 = memref.load %arg3[%c18] : memref<60xf32, #tpu.memory_space<smem>>
    %c18_30 = arith.constant 18 : index
    %294 = memref.load %arg4[%c18_30] : memref<60xf32, #tpu.memory_space<smem>>
    %295 = vector.broadcast %293 : f32 to vector<16x8xf32>
    %296 = arith.addf %291, %295 : vector<16x8xf32>
    %297 = arith.minimumf %281, %296 : vector<16x8xf32>
    %298 = vector.broadcast %294 : f32 to vector<16x8xf32>
    %299 = arith.addf %291, %298 : vector<16x8xf32>
    %300 = arith.maximumf %284, %299 : vector<16x8xf32>
    %301 = vector.broadcast %293 : f32 to vector<16x8xf32>
    %302 = arith.addf %292, %301 : vector<16x8xf32>
    %303 = arith.minimumf %287, %302 : vector<16x8xf32>
    %304 = vector.broadcast %294 : f32 to vector<16x8xf32>
    %305 = arith.addf %292, %304 : vector<16x8xf32>
    %306 = arith.maximumf %290, %305 : vector<16x8xf32>
    %307 = vector.extract_strided_slice %3 {offsets = [2, 0], sizes = [16, 8], strides = [1, 1]} : vector<18x8xf32> to vector<16x8xf32>
    %308 = vector.extract_strided_slice %7 {offsets = [2, 0], sizes = [16, 8], strides = [1, 1]} : vector<18x8xf32> to vector<16x8xf32>
    %c19 = arith.constant 19 : index
    %309 = memref.load %arg3[%c19] : memref<60xf32, #tpu.memory_space<smem>>
    %c19_31 = arith.constant 19 : index
    %310 = memref.load %arg4[%c19_31] : memref<60xf32, #tpu.memory_space<smem>>
    %311 = vector.broadcast %309 : f32 to vector<16x8xf32>
    %312 = arith.addf %307, %311 : vector<16x8xf32>
    %313 = arith.minimumf %297, %312 : vector<16x8xf32>
    %314 = vector.broadcast %310 : f32 to vector<16x8xf32>
    %315 = arith.addf %307, %314 : vector<16x8xf32>
    %316 = arith.maximumf %300, %315 : vector<16x8xf32>
    %317 = vector.broadcast %309 : f32 to vector<16x8xf32>
    %318 = arith.addf %308, %317 : vector<16x8xf32>
    %319 = arith.minimumf %303, %318 : vector<16x8xf32>
    %320 = vector.broadcast %310 : f32 to vector<16x8xf32>
    %321 = arith.addf %308, %320 : vector<16x8xf32>
    %322 = arith.maximumf %306, %321 : vector<16x8xf32>
    %323 = arith.addf %313, %316 : vector<16x8xf32>
    %324 = arith.addf %319, %322 : vector<16x8xf32>
    %325 = arith.addf %323, %324 : vector<16x8xf32>
    %326 = vector.extract_strided_slice %1 {offsets = [0, 0], sizes = [16, 8], strides = [1, 1]} : vector<18x8xf32> to vector<16x8xf32>
    %327 = vector.extract_strided_slice %5 {offsets = [0, 0], sizes = [16, 8], strides = [1, 1]} : vector<18x8xf32> to vector<16x8xf32>
    %c20 = arith.constant 20 : index
    %328 = memref.load %arg3[%c20] : memref<60xf32, #tpu.memory_space<smem>>
    %c20_32 = arith.constant 20 : index
    %329 = memref.load %arg4[%c20_32] : memref<60xf32, #tpu.memory_space<smem>>
    %330 = vector.broadcast %328 : f32 to vector<16x8xf32>
    %331 = arith.addf %326, %330 : vector<16x8xf32>
    %332 = vector.broadcast %329 : f32 to vector<16x8xf32>
    %333 = arith.addf %326, %332 : vector<16x8xf32>
    %334 = vector.broadcast %328 : f32 to vector<16x8xf32>
    %335 = arith.addf %327, %334 : vector<16x8xf32>
    %336 = vector.broadcast %329 : f32 to vector<16x8xf32>
    %337 = arith.addf %327, %336 : vector<16x8xf32>
    %338 = vector.extract_strided_slice %5 {offsets = [0, 0], sizes = [16, 8], strides = [1, 1]} : vector<18x8xf32> to vector<16x8xf32>
    %339 = vector.extract_strided_slice %1 {offsets = [1, 0], sizes = [16, 8], strides = [1, 1]} : vector<18x8xf32> to vector<16x8xf32>
    %c21 = arith.constant 21 : index
    %340 = memref.load %arg3[%c21] : memref<60xf32, #tpu.memory_space<smem>>
    %c21_33 = arith.constant 21 : index
    %341 = memref.load %arg4[%c21_33] : memref<60xf32, #tpu.memory_space<smem>>
    %342 = vector.broadcast %340 : f32 to vector<16x8xf32>
    %343 = arith.addf %338, %342 : vector<16x8xf32>
    %344 = arith.minimumf %331, %343 : vector<16x8xf32>
    %345 = vector.broadcast %341 : f32 to vector<16x8xf32>
    %346 = arith.addf %338, %345 : vector<16x8xf32>
    %347 = arith.maximumf %333, %346 : vector<16x8xf32>
    %348 = vector.broadcast %340 : f32 to vector<16x8xf32>
    %349 = arith.addf %339, %348 : vector<16x8xf32>
    %350 = arith.minimumf %335, %349 : vector<16x8xf32>
    %351 = vector.broadcast %341 : f32 to vector<16x8xf32>
    %352 = arith.addf %339, %351 : vector<16x8xf32>
    %353 = arith.maximumf %337, %352 : vector<16x8xf32>
    %354 = vector.extract_strided_slice %1 {offsets = [1, 0], sizes = [16, 8], strides = [1, 1]} : vector<18x8xf32> to vector<16x8xf32>
    %355 = vector.extract_strided_slice %5 {offsets = [1, 0], sizes = [16, 8], strides = [1, 1]} : vector<18x8xf32> to vector<16x8xf32>
    %c22 = arith.constant 22 : index
    %356 = memref.load %arg3[%c22] : memref<60xf32, #tpu.memory_space<smem>>
    %c22_34 = arith.constant 22 : index
    %357 = memref.load %arg4[%c22_34] : memref<60xf32, #tpu.memory_space<smem>>
    %358 = vector.broadcast %356 : f32 to vector<16x8xf32>
    %359 = arith.addf %354, %358 : vector<16x8xf32>
    %360 = arith.minimumf %344, %359 : vector<16x8xf32>
    %361 = vector.broadcast %357 : f32 to vector<16x8xf32>
    %362 = arith.addf %354, %361 : vector<16x8xf32>
    %363 = arith.maximumf %347, %362 : vector<16x8xf32>
    %364 = vector.broadcast %356 : f32 to vector<16x8xf32>
    %365 = arith.addf %355, %364 : vector<16x8xf32>
    %366 = arith.minimumf %350, %365 : vector<16x8xf32>
    %367 = vector.broadcast %357 : f32 to vector<16x8xf32>
    %368 = arith.addf %355, %367 : vector<16x8xf32>
    %369 = arith.maximumf %353, %368 : vector<16x8xf32>
    %370 = vector.extract_strided_slice %5 {offsets = [1, 0], sizes = [16, 8], strides = [1, 1]} : vector<18x8xf32> to vector<16x8xf32>
    %371 = vector.extract_strided_slice %1 {offsets = [2, 0], sizes = [16, 8], strides = [1, 1]} : vector<18x8xf32> to vector<16x8xf32>
    %c23 = arith.constant 23 : index
    %372 = memref.load %arg3[%c23] : memref<60xf32, #tpu.memory_space<smem>>
    %c23_35 = arith.constant 23 : index
    %373 = memref.load %arg4[%c23_35] : memref<60xf32, #tpu.memory_space<smem>>
    %374 = vector.broadcast %372 : f32 to vector<16x8xf32>
    %375 = arith.addf %370, %374 : vector<16x8xf32>
    %376 = arith.minimumf %360, %375 : vector<16x8xf32>
    %377 = vector.broadcast %373 : f32 to vector<16x8xf32>
    %378 = arith.addf %370, %377 : vector<16x8xf32>
    %379 = arith.maximumf %363, %378 : vector<16x8xf32>
    %380 = vector.broadcast %372 : f32 to vector<16x8xf32>
    %381 = arith.addf %371, %380 : vector<16x8xf32>
    %382 = arith.minimumf %366, %381 : vector<16x8xf32>
    %383 = vector.broadcast %373 : f32 to vector<16x8xf32>
    %384 = arith.addf %371, %383 : vector<16x8xf32>
    %385 = arith.maximumf %369, %384 : vector<16x8xf32>
    %386 = vector.extract_strided_slice %1 {offsets = [2, 0], sizes = [16, 8], strides = [1, 1]} : vector<18x8xf32> to vector<16x8xf32>
    %387 = vector.extract_strided_slice %5 {offsets = [2, 0], sizes = [16, 8], strides = [1, 1]} : vector<18x8xf32> to vector<16x8xf32>
    %c24 = arith.constant 24 : index
    %388 = memref.load %arg3[%c24] : memref<60xf32, #tpu.memory_space<smem>>
    %c24_36 = arith.constant 24 : index
    %389 = memref.load %arg4[%c24_36] : memref<60xf32, #tpu.memory_space<smem>>
    %390 = vector.broadcast %388 : f32 to vector<16x8xf32>
    %391 = arith.addf %386, %390 : vector<16x8xf32>
    %392 = arith.minimumf %376, %391 : vector<16x8xf32>
    %393 = vector.broadcast %389 : f32 to vector<16x8xf32>
    %394 = arith.addf %386, %393 : vector<16x8xf32>
    %395 = arith.maximumf %379, %394 : vector<16x8xf32>
    %396 = vector.broadcast %388 : f32 to vector<16x8xf32>
    %397 = arith.addf %387, %396 : vector<16x8xf32>
    %398 = arith.minimumf %382, %397 : vector<16x8xf32>
    %399 = vector.broadcast %389 : f32 to vector<16x8xf32>
    %400 = arith.addf %387, %399 : vector<16x8xf32>
    %401 = arith.maximumf %385, %400 : vector<16x8xf32>
    %402 = vector.extract_strided_slice %3 {offsets = [0, 0], sizes = [16, 8], strides = [1, 1]} : vector<18x8xf32> to vector<16x8xf32>
    %403 = vector.extract_strided_slice %7 {offsets = [0, 0], sizes = [16, 8], strides = [1, 1]} : vector<18x8xf32> to vector<16x8xf32>
    %c25 = arith.constant 25 : index
    %404 = memref.load %arg3[%c25] : memref<60xf32, #tpu.memory_space<smem>>
    %c25_37 = arith.constant 25 : index
    %405 = memref.load %arg4[%c25_37] : memref<60xf32, #tpu.memory_space<smem>>
    %406 = vector.broadcast %404 : f32 to vector<16x8xf32>
    %407 = arith.addf %402, %406 : vector<16x8xf32>
    %408 = arith.minimumf %392, %407 : vector<16x8xf32>
    %409 = vector.broadcast %405 : f32 to vector<16x8xf32>
    %410 = arith.addf %402, %409 : vector<16x8xf32>
    %411 = arith.maximumf %395, %410 : vector<16x8xf32>
    %412 = vector.broadcast %404 : f32 to vector<16x8xf32>
    %413 = arith.addf %403, %412 : vector<16x8xf32>
    %414 = arith.minimumf %398, %413 : vector<16x8xf32>
    %415 = vector.broadcast %405 : f32 to vector<16x8xf32>
    %416 = arith.addf %403, %415 : vector<16x8xf32>
    %417 = arith.maximumf %401, %416 : vector<16x8xf32>
    %418 = vector.extract_strided_slice %7 {offsets = [0, 0], sizes = [16, 8], strides = [1, 1]} : vector<18x8xf32> to vector<16x8xf32>
    %419 = vector.extract_strided_slice %3 {offsets = [1, 0], sizes = [16, 8], strides = [1, 1]} : vector<18x8xf32> to vector<16x8xf32>
    %c26 = arith.constant 26 : index
    %420 = memref.load %arg3[%c26] : memref<60xf32, #tpu.memory_space<smem>>
    %c26_38 = arith.constant 26 : index
    %421 = memref.load %arg4[%c26_38] : memref<60xf32, #tpu.memory_space<smem>>
    %422 = vector.broadcast %420 : f32 to vector<16x8xf32>
    %423 = arith.addf %418, %422 : vector<16x8xf32>
    %424 = arith.minimumf %408, %423 : vector<16x8xf32>
    %425 = vector.broadcast %421 : f32 to vector<16x8xf32>
    %426 = arith.addf %418, %425 : vector<16x8xf32>
    %427 = arith.maximumf %411, %426 : vector<16x8xf32>
    %428 = vector.broadcast %420 : f32 to vector<16x8xf32>
    %429 = arith.addf %419, %428 : vector<16x8xf32>
    %430 = arith.minimumf %414, %429 : vector<16x8xf32>
    %431 = vector.broadcast %421 : f32 to vector<16x8xf32>
    %432 = arith.addf %419, %431 : vector<16x8xf32>
    %433 = arith.maximumf %417, %432 : vector<16x8xf32>
    %434 = vector.extract_strided_slice %3 {offsets = [1, 0], sizes = [16, 8], strides = [1, 1]} : vector<18x8xf32> to vector<16x8xf32>
    %435 = vector.extract_strided_slice %7 {offsets = [1, 0], sizes = [16, 8], strides = [1, 1]} : vector<18x8xf32> to vector<16x8xf32>
    %c27 = arith.constant 27 : index
    %436 = memref.load %arg3[%c27] : memref<60xf32, #tpu.memory_space<smem>>
    %c27_39 = arith.constant 27 : index
    %437 = memref.load %arg4[%c27_39] : memref<60xf32, #tpu.memory_space<smem>>
    %438 = vector.broadcast %436 : f32 to vector<16x8xf32>
    %439 = arith.addf %434, %438 : vector<16x8xf32>
    %440 = arith.minimumf %424, %439 : vector<16x8xf32>
    %441 = vector.broadcast %437 : f32 to vector<16x8xf32>
    %442 = arith.addf %434, %441 : vector<16x8xf32>
    %443 = arith.maximumf %427, %442 : vector<16x8xf32>
    %444 = vector.broadcast %436 : f32 to vector<16x8xf32>
    %445 = arith.addf %435, %444 : vector<16x8xf32>
    %446 = arith.minimumf %430, %445 : vector<16x8xf32>
    %447 = vector.broadcast %437 : f32 to vector<16x8xf32>
    %448 = arith.addf %435, %447 : vector<16x8xf32>
    %449 = arith.maximumf %433, %448 : vector<16x8xf32>
    %450 = vector.extract_strided_slice %7 {offsets = [1, 0], sizes = [16, 8], strides = [1, 1]} : vector<18x8xf32> to vector<16x8xf32>
    %451 = vector.extract_strided_slice %3 {offsets = [2, 0], sizes = [16, 8], strides = [1, 1]} : vector<18x8xf32> to vector<16x8xf32>
    %c28 = arith.constant 28 : index
    %452 = memref.load %arg3[%c28] : memref<60xf32, #tpu.memory_space<smem>>
    %c28_40 = arith.constant 28 : index
    %453 = memref.load %arg4[%c28_40] : memref<60xf32, #tpu.memory_space<smem>>
    %454 = vector.broadcast %452 : f32 to vector<16x8xf32>
    %455 = arith.addf %450, %454 : vector<16x8xf32>
    %456 = arith.minimumf %440, %455 : vector<16x8xf32>
    %457 = vector.broadcast %453 : f32 to vector<16x8xf32>
    %458 = arith.addf %450, %457 : vector<16x8xf32>
    %459 = arith.maximumf %443, %458 : vector<16x8xf32>
    %460 = vector.broadcast %452 : f32 to vector<16x8xf32>
    %461 = arith.addf %451, %460 : vector<16x8xf32>
    %462 = arith.minimumf %446, %461 : vector<16x8xf32>
    %463 = vector.broadcast %453 : f32 to vector<16x8xf32>
    %464 = arith.addf %451, %463 : vector<16x8xf32>
    %465 = arith.maximumf %449, %464 : vector<16x8xf32>
    %466 = vector.extract_strided_slice %3 {offsets = [2, 0], sizes = [16, 8], strides = [1, 1]} : vector<18x8xf32> to vector<16x8xf32>
    %467 = vector.extract_strided_slice %7 {offsets = [2, 0], sizes = [16, 8], strides = [1, 1]} : vector<18x8xf32> to vector<16x8xf32>
    %c29 = arith.constant 29 : index
    %468 = memref.load %arg3[%c29] : memref<60xf32, #tpu.memory_space<smem>>
    %c29_41 = arith.constant 29 : index
    %469 = memref.load %arg4[%c29_41] : memref<60xf32, #tpu.memory_space<smem>>
    %470 = vector.broadcast %468 : f32 to vector<16x8xf32>
    %471 = arith.addf %466, %470 : vector<16x8xf32>
    %472 = arith.minimumf %456, %471 : vector<16x8xf32>
    %473 = vector.broadcast %469 : f32 to vector<16x8xf32>
    %474 = arith.addf %466, %473 : vector<16x8xf32>
    %475 = arith.maximumf %459, %474 : vector<16x8xf32>
    %476 = vector.broadcast %468 : f32 to vector<16x8xf32>
    %477 = arith.addf %467, %476 : vector<16x8xf32>
    %478 = arith.minimumf %462, %477 : vector<16x8xf32>
    %479 = vector.broadcast %469 : f32 to vector<16x8xf32>
    %480 = arith.addf %467, %479 : vector<16x8xf32>
    %481 = arith.maximumf %465, %480 : vector<16x8xf32>
    %482 = arith.addf %472, %475 : vector<16x8xf32>
    %483 = arith.addf %478, %481 : vector<16x8xf32>
    %484 = arith.addf %482, %483 : vector<16x8xf32>
    %485 = vector.extract_strided_slice %1 {offsets = [0, 0], sizes = [16, 8], strides = [1, 1]} : vector<18x8xf32> to vector<16x8xf32>
    %486 = vector.extract_strided_slice %5 {offsets = [0, 0], sizes = [16, 8], strides = [1, 1]} : vector<18x8xf32> to vector<16x8xf32>
    %c30 = arith.constant 30 : index
    %487 = memref.load %arg3[%c30] : memref<60xf32, #tpu.memory_space<smem>>
    %c30_42 = arith.constant 30 : index
    %488 = memref.load %arg4[%c30_42] : memref<60xf32, #tpu.memory_space<smem>>
    %489 = vector.broadcast %487 : f32 to vector<16x8xf32>
    %490 = arith.addf %485, %489 : vector<16x8xf32>
    %491 = vector.broadcast %488 : f32 to vector<16x8xf32>
    %492 = arith.addf %485, %491 : vector<16x8xf32>
    %493 = vector.broadcast %487 : f32 to vector<16x8xf32>
    %494 = arith.addf %486, %493 : vector<16x8xf32>
    %495 = vector.broadcast %488 : f32 to vector<16x8xf32>
    %496 = arith.addf %486, %495 : vector<16x8xf32>
    %497 = vector.extract_strided_slice %5 {offsets = [0, 0], sizes = [16, 8], strides = [1, 1]} : vector<18x8xf32> to vector<16x8xf32>
    %498 = vector.extract_strided_slice %1 {offsets = [1, 0], sizes = [16, 8], strides = [1, 1]} : vector<18x8xf32> to vector<16x8xf32>
    %c31 = arith.constant 31 : index
    %499 = memref.load %arg3[%c31] : memref<60xf32, #tpu.memory_space<smem>>
    %c31_43 = arith.constant 31 : index
    %500 = memref.load %arg4[%c31_43] : memref<60xf32, #tpu.memory_space<smem>>
    %501 = vector.broadcast %499 : f32 to vector<16x8xf32>
    %502 = arith.addf %497, %501 : vector<16x8xf32>
    %503 = arith.minimumf %490, %502 : vector<16x8xf32>
    %504 = vector.broadcast %500 : f32 to vector<16x8xf32>
    %505 = arith.addf %497, %504 : vector<16x8xf32>
    %506 = arith.maximumf %492, %505 : vector<16x8xf32>
    %507 = vector.broadcast %499 : f32 to vector<16x8xf32>
    %508 = arith.addf %498, %507 : vector<16x8xf32>
    %509 = arith.minimumf %494, %508 : vector<16x8xf32>
    %510 = vector.broadcast %500 : f32 to vector<16x8xf32>
    %511 = arith.addf %498, %510 : vector<16x8xf32>
    %512 = arith.maximumf %496, %511 : vector<16x8xf32>
    %513 = vector.extract_strided_slice %1 {offsets = [1, 0], sizes = [16, 8], strides = [1, 1]} : vector<18x8xf32> to vector<16x8xf32>
    %514 = vector.extract_strided_slice %5 {offsets = [1, 0], sizes = [16, 8], strides = [1, 1]} : vector<18x8xf32> to vector<16x8xf32>
    %c32 = arith.constant 32 : index
    %515 = memref.load %arg3[%c32] : memref<60xf32, #tpu.memory_space<smem>>
    %c32_44 = arith.constant 32 : index
    %516 = memref.load %arg4[%c32_44] : memref<60xf32, #tpu.memory_space<smem>>
    %517 = vector.broadcast %515 : f32 to vector<16x8xf32>
    %518 = arith.addf %513, %517 : vector<16x8xf32>
    %519 = arith.minimumf %503, %518 : vector<16x8xf32>
    %520 = vector.broadcast %516 : f32 to vector<16x8xf32>
    %521 = arith.addf %513, %520 : vector<16x8xf32>
    %522 = arith.maximumf %506, %521 : vector<16x8xf32>
    %523 = vector.broadcast %515 : f32 to vector<16x8xf32>
    %524 = arith.addf %514, %523 : vector<16x8xf32>
    %525 = arith.minimumf %509, %524 : vector<16x8xf32>
    %526 = vector.broadcast %516 : f32 to vector<16x8xf32>
    %527 = arith.addf %514, %526 : vector<16x8xf32>
    %528 = arith.maximumf %512, %527 : vector<16x8xf32>
    %529 = vector.extract_strided_slice %5 {offsets = [1, 0], sizes = [16, 8], strides = [1, 1]} : vector<18x8xf32> to vector<16x8xf32>
    %530 = vector.extract_strided_slice %1 {offsets = [2, 0], sizes = [16, 8], strides = [1, 1]} : vector<18x8xf32> to vector<16x8xf32>
    %c33 = arith.constant 33 : index
    %531 = memref.load %arg3[%c33] : memref<60xf32, #tpu.memory_space<smem>>
    %c33_45 = arith.constant 33 : index
    %532 = memref.load %arg4[%c33_45] : memref<60xf32, #tpu.memory_space<smem>>
    %533 = vector.broadcast %531 : f32 to vector<16x8xf32>
    %534 = arith.addf %529, %533 : vector<16x8xf32>
    %535 = arith.minimumf %519, %534 : vector<16x8xf32>
    %536 = vector.broadcast %532 : f32 to vector<16x8xf32>
    %537 = arith.addf %529, %536 : vector<16x8xf32>
    %538 = arith.maximumf %522, %537 : vector<16x8xf32>
    %539 = vector.broadcast %531 : f32 to vector<16x8xf32>
    %540 = arith.addf %530, %539 : vector<16x8xf32>
    %541 = arith.minimumf %525, %540 : vector<16x8xf32>
    %542 = vector.broadcast %532 : f32 to vector<16x8xf32>
    %543 = arith.addf %530, %542 : vector<16x8xf32>
    %544 = arith.maximumf %528, %543 : vector<16x8xf32>
    %545 = vector.extract_strided_slice %1 {offsets = [2, 0], sizes = [16, 8], strides = [1, 1]} : vector<18x8xf32> to vector<16x8xf32>
    %546 = vector.extract_strided_slice %5 {offsets = [2, 0], sizes = [16, 8], strides = [1, 1]} : vector<18x8xf32> to vector<16x8xf32>
    %c34 = arith.constant 34 : index
    %547 = memref.load %arg3[%c34] : memref<60xf32, #tpu.memory_space<smem>>
    %c34_46 = arith.constant 34 : index
    %548 = memref.load %arg4[%c34_46] : memref<60xf32, #tpu.memory_space<smem>>
    %549 = vector.broadcast %547 : f32 to vector<16x8xf32>
    %550 = arith.addf %545, %549 : vector<16x8xf32>
    %551 = arith.minimumf %535, %550 : vector<16x8xf32>
    %552 = vector.broadcast %548 : f32 to vector<16x8xf32>
    %553 = arith.addf %545, %552 : vector<16x8xf32>
    %554 = arith.maximumf %538, %553 : vector<16x8xf32>
    %555 = vector.broadcast %547 : f32 to vector<16x8xf32>
    %556 = arith.addf %546, %555 : vector<16x8xf32>
    %557 = arith.minimumf %541, %556 : vector<16x8xf32>
    %558 = vector.broadcast %548 : f32 to vector<16x8xf32>
    %559 = arith.addf %546, %558 : vector<16x8xf32>
    %560 = arith.maximumf %544, %559 : vector<16x8xf32>
    %561 = vector.extract_strided_slice %3 {offsets = [0, 0], sizes = [16, 8], strides = [1, 1]} : vector<18x8xf32> to vector<16x8xf32>
    %562 = vector.extract_strided_slice %7 {offsets = [0, 0], sizes = [16, 8], strides = [1, 1]} : vector<18x8xf32> to vector<16x8xf32>
    %c35 = arith.constant 35 : index
    %563 = memref.load %arg3[%c35] : memref<60xf32, #tpu.memory_space<smem>>
    %c35_47 = arith.constant 35 : index
    %564 = memref.load %arg4[%c35_47] : memref<60xf32, #tpu.memory_space<smem>>
    %565 = vector.broadcast %563 : f32 to vector<16x8xf32>
    %566 = arith.addf %561, %565 : vector<16x8xf32>
    %567 = arith.minimumf %551, %566 : vector<16x8xf32>
    %568 = vector.broadcast %564 : f32 to vector<16x8xf32>
    %569 = arith.addf %561, %568 : vector<16x8xf32>
    %570 = arith.maximumf %554, %569 : vector<16x8xf32>
    %571 = vector.broadcast %563 : f32 to vector<16x8xf32>
    %572 = arith.addf %562, %571 : vector<16x8xf32>
    %573 = arith.minimumf %557, %572 : vector<16x8xf32>
    %574 = vector.broadcast %564 : f32 to vector<16x8xf32>
    %575 = arith.addf %562, %574 : vector<16x8xf32>
    %576 = arith.maximumf %560, %575 : vector<16x8xf32>
    %577 = vector.extract_strided_slice %7 {offsets = [0, 0], sizes = [16, 8], strides = [1, 1]} : vector<18x8xf32> to vector<16x8xf32>
    %578 = vector.extract_strided_slice %3 {offsets = [1, 0], sizes = [16, 8], strides = [1, 1]} : vector<18x8xf32> to vector<16x8xf32>
    %c36 = arith.constant 36 : index
    %579 = memref.load %arg3[%c36] : memref<60xf32, #tpu.memory_space<smem>>
    %c36_48 = arith.constant 36 : index
    %580 = memref.load %arg4[%c36_48] : memref<60xf32, #tpu.memory_space<smem>>
    %581 = vector.broadcast %579 : f32 to vector<16x8xf32>
    %582 = arith.addf %577, %581 : vector<16x8xf32>
    %583 = arith.minimumf %567, %582 : vector<16x8xf32>
    %584 = vector.broadcast %580 : f32 to vector<16x8xf32>
    %585 = arith.addf %577, %584 : vector<16x8xf32>
    %586 = arith.maximumf %570, %585 : vector<16x8xf32>
    %587 = vector.broadcast %579 : f32 to vector<16x8xf32>
    %588 = arith.addf %578, %587 : vector<16x8xf32>
    %589 = arith.minimumf %573, %588 : vector<16x8xf32>
    %590 = vector.broadcast %580 : f32 to vector<16x8xf32>
    %591 = arith.addf %578, %590 : vector<16x8xf32>
    %592 = arith.maximumf %576, %591 : vector<16x8xf32>
    %593 = vector.extract_strided_slice %3 {offsets = [1, 0], sizes = [16, 8], strides = [1, 1]} : vector<18x8xf32> to vector<16x8xf32>
    %594 = vector.extract_strided_slice %7 {offsets = [1, 0], sizes = [16, 8], strides = [1, 1]} : vector<18x8xf32> to vector<16x8xf32>
    %c37 = arith.constant 37 : index
    %595 = memref.load %arg3[%c37] : memref<60xf32, #tpu.memory_space<smem>>
    %c37_49 = arith.constant 37 : index
    %596 = memref.load %arg4[%c37_49] : memref<60xf32, #tpu.memory_space<smem>>
    %597 = vector.broadcast %595 : f32 to vector<16x8xf32>
    %598 = arith.addf %593, %597 : vector<16x8xf32>
    %599 = arith.minimumf %583, %598 : vector<16x8xf32>
    %600 = vector.broadcast %596 : f32 to vector<16x8xf32>
    %601 = arith.addf %593, %600 : vector<16x8xf32>
    %602 = arith.maximumf %586, %601 : vector<16x8xf32>
    %603 = vector.broadcast %595 : f32 to vector<16x8xf32>
    %604 = arith.addf %594, %603 : vector<16x8xf32>
    %605 = arith.minimumf %589, %604 : vector<16x8xf32>
    %606 = vector.broadcast %596 : f32 to vector<16x8xf32>
    %607 = arith.addf %594, %606 : vector<16x8xf32>
    %608 = arith.maximumf %592, %607 : vector<16x8xf32>
    %609 = vector.extract_strided_slice %7 {offsets = [1, 0], sizes = [16, 8], strides = [1, 1]} : vector<18x8xf32> to vector<16x8xf32>
    %610 = vector.extract_strided_slice %3 {offsets = [2, 0], sizes = [16, 8], strides = [1, 1]} : vector<18x8xf32> to vector<16x8xf32>
    %c38 = arith.constant 38 : index
    %611 = memref.load %arg3[%c38] : memref<60xf32, #tpu.memory_space<smem>>
    %c38_50 = arith.constant 38 : index
    %612 = memref.load %arg4[%c38_50] : memref<60xf32, #tpu.memory_space<smem>>
    %613 = vector.broadcast %611 : f32 to vector<16x8xf32>
    %614 = arith.addf %609, %613 : vector<16x8xf32>
    %615 = arith.minimumf %599, %614 : vector<16x8xf32>
    %616 = vector.broadcast %612 : f32 to vector<16x8xf32>
    %617 = arith.addf %609, %616 : vector<16x8xf32>
    %618 = arith.maximumf %602, %617 : vector<16x8xf32>
    %619 = vector.broadcast %611 : f32 to vector<16x8xf32>
    %620 = arith.addf %610, %619 : vector<16x8xf32>
    %621 = arith.minimumf %605, %620 : vector<16x8xf32>
    %622 = vector.broadcast %612 : f32 to vector<16x8xf32>
    %623 = arith.addf %610, %622 : vector<16x8xf32>
    %624 = arith.maximumf %608, %623 : vector<16x8xf32>
    %625 = vector.extract_strided_slice %3 {offsets = [2, 0], sizes = [16, 8], strides = [1, 1]} : vector<18x8xf32> to vector<16x8xf32>
    %626 = vector.extract_strided_slice %7 {offsets = [2, 0], sizes = [16, 8], strides = [1, 1]} : vector<18x8xf32> to vector<16x8xf32>
    %c39 = arith.constant 39 : index
    %627 = memref.load %arg3[%c39] : memref<60xf32, #tpu.memory_space<smem>>
    %c39_51 = arith.constant 39 : index
    %628 = memref.load %arg4[%c39_51] : memref<60xf32, #tpu.memory_space<smem>>
    %629 = vector.broadcast %627 : f32 to vector<16x8xf32>
    %630 = arith.addf %625, %629 : vector<16x8xf32>
    %631 = arith.minimumf %615, %630 : vector<16x8xf32>
    %632 = vector.broadcast %628 : f32 to vector<16x8xf32>
    %633 = arith.addf %625, %632 : vector<16x8xf32>
    %634 = arith.maximumf %618, %633 : vector<16x8xf32>
    %635 = vector.broadcast %627 : f32 to vector<16x8xf32>
    %636 = arith.addf %626, %635 : vector<16x8xf32>
    %637 = arith.minimumf %621, %636 : vector<16x8xf32>
    %638 = vector.broadcast %628 : f32 to vector<16x8xf32>
    %639 = arith.addf %626, %638 : vector<16x8xf32>
    %640 = arith.maximumf %624, %639 : vector<16x8xf32>
    %641 = arith.addf %631, %634 : vector<16x8xf32>
    %642 = arith.addf %637, %640 : vector<16x8xf32>
    %643 = arith.addf %641, %642 : vector<16x8xf32>
    %644 = vector.extract_strided_slice %1 {offsets = [0, 0], sizes = [16, 8], strides = [1, 1]} : vector<18x8xf32> to vector<16x8xf32>
    %645 = vector.extract_strided_slice %5 {offsets = [0, 0], sizes = [16, 8], strides = [1, 1]} : vector<18x8xf32> to vector<16x8xf32>
    %c40 = arith.constant 40 : index
    %646 = memref.load %arg3[%c40] : memref<60xf32, #tpu.memory_space<smem>>
    %c40_52 = arith.constant 40 : index
    %647 = memref.load %arg4[%c40_52] : memref<60xf32, #tpu.memory_space<smem>>
    %648 = vector.broadcast %646 : f32 to vector<16x8xf32>
    %649 = arith.addf %644, %648 : vector<16x8xf32>
    %650 = vector.broadcast %647 : f32 to vector<16x8xf32>
    %651 = arith.addf %644, %650 : vector<16x8xf32>
    %652 = vector.broadcast %646 : f32 to vector<16x8xf32>
    %653 = arith.addf %645, %652 : vector<16x8xf32>
    %654 = vector.broadcast %647 : f32 to vector<16x8xf32>
    %655 = arith.addf %645, %654 : vector<16x8xf32>
    %656 = vector.extract_strided_slice %5 {offsets = [0, 0], sizes = [16, 8], strides = [1, 1]} : vector<18x8xf32> to vector<16x8xf32>
    %657 = vector.extract_strided_slice %1 {offsets = [1, 0], sizes = [16, 8], strides = [1, 1]} : vector<18x8xf32> to vector<16x8xf32>
    %c41 = arith.constant 41 : index
    %658 = memref.load %arg3[%c41] : memref<60xf32, #tpu.memory_space<smem>>
    %c41_53 = arith.constant 41 : index
    %659 = memref.load %arg4[%c41_53] : memref<60xf32, #tpu.memory_space<smem>>
    %660 = vector.broadcast %658 : f32 to vector<16x8xf32>
    %661 = arith.addf %656, %660 : vector<16x8xf32>
    %662 = arith.minimumf %649, %661 : vector<16x8xf32>
    %663 = vector.broadcast %659 : f32 to vector<16x8xf32>
    %664 = arith.addf %656, %663 : vector<16x8xf32>
    %665 = arith.maximumf %651, %664 : vector<16x8xf32>
    %666 = vector.broadcast %658 : f32 to vector<16x8xf32>
    %667 = arith.addf %657, %666 : vector<16x8xf32>
    %668 = arith.minimumf %653, %667 : vector<16x8xf32>
    %669 = vector.broadcast %659 : f32 to vector<16x8xf32>
    %670 = arith.addf %657, %669 : vector<16x8xf32>
    %671 = arith.maximumf %655, %670 : vector<16x8xf32>
    %672 = vector.extract_strided_slice %1 {offsets = [1, 0], sizes = [16, 8], strides = [1, 1]} : vector<18x8xf32> to vector<16x8xf32>
    %673 = vector.extract_strided_slice %5 {offsets = [1, 0], sizes = [16, 8], strides = [1, 1]} : vector<18x8xf32> to vector<16x8xf32>
    %c42 = arith.constant 42 : index
    %674 = memref.load %arg3[%c42] : memref<60xf32, #tpu.memory_space<smem>>
    %c42_54 = arith.constant 42 : index
    %675 = memref.load %arg4[%c42_54] : memref<60xf32, #tpu.memory_space<smem>>
    %676 = vector.broadcast %674 : f32 to vector<16x8xf32>
    %677 = arith.addf %672, %676 : vector<16x8xf32>
    %678 = arith.minimumf %662, %677 : vector<16x8xf32>
    %679 = vector.broadcast %675 : f32 to vector<16x8xf32>
    %680 = arith.addf %672, %679 : vector<16x8xf32>
    %681 = arith.maximumf %665, %680 : vector<16x8xf32>
    %682 = vector.broadcast %674 : f32 to vector<16x8xf32>
    %683 = arith.addf %673, %682 : vector<16x8xf32>
    %684 = arith.minimumf %668, %683 : vector<16x8xf32>
    %685 = vector.broadcast %675 : f32 to vector<16x8xf32>
    %686 = arith.addf %673, %685 : vector<16x8xf32>
    %687 = arith.maximumf %671, %686 : vector<16x8xf32>
    %688 = vector.extract_strided_slice %5 {offsets = [1, 0], sizes = [16, 8], strides = [1, 1]} : vector<18x8xf32> to vector<16x8xf32>
    %689 = vector.extract_strided_slice %1 {offsets = [2, 0], sizes = [16, 8], strides = [1, 1]} : vector<18x8xf32> to vector<16x8xf32>
    %c43 = arith.constant 43 : index
    %690 = memref.load %arg3[%c43] : memref<60xf32, #tpu.memory_space<smem>>
    %c43_55 = arith.constant 43 : index
    %691 = memref.load %arg4[%c43_55] : memref<60xf32, #tpu.memory_space<smem>>
    %692 = vector.broadcast %690 : f32 to vector<16x8xf32>
    %693 = arith.addf %688, %692 : vector<16x8xf32>
    %694 = arith.minimumf %678, %693 : vector<16x8xf32>
    %695 = vector.broadcast %691 : f32 to vector<16x8xf32>
    %696 = arith.addf %688, %695 : vector<16x8xf32>
    %697 = arith.maximumf %681, %696 : vector<16x8xf32>
    %698 = vector.broadcast %690 : f32 to vector<16x8xf32>
    %699 = arith.addf %689, %698 : vector<16x8xf32>
    %700 = arith.minimumf %684, %699 : vector<16x8xf32>
    %701 = vector.broadcast %691 : f32 to vector<16x8xf32>
    %702 = arith.addf %689, %701 : vector<16x8xf32>
    %703 = arith.maximumf %687, %702 : vector<16x8xf32>
    %704 = vector.extract_strided_slice %1 {offsets = [2, 0], sizes = [16, 8], strides = [1, 1]} : vector<18x8xf32> to vector<16x8xf32>
    %705 = vector.extract_strided_slice %5 {offsets = [2, 0], sizes = [16, 8], strides = [1, 1]} : vector<18x8xf32> to vector<16x8xf32>
    %c44 = arith.constant 44 : index
    %706 = memref.load %arg3[%c44] : memref<60xf32, #tpu.memory_space<smem>>
    %c44_56 = arith.constant 44 : index
    %707 = memref.load %arg4[%c44_56] : memref<60xf32, #tpu.memory_space<smem>>
    %708 = vector.broadcast %706 : f32 to vector<16x8xf32>
    %709 = arith.addf %704, %708 : vector<16x8xf32>
    %710 = arith.minimumf %694, %709 : vector<16x8xf32>
    %711 = vector.broadcast %707 : f32 to vector<16x8xf32>
    %712 = arith.addf %704, %711 : vector<16x8xf32>
    %713 = arith.maximumf %697, %712 : vector<16x8xf32>
    %714 = vector.broadcast %706 : f32 to vector<16x8xf32>
    %715 = arith.addf %705, %714 : vector<16x8xf32>
    %716 = arith.minimumf %700, %715 : vector<16x8xf32>
    %717 = vector.broadcast %707 : f32 to vector<16x8xf32>
    %718 = arith.addf %705, %717 : vector<16x8xf32>
    %719 = arith.maximumf %703, %718 : vector<16x8xf32>
    %720 = vector.extract_strided_slice %3 {offsets = [0, 0], sizes = [16, 8], strides = [1, 1]} : vector<18x8xf32> to vector<16x8xf32>
    %721 = vector.extract_strided_slice %7 {offsets = [0, 0], sizes = [16, 8], strides = [1, 1]} : vector<18x8xf32> to vector<16x8xf32>
    %c45 = arith.constant 45 : index
    %722 = memref.load %arg3[%c45] : memref<60xf32, #tpu.memory_space<smem>>
    %c45_57 = arith.constant 45 : index
    %723 = memref.load %arg4[%c45_57] : memref<60xf32, #tpu.memory_space<smem>>
    %724 = vector.broadcast %722 : f32 to vector<16x8xf32>
    %725 = arith.addf %720, %724 : vector<16x8xf32>
    %726 = arith.minimumf %710, %725 : vector<16x8xf32>
    %727 = vector.broadcast %723 : f32 to vector<16x8xf32>
    %728 = arith.addf %720, %727 : vector<16x8xf32>
    %729 = arith.maximumf %713, %728 : vector<16x8xf32>
    %730 = vector.broadcast %722 : f32 to vector<16x8xf32>
    %731 = arith.addf %721, %730 : vector<16x8xf32>
    %732 = arith.minimumf %716, %731 : vector<16x8xf32>
    %733 = vector.broadcast %723 : f32 to vector<16x8xf32>
    %734 = arith.addf %721, %733 : vector<16x8xf32>
    %735 = arith.maximumf %719, %734 : vector<16x8xf32>
    %736 = vector.extract_strided_slice %7 {offsets = [0, 0], sizes = [16, 8], strides = [1, 1]} : vector<18x8xf32> to vector<16x8xf32>
    %737 = vector.extract_strided_slice %3 {offsets = [1, 0], sizes = [16, 8], strides = [1, 1]} : vector<18x8xf32> to vector<16x8xf32>
    %c46 = arith.constant 46 : index
    %738 = memref.load %arg3[%c46] : memref<60xf32, #tpu.memory_space<smem>>
    %c46_58 = arith.constant 46 : index
    %739 = memref.load %arg4[%c46_58] : memref<60xf32, #tpu.memory_space<smem>>
    %740 = vector.broadcast %738 : f32 to vector<16x8xf32>
    %741 = arith.addf %736, %740 : vector<16x8xf32>
    %742 = arith.minimumf %726, %741 : vector<16x8xf32>
    %743 = vector.broadcast %739 : f32 to vector<16x8xf32>
    %744 = arith.addf %736, %743 : vector<16x8xf32>
    %745 = arith.maximumf %729, %744 : vector<16x8xf32>
    %746 = vector.broadcast %738 : f32 to vector<16x8xf32>
    %747 = arith.addf %737, %746 : vector<16x8xf32>
    %748 = arith.minimumf %732, %747 : vector<16x8xf32>
    %749 = vector.broadcast %739 : f32 to vector<16x8xf32>
    %750 = arith.addf %737, %749 : vector<16x8xf32>
    %751 = arith.maximumf %735, %750 : vector<16x8xf32>
    %752 = vector.extract_strided_slice %3 {offsets = [1, 0], sizes = [16, 8], strides = [1, 1]} : vector<18x8xf32> to vector<16x8xf32>
    %753 = vector.extract_strided_slice %7 {offsets = [1, 0], sizes = [16, 8], strides = [1, 1]} : vector<18x8xf32> to vector<16x8xf32>
    %c47 = arith.constant 47 : index
    %754 = memref.load %arg3[%c47] : memref<60xf32, #tpu.memory_space<smem>>
    %c47_59 = arith.constant 47 : index
    %755 = memref.load %arg4[%c47_59] : memref<60xf32, #tpu.memory_space<smem>>
    %756 = vector.broadcast %754 : f32 to vector<16x8xf32>
    %757 = arith.addf %752, %756 : vector<16x8xf32>
    %758 = arith.minimumf %742, %757 : vector<16x8xf32>
    %759 = vector.broadcast %755 : f32 to vector<16x8xf32>
    %760 = arith.addf %752, %759 : vector<16x8xf32>
    %761 = arith.maximumf %745, %760 : vector<16x8xf32>
    %762 = vector.broadcast %754 : f32 to vector<16x8xf32>
    %763 = arith.addf %753, %762 : vector<16x8xf32>
    %764 = arith.minimumf %748, %763 : vector<16x8xf32>
    %765 = vector.broadcast %755 : f32 to vector<16x8xf32>
    %766 = arith.addf %753, %765 : vector<16x8xf32>
    %767 = arith.maximumf %751, %766 : vector<16x8xf32>
    %768 = vector.extract_strided_slice %7 {offsets = [1, 0], sizes = [16, 8], strides = [1, 1]} : vector<18x8xf32> to vector<16x8xf32>
    %769 = vector.extract_strided_slice %3 {offsets = [2, 0], sizes = [16, 8], strides = [1, 1]} : vector<18x8xf32> to vector<16x8xf32>
    %c48 = arith.constant 48 : index
    %770 = memref.load %arg3[%c48] : memref<60xf32, #tpu.memory_space<smem>>
    %c48_60 = arith.constant 48 : index
    %771 = memref.load %arg4[%c48_60] : memref<60xf32, #tpu.memory_space<smem>>
    %772 = vector.broadcast %770 : f32 to vector<16x8xf32>
    %773 = arith.addf %768, %772 : vector<16x8xf32>
    %774 = arith.minimumf %758, %773 : vector<16x8xf32>
    %775 = vector.broadcast %771 : f32 to vector<16x8xf32>
    %776 = arith.addf %768, %775 : vector<16x8xf32>
    %777 = arith.maximumf %761, %776 : vector<16x8xf32>
    %778 = vector.broadcast %770 : f32 to vector<16x8xf32>
    %779 = arith.addf %769, %778 : vector<16x8xf32>
    %780 = arith.minimumf %764, %779 : vector<16x8xf32>
    %781 = vector.broadcast %771 : f32 to vector<16x8xf32>
    %782 = arith.addf %769, %781 : vector<16x8xf32>
    %783 = arith.maximumf %767, %782 : vector<16x8xf32>
    %784 = vector.extract_strided_slice %3 {offsets = [2, 0], sizes = [16, 8], strides = [1, 1]} : vector<18x8xf32> to vector<16x8xf32>
    %785 = vector.extract_strided_slice %7 {offsets = [2, 0], sizes = [16, 8], strides = [1, 1]} : vector<18x8xf32> to vector<16x8xf32>
    %c49 = arith.constant 49 : index
    %786 = memref.load %arg3[%c49] : memref<60xf32, #tpu.memory_space<smem>>
    %c49_61 = arith.constant 49 : index
    %787 = memref.load %arg4[%c49_61] : memref<60xf32, #tpu.memory_space<smem>>
    %788 = vector.broadcast %786 : f32 to vector<16x8xf32>
    %789 = arith.addf %784, %788 : vector<16x8xf32>
    %790 = arith.minimumf %774, %789 : vector<16x8xf32>
    %791 = vector.broadcast %787 : f32 to vector<16x8xf32>
    %792 = arith.addf %784, %791 : vector<16x8xf32>
    %793 = arith.maximumf %777, %792 : vector<16x8xf32>
    %794 = vector.broadcast %786 : f32 to vector<16x8xf32>
    %795 = arith.addf %785, %794 : vector<16x8xf32>
    %796 = arith.minimumf %780, %795 : vector<16x8xf32>
    %797 = vector.broadcast %787 : f32 to vector<16x8xf32>
    %798 = arith.addf %785, %797 : vector<16x8xf32>
    %799 = arith.maximumf %783, %798 : vector<16x8xf32>
    %800 = arith.addf %790, %793 : vector<16x8xf32>
    %801 = arith.addf %796, %799 : vector<16x8xf32>
    %802 = arith.addf %800, %801 : vector<16x8xf32>
    %803 = vector.extract_strided_slice %1 {offsets = [0, 0], sizes = [16, 8], strides = [1, 1]} : vector<18x8xf32> to vector<16x8xf32>
    %804 = vector.extract_strided_slice %5 {offsets = [0, 0], sizes = [16, 8], strides = [1, 1]} : vector<18x8xf32> to vector<16x8xf32>
    %c50 = arith.constant 50 : index
    %805 = memref.load %arg3[%c50] : memref<60xf32, #tpu.memory_space<smem>>
    %c50_62 = arith.constant 50 : index
    %806 = memref.load %arg4[%c50_62] : memref<60xf32, #tpu.memory_space<smem>>
    %807 = vector.broadcast %805 : f32 to vector<16x8xf32>
    %808 = arith.addf %803, %807 : vector<16x8xf32>
    %809 = vector.broadcast %806 : f32 to vector<16x8xf32>
    %810 = arith.addf %803, %809 : vector<16x8xf32>
    %811 = vector.broadcast %805 : f32 to vector<16x8xf32>
    %812 = arith.addf %804, %811 : vector<16x8xf32>
    %813 = vector.broadcast %806 : f32 to vector<16x8xf32>
    %814 = arith.addf %804, %813 : vector<16x8xf32>
    %815 = vector.extract_strided_slice %5 {offsets = [0, 0], sizes = [16, 8], strides = [1, 1]} : vector<18x8xf32> to vector<16x8xf32>
    %816 = vector.extract_strided_slice %1 {offsets = [1, 0], sizes = [16, 8], strides = [1, 1]} : vector<18x8xf32> to vector<16x8xf32>
    %c51 = arith.constant 51 : index
    %817 = memref.load %arg3[%c51] : memref<60xf32, #tpu.memory_space<smem>>
    %c51_63 = arith.constant 51 : index
    %818 = memref.load %arg4[%c51_63] : memref<60xf32, #tpu.memory_space<smem>>
    %819 = vector.broadcast %817 : f32 to vector<16x8xf32>
    %820 = arith.addf %815, %819 : vector<16x8xf32>
    %821 = arith.minimumf %808, %820 : vector<16x8xf32>
    %822 = vector.broadcast %818 : f32 to vector<16x8xf32>
    %823 = arith.addf %815, %822 : vector<16x8xf32>
    %824 = arith.maximumf %810, %823 : vector<16x8xf32>
    %825 = vector.broadcast %817 : f32 to vector<16x8xf32>
    %826 = arith.addf %816, %825 : vector<16x8xf32>
    %827 = arith.minimumf %812, %826 : vector<16x8xf32>
    %828 = vector.broadcast %818 : f32 to vector<16x8xf32>
    %829 = arith.addf %816, %828 : vector<16x8xf32>
    %830 = arith.maximumf %814, %829 : vector<16x8xf32>
    %831 = vector.extract_strided_slice %1 {offsets = [1, 0], sizes = [16, 8], strides = [1, 1]} : vector<18x8xf32> to vector<16x8xf32>
    %832 = vector.extract_strided_slice %5 {offsets = [1, 0], sizes = [16, 8], strides = [1, 1]} : vector<18x8xf32> to vector<16x8xf32>
    %c52 = arith.constant 52 : index
    %833 = memref.load %arg3[%c52] : memref<60xf32, #tpu.memory_space<smem>>
    %c52_64 = arith.constant 52 : index
    %834 = memref.load %arg4[%c52_64] : memref<60xf32, #tpu.memory_space<smem>>
    %835 = vector.broadcast %833 : f32 to vector<16x8xf32>
    %836 = arith.addf %831, %835 : vector<16x8xf32>
    %837 = arith.minimumf %821, %836 : vector<16x8xf32>
    %838 = vector.broadcast %834 : f32 to vector<16x8xf32>
    %839 = arith.addf %831, %838 : vector<16x8xf32>
    %840 = arith.maximumf %824, %839 : vector<16x8xf32>
    %841 = vector.broadcast %833 : f32 to vector<16x8xf32>
    %842 = arith.addf %832, %841 : vector<16x8xf32>
    %843 = arith.minimumf %827, %842 : vector<16x8xf32>
    %844 = vector.broadcast %834 : f32 to vector<16x8xf32>
    %845 = arith.addf %832, %844 : vector<16x8xf32>
    %846 = arith.maximumf %830, %845 : vector<16x8xf32>
    %847 = vector.extract_strided_slice %5 {offsets = [1, 0], sizes = [16, 8], strides = [1, 1]} : vector<18x8xf32> to vector<16x8xf32>
    %848 = vector.extract_strided_slice %1 {offsets = [2, 0], sizes = [16, 8], strides = [1, 1]} : vector<18x8xf32> to vector<16x8xf32>
    %c53 = arith.constant 53 : index
    %849 = memref.load %arg3[%c53] : memref<60xf32, #tpu.memory_space<smem>>
    %c53_65 = arith.constant 53 : index
    %850 = memref.load %arg4[%c53_65] : memref<60xf32, #tpu.memory_space<smem>>
    %851 = vector.broadcast %849 : f32 to vector<16x8xf32>
    %852 = arith.addf %847, %851 : vector<16x8xf32>
    %853 = arith.minimumf %837, %852 : vector<16x8xf32>
    %854 = vector.broadcast %850 : f32 to vector<16x8xf32>
    %855 = arith.addf %847, %854 : vector<16x8xf32>
    %856 = arith.maximumf %840, %855 : vector<16x8xf32>
    %857 = vector.broadcast %849 : f32 to vector<16x8xf32>
    %858 = arith.addf %848, %857 : vector<16x8xf32>
    %859 = arith.minimumf %843, %858 : vector<16x8xf32>
    %860 = vector.broadcast %850 : f32 to vector<16x8xf32>
    %861 = arith.addf %848, %860 : vector<16x8xf32>
    %862 = arith.maximumf %846, %861 : vector<16x8xf32>
    %863 = vector.extract_strided_slice %1 {offsets = [2, 0], sizes = [16, 8], strides = [1, 1]} : vector<18x8xf32> to vector<16x8xf32>
    %864 = vector.extract_strided_slice %5 {offsets = [2, 0], sizes = [16, 8], strides = [1, 1]} : vector<18x8xf32> to vector<16x8xf32>
    %c54 = arith.constant 54 : index
    %865 = memref.load %arg3[%c54] : memref<60xf32, #tpu.memory_space<smem>>
    %c54_66 = arith.constant 54 : index
    %866 = memref.load %arg4[%c54_66] : memref<60xf32, #tpu.memory_space<smem>>
    %867 = vector.broadcast %865 : f32 to vector<16x8xf32>
    %868 = arith.addf %863, %867 : vector<16x8xf32>
    %869 = arith.minimumf %853, %868 : vector<16x8xf32>
    %870 = vector.broadcast %866 : f32 to vector<16x8xf32>
    %871 = arith.addf %863, %870 : vector<16x8xf32>
    %872 = arith.maximumf %856, %871 : vector<16x8xf32>
    %873 = vector.broadcast %865 : f32 to vector<16x8xf32>
    %874 = arith.addf %864, %873 : vector<16x8xf32>
    %875 = arith.minimumf %859, %874 : vector<16x8xf32>
    %876 = vector.broadcast %866 : f32 to vector<16x8xf32>
    %877 = arith.addf %864, %876 : vector<16x8xf32>
    %878 = arith.maximumf %862, %877 : vector<16x8xf32>
    %879 = vector.extract_strided_slice %3 {offsets = [0, 0], sizes = [16, 8], strides = [1, 1]} : vector<18x8xf32> to vector<16x8xf32>
    %880 = vector.extract_strided_slice %7 {offsets = [0, 0], sizes = [16, 8], strides = [1, 1]} : vector<18x8xf32> to vector<16x8xf32>
    %c55 = arith.constant 55 : index
    %881 = memref.load %arg3[%c55] : memref<60xf32, #tpu.memory_space<smem>>
    %c55_67 = arith.constant 55 : index
    %882 = memref.load %arg4[%c55_67] : memref<60xf32, #tpu.memory_space<smem>>
    %883 = vector.broadcast %881 : f32 to vector<16x8xf32>
    %884 = arith.addf %879, %883 : vector<16x8xf32>
    %885 = arith.minimumf %869, %884 : vector<16x8xf32>
    %886 = vector.broadcast %882 : f32 to vector<16x8xf32>
    %887 = arith.addf %879, %886 : vector<16x8xf32>
    %888 = arith.maximumf %872, %887 : vector<16x8xf32>
    %889 = vector.broadcast %881 : f32 to vector<16x8xf32>
    %890 = arith.addf %880, %889 : vector<16x8xf32>
    %891 = arith.minimumf %875, %890 : vector<16x8xf32>
    %892 = vector.broadcast %882 : f32 to vector<16x8xf32>
    %893 = arith.addf %880, %892 : vector<16x8xf32>
    %894 = arith.maximumf %878, %893 : vector<16x8xf32>
    %895 = vector.extract_strided_slice %7 {offsets = [0, 0], sizes = [16, 8], strides = [1, 1]} : vector<18x8xf32> to vector<16x8xf32>
    %896 = vector.extract_strided_slice %3 {offsets = [1, 0], sizes = [16, 8], strides = [1, 1]} : vector<18x8xf32> to vector<16x8xf32>
    %c56 = arith.constant 56 : index
    %897 = memref.load %arg3[%c56] : memref<60xf32, #tpu.memory_space<smem>>
    %c56_68 = arith.constant 56 : index
    %898 = memref.load %arg4[%c56_68] : memref<60xf32, #tpu.memory_space<smem>>
    %899 = vector.broadcast %897 : f32 to vector<16x8xf32>
    %900 = arith.addf %895, %899 : vector<16x8xf32>
    %901 = arith.minimumf %885, %900 : vector<16x8xf32>
    %902 = vector.broadcast %898 : f32 to vector<16x8xf32>
    %903 = arith.addf %895, %902 : vector<16x8xf32>
    %904 = arith.maximumf %888, %903 : vector<16x8xf32>
    %905 = vector.broadcast %897 : f32 to vector<16x8xf32>
    %906 = arith.addf %896, %905 : vector<16x8xf32>
    %907 = arith.minimumf %891, %906 : vector<16x8xf32>
    %908 = vector.broadcast %898 : f32 to vector<16x8xf32>
    %909 = arith.addf %896, %908 : vector<16x8xf32>
    %910 = arith.maximumf %894, %909 : vector<16x8xf32>
    %911 = vector.extract_strided_slice %3 {offsets = [1, 0], sizes = [16, 8], strides = [1, 1]} : vector<18x8xf32> to vector<16x8xf32>
    %912 = vector.extract_strided_slice %7 {offsets = [1, 0], sizes = [16, 8], strides = [1, 1]} : vector<18x8xf32> to vector<16x8xf32>
    %c57 = arith.constant 57 : index
    %913 = memref.load %arg3[%c57] : memref<60xf32, #tpu.memory_space<smem>>
    %c57_69 = arith.constant 57 : index
    %914 = memref.load %arg4[%c57_69] : memref<60xf32, #tpu.memory_space<smem>>
    %915 = vector.broadcast %913 : f32 to vector<16x8xf32>
    %916 = arith.addf %911, %915 : vector<16x8xf32>
    %917 = arith.minimumf %901, %916 : vector<16x8xf32>
    %918 = vector.broadcast %914 : f32 to vector<16x8xf32>
    %919 = arith.addf %911, %918 : vector<16x8xf32>
    %920 = arith.maximumf %904, %919 : vector<16x8xf32>
    %921 = vector.broadcast %913 : f32 to vector<16x8xf32>
    %922 = arith.addf %912, %921 : vector<16x8xf32>
    %923 = arith.minimumf %907, %922 : vector<16x8xf32>
    %924 = vector.broadcast %914 : f32 to vector<16x8xf32>
    %925 = arith.addf %912, %924 : vector<16x8xf32>
    %926 = arith.maximumf %910, %925 : vector<16x8xf32>
    %927 = vector.extract_strided_slice %7 {offsets = [1, 0], sizes = [16, 8], strides = [1, 1]} : vector<18x8xf32> to vector<16x8xf32>
    %928 = vector.extract_strided_slice %3 {offsets = [2, 0], sizes = [16, 8], strides = [1, 1]} : vector<18x8xf32> to vector<16x8xf32>
    %c58 = arith.constant 58 : index
    %929 = memref.load %arg3[%c58] : memref<60xf32, #tpu.memory_space<smem>>
    %c58_70 = arith.constant 58 : index
    %930 = memref.load %arg4[%c58_70] : memref<60xf32, #tpu.memory_space<smem>>
    %931 = vector.broadcast %929 : f32 to vector<16x8xf32>
    %932 = arith.addf %927, %931 : vector<16x8xf32>
    %933 = arith.minimumf %917, %932 : vector<16x8xf32>
    %934 = vector.broadcast %930 : f32 to vector<16x8xf32>
    %935 = arith.addf %927, %934 : vector<16x8xf32>
    %936 = arith.maximumf %920, %935 : vector<16x8xf32>
    %937 = vector.broadcast %929 : f32 to vector<16x8xf32>
    %938 = arith.addf %928, %937 : vector<16x8xf32>
    %939 = arith.minimumf %923, %938 : vector<16x8xf32>
    %940 = vector.broadcast %930 : f32 to vector<16x8xf32>
    %941 = arith.addf %928, %940 : vector<16x8xf32>
    %942 = arith.maximumf %926, %941 : vector<16x8xf32>
    %943 = vector.extract_strided_slice %3 {offsets = [2, 0], sizes = [16, 8], strides = [1, 1]} : vector<18x8xf32> to vector<16x8xf32>
    %944 = vector.extract_strided_slice %7 {offsets = [2, 0], sizes = [16, 8], strides = [1, 1]} : vector<18x8xf32> to vector<16x8xf32>
    %c59 = arith.constant 59 : index
    %945 = memref.load %arg3[%c59] : memref<60xf32, #tpu.memory_space<smem>>
    %c59_71 = arith.constant 59 : index
    %946 = memref.load %arg4[%c59_71] : memref<60xf32, #tpu.memory_space<smem>>
    %947 = vector.broadcast %945 : f32 to vector<16x8xf32>
    %948 = arith.addf %943, %947 : vector<16x8xf32>
    %949 = arith.minimumf %933, %948 : vector<16x8xf32>
    %950 = vector.broadcast %946 : f32 to vector<16x8xf32>
    %951 = arith.addf %943, %950 : vector<16x8xf32>
    %952 = arith.maximumf %936, %951 : vector<16x8xf32>
    %953 = vector.broadcast %945 : f32 to vector<16x8xf32>
    %954 = arith.addf %944, %953 : vector<16x8xf32>
    %955 = arith.minimumf %939, %954 : vector<16x8xf32>
    %956 = vector.broadcast %946 : f32 to vector<16x8xf32>
    %957 = arith.addf %944, %956 : vector<16x8xf32>
    %958 = arith.maximumf %942, %957 : vector<16x8xf32>
    %959 = arith.addf %949, %952 : vector<16x8xf32>
    %960 = arith.addf %955, %958 : vector<16x8xf32>
    %961 = arith.addf %959, %960 : vector<16x8xf32>
    %962 = tpu.concatenate %166, %325, %484, %643, %802, %961 in 0 : vector<16x8xf32>, vector<16x8xf32>, vector<16x8xf32>, vector<16x8xf32>, vector<16x8xf32>, vector<16x8xf32> -> vector<96x8xf32>
    %c0_72 = arith.constant 0 : index
    %c0_73 = arith.constant 0 : index
    %963 = vector.load %arg5[%c0_72, %c0_73] : memref<128x96xf32, #tpu.memory_space<vmem>>, vector<128x96xf32>
    %cst = arith.constant dense<0.000000e+00> : vector<128x8xf32>
    %964 = tpu.matmul %963, %962, %cst {dimension_numbers = #tpu.dot_dimension_numbers<[1], [0], [0], [1], [0, 0, 1, 1], [], []>} : vector<128x96xf32>, vector<96x8xf32>, vector<128x8xf32> -> vector<128x8xf32>
    %c0_74 = arith.constant 0 : index
    %c0_75 = arith.constant 0 : index
    %965 = vector.load %arg6[%c0_74, %c0_75] : memref<128x1xf32, #tpu.memory_space<vmem>>, vector<128x1xf32>
    %966 = vector.broadcast %965 : vector<128x1xf32> to vector<128x8xf32>
    %967 = arith.addf %964, %966 : vector<128x8xf32>
    %cst_76 = arith.constant 0.000000e+00 : f32
    %968 = vector.broadcast %cst_76 : f32 to vector<128x8xf32>
    %969 = arith.maximumf %967, %968 : vector<128x8xf32>
    %c0_77 = arith.constant 0 : index
    %c0_78 = arith.constant 0 : index
    %970 = vector.load %arg7[%c0_77, %c0_78] : memref<128x128xf32, #tpu.memory_space<vmem>>, vector<128x128xf32>
    %cst_79 = arith.constant dense<0.000000e+00> : vector<128x8xf32>
    %971 = tpu.matmul %970, %969, %cst_79 {dimension_numbers = #tpu.dot_dimension_numbers<[1], [0], [0], [1], [0, 0, 1, 1], [], []>} : vector<128x128xf32>, vector<128x8xf32>, vector<128x8xf32> -> vector<128x8xf32>
    %c0_80 = arith.constant 0 : index
    %c0_81 = arith.constant 0 : index
    %972 = vector.load %arg8[%c0_80, %c0_81] : memref<128x1xf32, #tpu.memory_space<vmem>>, vector<128x1xf32>
    %973 = vector.broadcast %972 : vector<128x1xf32> to vector<128x8xf32>
    %974 = arith.addf %971, %973 : vector<128x8xf32>
    %cst_82 = arith.constant 0.000000e+00 : f32
    %975 = vector.broadcast %cst_82 : f32 to vector<128x8xf32>
    %976 = arith.maximumf %974, %975 : vector<128x8xf32>
    %c0_83 = arith.constant 0 : index
    %c0_84 = arith.constant 0 : index
    %977 = vector.load %arg9[%c0_83, %c0_84] : memref<128x128xf32, #tpu.memory_space<vmem>>, vector<128x128xf32>
    %cst_85 = arith.constant dense<0.000000e+00> : vector<128x8xf32>
    %978 = tpu.matmul %977, %976, %cst_85 {dimension_numbers = #tpu.dot_dimension_numbers<[1], [0], [0], [1], [0, 0, 1, 1], [], []>} : vector<128x128xf32>, vector<128x8xf32>, vector<128x8xf32> -> vector<128x8xf32>
    %c0_86 = arith.constant 0 : index
    %c0_87 = arith.constant 0 : index
    %979 = vector.load %arg10[%c0_86, %c0_87] : memref<128x1xf32, #tpu.memory_space<vmem>>, vector<128x1xf32>
    %980 = vector.broadcast %979 : vector<128x1xf32> to vector<128x8xf32>
    %981 = arith.addf %978, %980 : vector<128x8xf32>
    %c0_88 = arith.constant 0 : index
    %c0_89 = arith.constant 0 : index
    %982 = vector.load %arg11[%c0_88, %c0_89] : memref<128x8xf32, #tpu.memory_space<vmem>>, vector<128x8xf32>
    tpu.vector_store %arg11[%c0_88, %c0_89], %981 {strides = array<i32>} : memref<128x8xf32, #tpu.memory_space<vmem>>, vector<128x8xf32>,
    return
  }
  func.func @transform_0(%arg0: i32) -> (i32, i32, i32) {
    %c0_i32 = arith.constant 0 : i32
    %c0_i32_0 = arith.constant 0 : i32
    %c0_i32_1 = arith.constant 0 : i32
    return %c0_i32, %c0_i32_0, %arg0 : i32, i32, i32
  }
  func.func @transform_1(%arg0: i32) -> (i32, i32, i32) {
    %c0_i32 = arith.constant 0 : i32
    %c0_i32_0 = arith.constant 0 : i32
    %c0_i32_1 = arith.constant 0 : i32
    return %c0_i32, %c0_i32_0, %arg0 : i32, i32, i32
  }
  func.func @transform_2(%arg0: i32) -> i32 {
    %c0_i32 = arith.constant 0 : i32
    %c0_i32_0 = arith.constant 0 : i32
    return %c0_i32 : i32
  }
  func.func @transform_3(%arg0: i32) -> i32 {
    %c0_i32 = arith.constant 0 : i32
    %c0_i32_0 = arith.constant 0 : i32
    return %c0_i32 : i32
  }
  func.func @transform_4(%arg0: i32) -> (i32, i32) {
    %c0_i32 = arith.constant 0 : i32
    %c0_i32_0 = arith.constant 0 : i32
    %c0_i32_1 = arith.constant 0 : i32
    return %c0_i32, %c0_i32_0 : i32, i32
  }
  func.func @transform_5(%arg0: i32) -> (i32, i32) {
    %c0_i32 = arith.constant 0 : i32
    %c0_i32_0 = arith.constant 0 : i32
    %c0_i32_1 = arith.constant 0 : i32
    return %c0_i32, %c0_i32_0 : i32, i32
  }
  func.func @transform_6(%arg0: i32) -> (i32, i32) {
    %c0_i32 = arith.constant 0 : i32
    %c0_i32_0 = arith.constant 0 : i32
    %c0_i32_1 = arith.constant 0 : i32
    return %c0_i32, %c0_i32_0 : i32, i32
  }
  func.func @transform_7(%arg0: i32) -> (i32, i32) {
    %c0_i32 = arith.constant 0 : i32
    %c0_i32_0 = arith.constant 0 : i32
    %c0_i32_1 = arith.constant 0 : i32
    return %c0_i32, %c0_i32_0 : i32, i32
  }
  func.func @transform_8(%arg0: i32) -> (i32, i32) {
    %c0_i32 = arith.constant 0 : i32
    %c0_i32_0 = arith.constant 0 : i32
    %c0_i32_1 = arith.constant 0 : i32
    return %c0_i32, %c0_i32_0 : i32, i32
  }
  func.func @transform_9(%arg0: i32) -> (i32, i32) {
    %c0_i32 = arith.constant 0 : i32
    %c0_i32_0 = arith.constant 0 : i32
    %c0_i32_1 = arith.constant 0 : i32
    return %c0_i32, %c0_i32_0 : i32, i32
  }
  func.func @transform_10(%arg0: i32) -> (i32, i32) {
    %c0_i32 = arith.constant 0 : i32
    %c0_i32_0 = arith.constant 0 : i32
    return %c0_i32, %arg0 : i32, i32
  }
}

</mosaic_0001>

<bundles_post_ra>
// kernel: parallel_tropical_lenet4.1
= control target key start
LH: loop header
LB: loop body
LE: loop exit
PB: predicated region body
PF: predicated region fallthrough
CT: control target
= control target key end

     0   :  { %15 = vsyncpa [#allocation3], 0  ;;  %s7278_s0 = inlined_call_operand.vmem [shape: f32[2,18,8], index: 0, kind: input, shape index: {}]   ;;  %s7279_s1 = inlined_call_operand.vmem [shape: f32[2,18,8], index: 1, kind: input, shape index: {}]   ;;  %s7280_s2 = inlined_call_operand.vmem [shape: f32[60], index: 2, kind: input, shape index: {}]   ;;  %s7281_s3 = inlined_call_operand.vmem [shape: f32[60], index: 3, kind: input, shape index: {}]   ;;  %s7282_s4 = inlined_call_operand.vmem [shape: f32[128,96], index: 4, kind: input, shape index: {}]   ;;  %s7283_s5 = inlined_call_operand.vmem [shape: f32[128,1], index: 5, kind: input, shape index: {}]   ;;  %s7284_s6 = inlined_call_operand.vmem [shape: f32[128,128], index: 6, kind: input, shape index: {}]   ;;  %s7285_s7 = inlined_call_operand.vmem [shape: f32[128,1], index: 7, kind: input, shape index: {}]   ;;  %s7286_s8 = inlined_call_operand.vmem [shape: f32[128,128], index: 8, kind: input, shape index: {}]   ;;  %s7287_s9 = inlined_call_operand.vmem [shape: f32[128,1], index: 9, kind: input, shape index: {}]   ;;  %s7288_s10 = inlined_call_operand.vmem [shape: f32[128,8], index: 10, kind: output, shape index: {}]  }
   0x1   :  { %s27_s15 = sshll.u32 %s7280_s2, 4  ;;  %s28_s15 = int_to_ptr.vmem [resolvable:$true] %s27_s15 }
   0x2   :  { %16 = vsyncpa [#allocation5], 0  ;;  %s37_s18 = sshll.u32 %s7281_s3, 4  ;;  %s4524_s19 = scalar_lea.vmem %s28_s15, 16  ;;  %s38_s18 = int_to_ptr.vmem [resolvable:$true] %s37_s18 }
   0x3   :  { %p4525_p0 = scmp.ne.s32.totalorder %s28_s15, %s4524_s19  ;;  %p4529_p1 = scmp.lt.s32.totalorder %s28_s15, %s28_s15 }
   0x4   :  { %p4530_p2 = scmp.lt.s32.totalorder %s4524_s19, %s4524_s19 }
   0x6   :  { %p4531_p3 = por %p4530_p2, %p4529_p1 }
   0x8   :  { %p4532_p4 = pnand %p4531_p3, %p4525_p0 }
   0xa   :  { %4535 = shalt.err (!%p4532_p4)
}
   0xb   :  { %s4552_s20 = smov [#allocation2]   ;;  %s4536_s21 = scalar_lea.vmem %s38_s18, 16 }
   0xc   :  { %30 = dma.vmem_to_smem %s28_s15, 16, %s4552_s20, [#allocation3]  }
   0xd   :  { %p4537_p5 = scmp.ne.s32.totalorder %s38_s18, %s4536_s21  ;;  %p4541_p6 = scmp.lt.s32.totalorder %s38_s18, %s38_s18 }
   0xe   :  { %p4542_p7 = scmp.lt.s32.totalorder %s4536_s21, %s4536_s21 }
  0x10   :  { %p4543_p8 = por %p4542_p7, %p4541_p6 }
  0x12   :  { %p4544_p9 = pnand %p4543_p8, %p4537_p5 }
  0x14   :  { %4547 = shalt.err (!%p4544_p9)
}
  0x15   :  { %s4553_s2 = smov [#allocation4]  }
  0x16   :  { %40 = dma.vmem_to_smem %s38_s18, 16, %s4553_s2, [#allocation5]  }
  0x17   :  { %4548 = dma.done.wait [#allocation3], 16  }
  0x18   :  { %4549 = vsyncadd [#allocation3], 4294967280 }
  0x19   :  { %4550 = dma.done.wait [#allocation5], 16  }
  0x1a   :  { %4551 = vsyncadd [#allocation5], 4294967280 }
  0x1b   :  { %59 = sfence }
  0x1c   :  { %s74_s3 = sld [smem:[#allocation2]]  ;;  %s3993_s23 = sld [smem:[#allocation2 + $0x1]]  ;;  %v4619_v0 = vld [vmem:[%s7279_s1] sm:$0xff]  ;;  %v4624_v1 = vld [vmem:[%s7279_s1 + $0x8] sm:$0xff]  ;;  %vm104_vm0 = vcmask 1046528   ;;  %vm233_vm1 = vcmask 1045504  }
  0x1d   :  { %s75_s22 = sld [smem:[#allocation4]]  ;;  %s3994_s24 = sld [smem:[#allocation4 + $0x1]]  ;;  %v4629_v2 = vld [vmem:[%s7278_s0] sm:$0xff]  ;;  %v4634_v3 = vld [vmem:[%s7278_s0 + $0x8] sm:$0xff]  ;;  %v4647_v8 = vld [vmem:[%s7278_s0 + $0x10] sm:$0x3] }
  0x1e   :  { %s4636_s13 = sld [smem:[#allocation2 + $0x2]]  ;;  %s4691_s17 = sld [smem:[#allocation2 + $0x3]]  ;;  %v4696_v49 = vld [vmem:[%s7279_s1 + $0x10] sm:$0x3]  ;;  %vm3224_vm2 = vcmask 785408   ;;  %vm3964_vm3 = vcmask 64512  }
  0x1f   :  { %s4638_s14 = sld [smem:[#allocation4 + $0x2]]  ;;  %s4703_s20 = sld [smem:[#allocation4 + $0x3]] }
  0x20   :  { %s4731_s21 = sld [smem:[#allocation2 + $0x4]]  ;;  %s5029_s27 = sld [smem:[#allocation2 + $0xd]] }
  0x21   :  { %s4000_s2 = sld [smem:[#allocation4 + $0x4]]  ;;  %s5031_s28 = sld [smem:[#allocation4 + $0xd]] }
  0x22   :  { %v76_v4 = vstv %s74_s3  ;;  %v88_v15 = vstv %s3993_s23  ;;  %s4772_s3 = sld [smem:[#allocation2 + $0x5]]  ;;  %s4787_s23 = sld [smem:[#allocation2 + $0x6]] }
  0x23   :  { %v77_v5 = vadd.f32 %v76_v4, %v4629_v2  ;;  %v4642_v6 = vadd.f32 %v76_v4, %v4634_v3  ;;  %v79_v7 = vstv %s75_s22  ;;  %v4656_v11 = vadd.f32 %v76_v4, %v4619_v0  ;;  %s4774_s22 = sld [smem:[#allocation4 + $0x5]]  ;;  %s4966_s25 = sld [smem:[#allocation2 + $0xc]] }
  0x24   :  { %v4650_v9 = vadd.f32 %v79_v7, %v4629_v2  ;;  %v4653_v10 = vadd.f32 %v79_v7, %v4634_v3  ;;  %v4659_v12 = vadd.f32 %v76_v4, %v4624_v1  ;;  %v4662_v13 = vadd.f32 %v79_v7, %v4619_v0  ;;  %s4971_s26 = sld [smem:[#allocation4 + $0xc]]  ;;  %s5074_s29 = sld [smem:[#allocation2 + $0xe]] }
  0x25   :  { %v4665_v14 = vadd.f32 %v79_v7, %v4624_v1  ;;  %v93_v16 = vstv %s3994_s24  ;;  %v89_v17 = vadd.f32 %v88_v15, %v4619_v0  ;;  %v90_v18 = vadd.f32 %v88_v15, %v4624_v1  ;;  %s4789_s24 = sld [smem:[#allocation4 + $0x6]]  ;;  %s5087_s11 = sld [smem:[#allocation2 + $0xf]] }
  0x26   :  { %v94_v19 = vadd.f32 %v93_v16, %v4619_v0  ;;  %v95_v20 = vadd.f32 %v93_v16, %v4624_v1  ;;  %v98_v21 = vadd.f32 %v88_v15, %v4629_v2  ;;  %v99_v22 = vadd.f32 %v88_v15, %v4634_v3  ;;  %s5076_s30 = sld [smem:[#allocation4 + $0xe]]  ;;  %s5120_s16 = sld [smem:[#allocation4 + $0xf]] }
  0x27   :  { %v100_v23 = vadd.f32 %v88_v15, %v4647_v8  ;;  %v114_v24 = vadd.f32 %v93_v16, %v4629_v2  ;;  %v91_v25 = vmin.f32 %v77_v5, %v89_v17  ;;  %v92_v26 = vmin.f32 %v4642_v6, %v90_v18  ;;  %s4034_s18 = sld [smem:[#allocation4 + $0x15]]  ;;  %s5355_s19 = sld [smem:[#allocation2 + $0x16]] }
  0x28   :  { %v96_v27 = vmax.f32 %v4650_v9, %v94_v19  ;;  %v97_v28 = vmax.f32 %v4653_v10, %v95_v20  ;;  %v105_v29 = vrot.slane %v98_v21, 1  ;;  %v106_v30 = vrot.slane %v99_v22, 1  ;;  %s5519_s12 = sld [smem:[#allocation4 + $0x1b]]  ;;  %s5558_s15 = sld [smem:[#allocation2 + $0x1c]] }
  0x29   :  { %v108_v31 = vrot.slane %v100_v23, 1  ;;  %v115_v32 = vadd.f32 %v93_v16, %v4634_v3  ;;  %v116_v33 = vadd.f32 %v93_v16, %v4647_v8  ;;  %v120_v34 = vrot.slane %v114_v24, 1 }
  0x2a   :  { %v131_v35 = vstv %s4636_s13  ;;  %v147_v36 = vstv %s4638_s14  ;;  %v107_v37 = vsel %vm104_vm0, %v105_v29, %v106_v30  ;;  %v195_v22 = vstv %s4691_s17  ;;  %s4826_s13 = sld [smem:[#allocation2 + $0x7]]  ;;  %s4870_s17 = sld [smem:[#allocation2 + $0x8]] }
  0x2b   :  { %v109_v38 = vsel %vm104_vm0, %v106_v30, %v108_v31  ;;  %v121_v39 = vrot.slane %v115_v32, 1  ;;  %v132_v40 = vadd.f32 %v131_v35, %v4629_v2  ;;  %v112_v41 = vmin.f32 %v4656_v11, %v107_v37  ;;  %s4828_s14 = sld [smem:[#allocation4 + $0x7]] }
  0x2c   :  { %v113_v42 = vmin.f32 %v4659_v12, %v109_v38  ;;  %v123_v43 = vrot.slane %v116_v33, 1  ;;  %v133_v44 = vadd.f32 %v131_v35, %v4634_v3  ;;  %v134_v46 = vadd.f32 %v131_v35, %v4647_v8 }
  0x2d   :  { %v122_v45 = vsel %vm104_vm0, %v120_v34, %v121_v39  ;;  %v138_v47 = vrot.slane %v132_v40, 1  ;;  %v148_v48 = vadd.f32 %v147_v36, %v4629_v2  ;;  %v149_v53 = vadd.f32 %v147_v36, %v4634_v3 }
  0x2e   :  { %v124_v50 = vsel %vm104_vm0, %v121_v39, %v123_v43  ;;  %v127_v51 = vmax.f32 %v4662_v13, %v122_v45  ;;  %v139_v52 = vrot.slane %v133_v44, 1  ;;  %v141_v55 = vrot.slane %v134_v46, 1 }
  0x2f   :  { %v128_v54 = vmax.f32 %v4665_v14, %v124_v50  ;;  %v150_v56 = vadd.f32 %v147_v36, %v4647_v8  ;;  %v154_v57 = vrot.slane %v148_v48, 1  ;;  %v155_v59 = vrot.slane %v149_v53, 1 }
  0x30   :  { %v140_v58 = vsel %vm104_vm0, %v138_v47, %v139_v52  ;;  %v163_v60 = vadd.f32 %v131_v35, %v4619_v0  ;;  %v164_v61 = vadd.f32 %v131_v35, %v4624_v1  ;;  %v142_v62 = vsel %vm104_vm0, %v139_v52, %v141_v55 }
  0x31   :  { %v4709_v63 = vmin.f32 %v91_v25, %v140_v58  ;;  %v157_v4 = vrot.slane %v150_v56, 1  ;;  %v165_v5 = vadd.f32 %v131_v35, %v4696_v49  ;;  %v4712_v6 = vmin.f32 %v92_v26, %v142_v62 }
  0x32   :  { %v156_v7 = vsel %vm104_vm0, %v154_v57, %v155_v59  ;;  %v169_v9 = vrot.slane %v163_v60, 1  ;;  %v170_v10 = vrot.slane %v164_v61, 1  ;;  %v178_v14 = vadd.f32 %v147_v36, %v4619_v0 }
  0x33   :  { %v158_v11 = vsel %vm104_vm0, %v155_v59, %v157_v4  ;;  %v4716_v12 = vmax.f32 %v96_v27, %v156_v7  ;;  %v172_v13 = vrot.slane %v165_v5, 1  ;;  %v179_v17 = vadd.f32 %v147_v36, %v4624_v1 }
  0x34   :  { %v4719_v15 = vmax.f32 %v97_v28, %v158_v11  ;;  %v171_v16 = vsel %vm104_vm0, %v169_v9, %v170_v10  ;;  %v180_v18 = vadd.f32 %v147_v36, %v4696_v49  ;;  %v184_v21 = vrot.slane %v178_v14, 1 }
  0x35   :  { %v173_v19 = vsel %vm104_vm0, %v170_v10, %v172_v13  ;;  %v4725_v20 = vmin.f32 %v112_v41, %v171_v16  ;;  %v185_v24 = vrot.slane %v179_v17, 1  ;;  %v196_v26 = vadd.f32 %v195_v22, %v4619_v0 }
  0x36   :  { %v4728_v23 = vmin.f32 %v113_v42, %v173_v19  ;;  %v187_v25 = vrot.slane %v180_v18, 1  ;;  %v197_v27 = vadd.f32 %v195_v22, %v4624_v1  ;;  %v198_v28 = vadd.f32 %v195_v22, %v4696_v49 }
  0x37   :  { %v211_v29 = vstv %s4703_s20  ;;  %v227_v30 = vadd.f32 %v195_v22, %v4629_v2  ;;  %v186_v31 = vsel %vm104_vm0, %v184_v21, %v185_v24  ;;  %v202_v33 = vrot.slane %v196_v26, 1  ;;  %s4885_s20 = sld [smem:[#allocation4 + $0x8]] }
  0x38   :  { %v188_v32 = vsel %vm104_vm0, %v185_v24, %v187_v25  ;;  %v212_v34 = vadd.f32 %v211_v29, %v4619_v0  ;;  %v4740_v35 = vmax.f32 %v127_v51, %v186_v31  ;;  %v203_v37 = vrot.slane %v197_v27, 1 }
  0x39   :  { %v4742_v36 = vmax.f32 %v128_v54, %v188_v32  ;;  %v205_v38 = vrot.slane %v198_v28, 1  ;;  %v213_v39 = vadd.f32 %v211_v29, %v4624_v1  ;;  %v214_v40 = vadd.f32 %v211_v29, %v4696_v49 }
  0x3a   :  { %v218_v41 = vrot.slane %v212_v34, 1  ;;  %v228_v42 = vadd.f32 %v195_v22, %v4634_v3  ;;  %v204_v43 = vsel %vm104_vm0, %v202_v33, %v203_v37  ;;  %v229_v45 = vadd.f32 %v195_v22, %v4647_v8 }
  0x3b   :  { %v206_v44 = vsel %vm104_vm0, %v203_v37, %v205_v38  ;;  %v234_v46 = vrot.slane %v227_v30, 2  ;;  %v209_v47 = vmin.f32 %v4709_v63, %v204_v43  ;;  %v219_v50 = vrot.slane %v213_v39, 1 }
  0x3c   :  { %v210_v48 = vmin.f32 %v4712_v6, %v206_v44  ;;  %v221_v51 = vrot.slane %v214_v40, 1  ;;  %v235_v52 = vrot.slane %v228_v42, 2  ;;  %v237_v53 = vrot.slane %v229_v45, 2  ;;  %v4799_v42 = vld [vmem:[%s7278_s0 + $0x20] sm:$0xff] }
  0x3d   :  { %v243_v54 = vadd.f32 %v211_v29, %v4629_v2  ;;  %v244_v55 = vadd.f32 %v211_v29, %v4634_v3  ;;  %v220_v56 = vsel %vm104_vm0, %v218_v41, %v219_v50  ;;  %v245_v58 = vadd.f32 %v211_v29, %v4647_v8  ;;  %v4794_v41 = vld [vmem:[%s7278_s0 + $0x18] sm:$0xff] }
  0x3e   :  { %v222_v57 = vsel %vm104_vm0, %v219_v50, %v221_v51  ;;  %v260_v59 = vstv %s4731_s21  ;;  %v225_v60 = vmax.f32 %v4716_v12, %v220_v56  ;;  %v236_v62 = vsel %vm233_vm1, %v234_v46, %v235_v52  ;;  %s4916_s21 = sld [smem:[#allocation2 + $0x9]] }
  0x3f   :  { %v226_v61 = vmax.f32 %v4719_v15, %v222_v57  ;;  %v238_v63 = vsel %vm233_vm1, %v235_v52, %v237_v53  ;;  %v241_v4 = vmin.f32 %v4725_v20, %v236_v62  ;;  %v249_v6 = vrot.slane %v243_v54, 2 }
  0x40   :  { %v242_v5 = vmin.f32 %v4728_v23, %v238_v63  ;;  %v250_v7 = vrot.slane %v244_v55, 2  ;;  %v252_v9 = vrot.slane %v245_v58, 2  ;;  %v261_v10 = vadd.f32 %v260_v59, %v4629_v2 }
  0x41   :  { %v262_v11 = vadd.f32 %v260_v59, %v4634_v3  ;;  %v263_v13 = vadd.f32 %v260_v59, %v4647_v8  ;;  %v276_v14 = vstv %s4000_s2  ;;  %v292_v15 = vadd.f32 %v260_v59, %v4619_v0  ;;  %s4918_s2 = sld [smem:[#allocation4 + $0x9]] }
  0x42   :  { %v251_v12 = vsel %vm233_vm1, %v249_v6, %v250_v7  ;;  %v293_v16 = vadd.f32 %v260_v59, %v4624_v1  ;;  %v253_v17 = vsel %vm233_vm1, %v250_v7, %v252_v9  ;;  %v267_v19 = vrot.slane %v261_v10, 2 }
  0x43   :  { %v256_v18 = vmax.f32 %v4740_v35, %v251_v12  ;;  %v268_v20 = vrot.slane %v262_v11, 2  ;;  %v257_v21 = vmax.f32 %v4742_v36, %v253_v17  ;;  %v270_v22 = vrot.slane %v263_v13, 2 }
  0x44   :  { %v277_v23 = vadd.f32 %v276_v14, %v4629_v2  ;;  %v278_v24 = vadd.f32 %v276_v14, %v4634_v3  ;;  %v279_v26 = vadd.f32 %v276_v14, %v4647_v8  ;;  %v294_v27 = vadd.f32 %v260_v59, %v4696_v49 }
  0x45   :  { %v269_v25 = vsel %vm233_vm1, %v267_v19, %v268_v20  ;;  %v298_v28 = vrot.slane %v292_v15, 2  ;;  %v271_v29 = vsel %vm233_vm1, %v268_v20, %v270_v22  ;;  %v299_v35 = vrot.slane %v293_v16, 2  ;;  %v4837_v19 = vld [vmem:[%s7278_s0 + $0x28] sm:$0x3] }
  0x46   :  { %v274_v30 = vmin.f32 %v209_v47, %v269_v25  ;;  %v283_v31 = vrot.slane %v277_v23, 2  ;;  %v284_v32 = vrot.slane %v278_v24, 2  ;;  %v275_v33 = vmin.f32 %v210_v48, %v271_v29  ;;  %v4807_v47 = vld [vmem:[%s7279_s1 + $0x18] sm:$0xff]  ;;  %v4812_v48 = vld [vmem:[%s7279_s1 + $0x20] sm:$0xff] }
  0x47   :  { %v286_v34 = vrot.slane %v279_v26, 2  ;;  %v301_v36 = vrot.slane %v294_v27, 2  ;;  %v307_v38 = vadd.f32 %v276_v14, %v4619_v0  ;;  %v308_v39 = vadd.f32 %v276_v14, %v4624_v1 }
  0x48   :  { %v285_v37 = vsel %vm233_vm1, %v283_v31, %v284_v32  ;;  %v309_v40 = vadd.f32 %v276_v14, %v4696_v49  ;;  %v300_v45 = vsel %vm233_vm1, %v298_v28, %v299_v35  ;;  %v324_v56 = vstv %s4772_s3  ;;  %s4929_s3 = sld [smem:[#allocation2 + $0xa]] }
  0x49   :  { %v287_v43 = vsel %vm233_vm1, %v284_v32, %v286_v34  ;;  %v290_v44 = vmax.f32 %v225_v60, %v285_v37  ;;  %v302_v46 = vsel %vm233_vm1, %v299_v35, %v301_v36  ;;  %v305_v51 = vmin.f32 %v241_v4, %v300_v45 }
  0x4a   :  { %v291_v50 = vmax.f32 %v226_v61, %v287_v43  ;;  %v4814_v52 = vmin.f32 %v242_v5, %v302_v46  ;;  %v313_v53 = vrot.slane %v307_v38, 2  ;;  %v314_v54 = vrot.slane %v308_v39, 2 }
  0x4b   :  { %v316_v55 = vrot.slane %v309_v40, 2  ;;  %v329_v57 = vstv %s4774_s22  ;;  %v325_v58 = vadd.f32 %v4794_v41, %v324_v56  ;;  %v326_v59 = vadd.f32 %v4799_v42, %v324_v56  ;;  %s4953_s22 = sld [smem:[#allocation4 + $0xa]] }
  0x4c   :  { %v330_v60 = vadd.f32 %v4794_v41, %v329_v57  ;;  %v331_v62 = vadd.f32 %v4799_v42, %v329_v57  ;;  %v315_v63 = vsel %vm233_vm1, %v313_v53, %v314_v54  ;;  %v334_v4 = vadd.f32 %v4807_v47, %v324_v56 }
  0x4d   :  { %v317_v61 = vsel %vm233_vm1, %v314_v54, %v316_v55  ;;  %v335_v5 = vadd.f32 %v4812_v48, %v324_v56  ;;  %v320_v6 = vmax.f32 %v256_v18, %v315_v63  ;;  %v327_v9 = vmin.f32 %v274_v30, %v325_v58 }
  0x4e   :  { %v321_v7 = vmax.f32 %v257_v21, %v317_v61  ;;  %v328_v10 = vmin.f32 %v275_v33, %v326_v59  ;;  %v332_v11 = vmax.f32 %v290_v44, %v330_v60  ;;  %v333_v13 = vmax.f32 %v291_v50, %v331_v62  ;;  %v4875_v60 = vld [vmem:[%s7279_s1 + $0x28] sm:$0x3] }
  0x4f   :  { %v336_v12 = vmin.f32 %v305_v51, %v334_v4  ;;  %v338_v14 = vadd.f32 %v4807_v47, %v329_v57  ;;  %v339_v15 = vadd.f32 %v4812_v48, %v329_v57  ;;  %v344_v16 = vstv %s4787_s23  ;;  %s4961_s23 = sld [smem:[#allocation2 + $0xb]] }
  0x50   :  { %v349_v17 = vstv %s4789_s24  ;;  %v337_v20 = vmin.f32 %v4814_v52, %v335_v5  ;;  %v345_v18 = vadd.f32 %v4807_v47, %v344_v16  ;;  %v346_v21 = vadd.f32 %v4812_v48, %v344_v16  ;;  %s4964_s24 = sld [smem:[#allocation4 + $0xb]] }
  0x51   :  { %v350_v22 = vadd.f32 %v4807_v47, %v349_v17  ;;  %v340_v23 = vmax.f32 %v320_v6, %v338_v14  ;;  %v351_v24 = vadd.f32 %v4812_v48, %v349_v17  ;;  %v354_v25 = vadd.f32 %v4794_v41, %v344_v16 }
  0x52   :  { %v355_v26 = vadd.f32 %v4799_v42, %v344_v16  ;;  %v341_v27 = vmax.f32 %v321_v7, %v339_v15  ;;  %v4846_v28 = vmin.f32 %v327_v9, %v345_v18  ;;  %v4848_v29 = vmin.f32 %v328_v10, %v346_v21 }
  0x53   :  { %v4850_v30 = vmax.f32 %v332_v11, %v350_v22  ;;  %v356_v31 = vadd.f32 %v4837_v19, %v344_v16  ;;  %v360_v32 = vrot.slane %v354_v25, 1  ;;  %v369_v34 = vadd.f32 %v4794_v41, %v349_v17 }
  0x54   :  { %v361_v33 = vrot.slane %v355_v26, 1  ;;  %v370_v35 = vadd.f32 %v4799_v42, %v349_v17  ;;  %v371_v36 = vadd.f32 %v4837_v19, %v349_v17  ;;  %v386_v37 = vstv %s4826_s13  ;;  %s5300_s13 = sld [smem:[#allocation2 + $0x14]] }
  0x55   :  { %v402_v38 = vstv %s4828_s14  ;;  %v363_v40 = vrot.slane %v356_v31, 1  ;;  %v375_v43 = vrot.slane %v369_v34, 1  ;;  %v387_v44 = vadd.f32 %v4794_v41, %v386_v37  ;;  %s5302_s14 = sld [smem:[#allocation4 + $0x14]] }
  0x56   :  { %v362_v39 = vsel %vm104_vm0, %v360_v32, %v361_v33  ;;  %v4860_v45 = vmax.f32 %v333_v13, %v351_v24  ;;  %v376_v46 = vrot.slane %v370_v35, 1  ;;  %v378_v50 = vrot.slane %v371_v36, 1 }
  0x57   :  { %v388_v51 = vadd.f32 %v4799_v42, %v386_v37  ;;  %v364_v52 = vsel %vm104_vm0, %v361_v33, %v363_v40  ;;  %v389_v53 = vadd.f32 %v4837_v19, %v386_v37  ;;  %v393_v54 = vrot.slane %v387_v44, 1 }
  0x58   :  { %v403_v55 = vadd.f32 %v4794_v41, %v402_v38  ;;  %v4866_v56 = vmin.f32 %v336_v12, %v362_v39  ;;  %v377_v57 = vsel %vm104_vm0, %v375_v43, %v376_v46  ;;  %v379_v58 = vsel %vm104_vm0, %v376_v46, %v378_v50 }
  0x59   :  { %v394_v59 = vrot.slane %v388_v51, 1  ;;  %v4877_v62 = vmin.f32 %v337_v20, %v364_v52  ;;  %v4879_v63 = vmax.f32 %v340_v23, %v377_v57  ;;  %v396_v61 = vrot.slane %v389_v53, 1 }
  0x5a   :  { %v404_v4 = vadd.f32 %v4799_v42, %v402_v38  ;;  %v405_v6 = vadd.f32 %v4837_v19, %v402_v38  ;;  %v409_v7 = vrot.slane %v403_v55, 1  ;;  %v418_v9 = vadd.f32 %v4807_v47, %v386_v37 }
  0x5b   :  { %v395_v5 = vsel %vm104_vm0, %v393_v54, %v394_v59  ;;  %v4887_v10 = vmax.f32 %v341_v27, %v379_v58  ;;  %v397_v11 = vsel %vm104_vm0, %v394_v59, %v396_v61  ;;  %v419_v12 = vadd.f32 %v4812_v48, %v386_v37 }
  0x5c   :  { %v410_v13 = vrot.slane %v404_v4, 1  ;;  %v400_v14 = vmin.f32 %v4846_v28, %v395_v5  ;;  %v412_v15 = vrot.slane %v405_v6, 1  ;;  %v420_v16 = vadd.f32 %v4875_v60, %v386_v37 }
  0x5d   :  { %v424_v17 = vrot.slane %v418_v9, 1  ;;  %v425_v18 = vrot.slane %v419_v12, 1  ;;  %v433_v21 = vadd.f32 %v4807_v47, %v402_v38  ;;  %v434_v22 = vadd.f32 %v4812_v48, %v402_v38 }
  0x5e   :  { %v411_v20 = vsel %vm104_vm0, %v409_v7, %v410_v13  ;;  %v401_v23 = vmin.f32 %v4848_v29, %v397_v11  ;;  %v413_v24 = vsel %vm104_vm0, %v410_v13, %v412_v15  ;;  %v427_v25 = vrot.slane %v420_v16, 1 }
  0x5f   :  { %v435_v26 = vadd.f32 %v4875_v60, %v402_v38  ;;  %v416_v27 = vmax.f32 %v4850_v30, %v411_v20  ;;  %v426_v28 = vsel %vm104_vm0, %v424_v17, %v425_v18  ;;  %v439_v31 = vrot.slane %v433_v21, 1 }
  0x60   :  { %v440_v32 = vrot.slane %v434_v22, 1  ;;  %v417_v33 = vmax.f32 %v4860_v45, %v413_v24  ;;  %v428_v34 = vsel %vm104_vm0, %v425_v18, %v427_v25  ;;  %v450_v36 = vstv %s4870_s17  ;;  %s5313_s17 = sld [smem:[#allocation2 + $0x15]] }
  0x61   :  { %v442_v35 = vrot.slane %v435_v26, 1  ;;  %v431_v29 = vmin.f32 %v4866_v56, %v426_v28  ;;  %v451_v39 = vadd.f32 %v4807_v47, %v450_v36  ;;  %v452_v38 = vadd.f32 %v4812_v48, %v450_v36 }
  0x62   :  { %v441_v37 = vsel %vm104_vm0, %v439_v31, %v440_v32  ;;  %v432_v30 = vmin.f32 %v4877_v62, %v428_v34  ;;  %v453_v43 = vadd.f32 %v4875_v60, %v450_v36  ;;  %v466_v44 = vstv %s4885_s20  ;;  %s5357_s20 = sld [smem:[#allocation4 + $0x16]] }
  0x63   :  { %v4910_v40 = vsel %vm104_vm0, %v440_v32, %v442_v35  ;;  %v446_v45 = vmax.f32 %v4879_v63, %v441_v37  ;;  %v457_v46 = vrot.slane %v451_v39, 1  ;;  %v458_v50 = vrot.slane %v452_v38, 1 }
  0x64   :  { %v467_v51 = vadd.f32 %v4807_v47, %v466_v44  ;;  %v460_v52 = vrot.slane %v453_v43, 1  ;;  %v468_v53 = vadd.f32 %v4812_v48, %v466_v44  ;;  %v469_v54 = vadd.f32 %v4875_v60, %v466_v44 }
  0x65   :  { %v482_v55 = vadd.f32 %v4794_v41, %v450_v36  ;;  %v459_v56 = vsel %vm104_vm0, %v457_v46, %v458_v50  ;;  %v483_v58 = vadd.f32 %v4799_v42, %v450_v36  ;;  %v484_v59 = vadd.f32 %v4837_v19, %v450_v36 }
  0x66   :  { %v473_v57 = vrot.slane %v467_v51, 1  ;;  %v447_v62 = vmax.f32 %v4887_v10, %v4910_v40  ;;  %v461_v63 = vsel %vm104_vm0, %v458_v50, %v460_v52  ;;  %v474_v61 = vrot.slane %v468_v53, 1 }
  0x67   :  { %v476_v4 = vrot.slane %v469_v54, 1  ;;  %v464_v5 = vmin.f32 %v400_v14, %v459_v56  ;;  %v488_v6 = vrot.slane %v482_v55, 2  ;;  %v489_v7 = vrot.slane %v483_v58, 2 }
  0x68   :  { %v491_v9 = vrot.slane %v484_v59, 2  ;;  %v475_v11 = vsel %vm104_vm0, %v473_v57, %v474_v61  ;;  %v497_v12 = vadd.f32 %v4794_v41, %v466_v44  ;;  %v498_v10 = vadd.f32 %v4799_v42, %v466_v44 }
  0x69   :  { %v477_v13 = vsel %vm104_vm0, %v474_v61, %v476_v4  ;;  %v465_v15 = vmin.f32 %v401_v23, %v461_v63  ;;  %v480_v16 = vmax.f32 %v416_v27, %v475_v11  ;;  %v490_v17 = vsel %vm233_vm1, %v488_v6, %v489_v7 }
  0x6a   :  { %v492_v20 = vsel %vm233_vm1, %v489_v7, %v491_v9  ;;  %v481_v14 = vmax.f32 %v417_v33, %v477_v13  ;;  %v4937_v18 = vmin.f32 %v431_v29, %v490_v17  ;;  %v499_v21 = vadd.f32 %v4837_v19, %v466_v44 }
  0x6b   :  { %v503_v22 = vrot.slane %v497_v12, 2  ;;  %v4940_v24 = vmin.f32 %v432_v30, %v492_v20  ;;  %v504_v25 = vrot.slane %v498_v10, 2  ;;  %v514_v26 = vstv %s4916_s21  ;;  %s5144_s21 = sld [smem:[#allocation2 + $0x10]] }
  0x6c   :  { %v530_v28 = vstv %s4918_s2  ;;  %v506_v31 = vrot.slane %v499_v21, 2  ;;  %v515_v23 = vadd.f32 %v4794_v41, %v514_v26  ;;  %v516_v27 = vadd.f32 %v4799_v42, %v514_v26  ;;  %s5146_s2 = sld [smem:[#allocation4 + $0x10]] }
  0x6d   :  { %v517_v32 = vadd.f32 %v4837_v19, %v514_v26  ;;  %v505_v33 = vsel %vm233_vm1, %v503_v22, %v504_v25  ;;  %v531_v34 = vadd.f32 %v4794_v41, %v530_v28  ;;  %v532_v35 = vadd.f32 %v4799_v42, %v530_v28 }
  0x6e   :  { %v533_v36 = vadd.f32 %v4837_v19, %v530_v28  ;;  %v507_v29 = vsel %vm233_vm1, %v504_v25, %v506_v31  ;;  %v521_v37 = vrot.slane %v515_v23, 2  ;;  %v522_v39 = vrot.slane %v516_v27, 2 }
  0x6f   :  { %v584_v38 = vstv %s4929_s3  ;;  %v510_v30 = vmax.f32 %v446_v45, %v505_v33  ;;  %v524_v40 = vrot.slane %v517_v32, 2  ;;  %v537_v43 = vrot.slane %v531_v34, 2  ;;  %s5161_s3 = sld [smem:[#allocation2 + $0x11]] }
  0x70   :  { %v538_v44 = vrot.slane %v532_v35, 2  ;;  %v523_v46 = vsel %vm233_vm1, %v521_v37, %v522_v39  ;;  %v540_v50 = vrot.slane %v533_v36, 2  ;;  %v546_v51 = vadd.f32 %v4807_v47, %v514_v26 }
  0x71   :  { %v547_v52 = vadd.f32 %v4812_v48, %v514_v26  ;;  %v525_v53 = vsel %vm233_vm1, %v522_v39, %v524_v40  ;;  %v528_v54 = vmin.f32 %v464_v5, %v523_v46  ;;  %v548_v56 = vadd.f32 %v4875_v60, %v514_v26 }
  0x72   :  { %v539_v55 = vsel %vm233_vm1, %v537_v43, %v538_v44  ;;  %v529_v45 = vmin.f32 %v465_v15, %v525_v53  ;;  %v541_v57 = vsel %vm233_vm1, %v538_v44, %v540_v50  ;;  %v552_v59 = vrot.slane %v546_v51, 2 }
  0x73   :  { %v544_v58 = vmax.f32 %v480_v16, %v539_v55  ;;  %v545_v63 = vmax.f32 %v481_v14, %v541_v57  ;;  %v553_v61 = vrot.slane %v547_v52, 2  ;;  %v555_v4 = vrot.slane %v548_v56, 2 }
  0x74   :  { %v561_v5 = vadd.f32 %v4807_v47, %v530_v28  ;;  %v511_v6 = vmax.f32 %v447_v62, %v507_v29  ;;  %v562_v7 = vadd.f32 %v4812_v48, %v530_v28  ;;  %v563_v9 = vadd.f32 %v4875_v60, %v530_v28 }
  0x75   :  { %v576_v11 = vadd.f32 %v544_v58, %v528_v54  ;;  %v554_v13 = vsel %vm233_vm1, %v552_v59, %v553_v61  ;;  %v556_v12 = vsel %vm233_vm1, %v553_v61, %v555_v4  ;;  %v4976_v15 = vadd.f32 %v584_v38, %v4629_v2 }
  0x76   :  { %v567_v10 = vrot.slane %v561_v5, 2  ;;  %v559_v16 = vmin.f32 %v4937_v18, %v554_v13  ;;  %v568_v17 = vrot.slane %v562_v7, 2  ;;  %v570_v62 = vrot.slane %v563_v9, 2 }
  0x77   :  { %v577_v20 = vadd.f32 %v545_v63, %v529_v45  ;;  %v560_v14 = vmin.f32 %v4940_v24, %v556_v12  ;;  %v4981_v21 = vadd.f32 %v584_v38, %v4634_v3  ;;  %v587_v22 = vstv %s4953_s22  ;;  %s5163_s22 = sld [smem:[#allocation4 + $0x11]] }
  0x78   :  { %v4985_v25 = vadd.f32 %v584_v38, %v4619_v0  ;;  %v569_v26 = vsel %vm233_vm1, %v567_v10, %v568_v17  ;;  %v571_v28 = vsel %vm233_vm1, %v568_v17, %v570_v62  ;;  %v4990_v18 = vadd.f32 %v587_v22, %v4629_v2 }
  0x79   :  { %v4993_v31 = vadd.f32 %v584_v38, %v4624_v1  ;;  %v574_v23 = vmax.f32 %v510_v30, %v569_v26  ;;  %v575_v24 = vmax.f32 %v511_v6, %v571_v28  ;;  %v4996_v27 = vadd.f32 %v587_v22, %v4634_v3 }
  0x7a   :  { %v4999_v32 = vadd.f32 %v587_v22, %v4619_v0  ;;  %v5002_v33 = vadd.f32 %v587_v22, %v4624_v1  ;;  %v596_v34 = vstv %s4961_s23  ;;  %v601_v35 = vstv %s4964_s24  ;;  %s5198_s23 = sld [smem:[#allocation2 + $0x12]] }
  0x7b   :  { %v638_v36 = vstv %s4966_s25  ;;  %v578_v29 = vadd.f32 %v574_v23, %v559_v16  ;;  %v579_v37 = vadd.f32 %v575_v24, %v560_v14  ;;  %v597_v39 = vadd.f32 %v596_v34, %v4619_v0  ;;  %s5200_s24 = sld [smem:[#allocation4 + $0x12]]  ;;  %s5207_s25 = sld [smem:[#allocation2 + $0x13]] }
  0x7c   :  { %v598_v38 = vadd.f32 %v596_v34, %v4624_v1  ;;  %v602_v30 = vadd.f32 %v601_v35, %v4619_v0  ;;  %v606_v40 = vadd.f32 %v596_v34, %v4629_v2  ;;  %v607_v43 = vadd.f32 %v596_v34, %v4634_v3 }
  0x7d   :  { %v654_v44 = vstv %s4971_s26  ;;  %v580_v46 = vadd.f32 %v578_v29, %v576_v11  ;;  %v581_v50 = vadd.f32 %v579_v37, %v577_v20  ;;  %v599_v51 = vmin.f32 %v4976_v15, %v597_v39  ;;  %s5248_s26 = sld [smem:[#allocation4 + $0x13]] }
  0x7e   :  { %v603_v52 = vadd.f32 %v601_v35, %v4624_v1  ;;  %v600_v53 = vmin.f32 %v4981_v21, %v598_v38  ;;  %v604_v54 = vmax.f32 %v4990_v18, %v602_v30  ;;  %v608_v55 = vadd.f32 %v596_v34, %v4647_v8 }
  0x7f   :  { %v612_v56 = vrot.slane %v606_v40, 1  ;;  %v4379_v45 = vpack.c.bf16 %v581_v50, %v580_v46  ;;  %v613_v57 = vrot.slane %v607_v43, 1  ;;  %v621_v58 = vadd.f32 %v601_v35, %v4629_v2 }
  0x80   :  { %v622_v59 = vadd.f32 %v601_v35, %v4634_v3  ;;  %v615_v63 = vrot.slane %v608_v55, 1  ;;  %v623_v61 = vadd.f32 %v601_v35, %v4647_v8  ;;  %v639_v4 = vadd.f32 %v638_v36, %v4629_v2 }
  0x81   :  { %v640_v5 = vadd.f32 %v638_v36, %v4634_v3  ;;  %4380 = vmatprep.subr.bf16.mxu0 %v4379_v45  ;;  %v614_v6 = vsel %vm104_vm0, %v612_v56, %v613_v57  ;;  %v627_v7 = vrot.slane %v621_v58, 1  ;;  %v641_v11 = vadd.f32 %v638_v36, %v4647_v8 }
  0x82   :  { %v628_v9 = vrot.slane %v622_v59, 1  ;;  %4382 = vmatpush3.bf16.msra.mxu0 %v4379_v45  ;;  %v605_v13 = vmax.f32 %v4996_v27, %v603_v52  ;;  %v616_v12 = vsel %vm104_vm0, %v613_v57, %v615_v63  ;;  %v630_v10 = vrot.slane %v623_v61, 1 }
  0x83   :  { %v645_v15 = vrot.slane %v639_v4, 1  ;;  %v619_v16 = vmin.f32 %v4985_v25, %v614_v6  ;;  %v646_v62 = vrot.slane %v640_v5, 1  ;;  %v648_v20 = vrot.slane %v641_v11, 1 }
  0x84   :  { %v629_v17 = vsel %vm104_vm0, %v627_v7, %v628_v9  ;;  %v620_v14 = vmin.f32 %v4993_v31, %v616_v12  ;;  %v631_v21 = vsel %vm104_vm0, %v628_v9, %v630_v10  ;;  %v655_v22 = vadd.f32 %v654_v44, %v4629_v2 }
  0x85   :  { %v656_v26 = vadd.f32 %v654_v44, %v4634_v3  ;;  %v634_v28 = vmax.f32 %v4999_v32, %v629_v17  ;;  %v635_v25 = vmax.f32 %v5002_v33, %v631_v21  ;;  %v647_v18 = vsel %vm104_vm0, %v645_v15, %v646_v62 }
  0x86   :  { %v657_v23 = vadd.f32 %v654_v44, %v4647_v8  ;;  %v649_v24 = vsel %vm104_vm0, %v646_v62, %v648_v20  ;;  %v5042_v27 = vmin.f32 %v599_v51, %v647_v18  ;;  %v661_v34 = vrot.slane %v655_v22, 1 }
  0x87   :  { %v662_v31 = vrot.slane %v656_v26, 1  ;;  %v670_v29 = vadd.f32 %v638_v36, %v4619_v0  ;;  %v671_v37 = vadd.f32 %v638_v36, %v4624_v1  ;;  %v672_v32 = vadd.f32 %v638_v36, %v4696_v49 }
  0x88   :  { %v664_v35 = vrot.slane %v657_v23, 1  ;;  %v685_v39 = vadd.f32 %v654_v44, %v4619_v0  ;;  %v686_v38 = vadd.f32 %v654_v44, %v4624_v1  ;;  %v687_v30 = vadd.f32 %v654_v44, %v4696_v49 }
  0x89   :  { %v663_v33 = vsel %vm104_vm0, %v661_v34, %v662_v31  ;;  %v5051_v40 = vmin.f32 %v600_v53, %v649_v24  ;;  %v676_v46 = vrot.slane %v670_v29, 1  ;;  %v677_v50 = vrot.slane %v671_v37, 1 }
  0x8a   :  { %v665_v43 = vsel %vm104_vm0, %v662_v31, %v664_v35  ;;  %v5054_v51 = vmax.f32 %v604_v54, %v663_v33  ;;  %v679_v52 = vrot.slane %v672_v32, 1  ;;  %v691_v55 = vrot.slane %v685_v39, 1 }
  0x8b   :  { %v692_v36 = vrot.slane %v686_v38, 1  ;;  %v678_v56 = vsel %vm104_vm0, %v676_v46, %v677_v50  ;;  %v694_v45 = vrot.slane %v687_v30, 1  ;;  %v702_v57 = vstv %s5029_s27  ;;  %s5476_s27 = sld [smem:[#allocation2 + $0x19]] }
  0x8c   :  { %v718_v58 = vstv %s5031_s28  ;;  %v5059_v59 = vmax.f32 %v605_v13, %v665_v43  ;;  %v680_v44 = vsel %vm104_vm0, %v677_v50, %v679_v52  ;;  %v703_v63 = vadd.f32 %v702_v57, %v4619_v0  ;;  %s5478_s28 = sld [smem:[#allocation4 + $0x19]] }
  0x8d   :  { %v693_v53 = vsel %vm104_vm0, %v691_v55, %v692_v36  ;;  %v5064_v61 = vmin.f32 %v619_v16, %v678_v56  ;;  %v5066_v54 = vmin.f32 %v620_v14, %v680_v44  ;;  %v695_v4 = vsel %vm104_vm0, %v692_v36, %v694_v45  ;;  %v5110_v36 = vld [vmem:[%s7278_s0] sm:$0xff]  ;;  %v5116_v45 = vld [vmem:[%s7278_s0 + $0x8] sm:$0xff] }
  0x8e   :  { %v704_v5 = vadd.f32 %v702_v57, %v4624_v1  ;;  %v5070_v6 = vmax.f32 %v634_v28, %v693_v53  ;;  %v705_v7 = vadd.f32 %v702_v57, %v4696_v49  ;;  %v709_v9 = vrot.slane %v703_v63, 1 }
  0x8f   :  { %v719_v11 = vadd.f32 %v718_v58, %v4619_v0  ;;  %v720_v12 = vadd.f32 %v718_v58, %v4624_v1  ;;  %v721_v10 = vadd.f32 %v718_v58, %v4696_v49  ;;  %v734_v15 = vadd.f32 %v702_v57, %v4629_v2 }
  0x90   :  { %v710_v13 = vrot.slane %v704_v5, 1  ;;  %v712_v16 = vrot.slane %v705_v7, 1  ;;  %v735_v62 = vadd.f32 %v702_v57, %v4634_v3  ;;  %v736_v20 = vadd.f32 %v702_v57, %v4647_v8 }
  0x91   :  { %v725_v17 = vrot.slane %v719_v11, 1  ;;  %v726_v0 = vrot.slane %v720_v12, 1  ;;  %v728_v21 = vrot.slane %v721_v10, 1  ;;  %v740_v22 = vrot.slane %v734_v15, 2 }
  0x92   :  { %v711_v14 = vsel %vm104_vm0, %v709_v9, %v710_v13  ;;  %v5084_v26 = vmax.f32 %v635_v25, %v695_v4  ;;  %v713_v28 = vsel %vm104_vm0, %v710_v13, %v712_v16  ;;  %v741_v1 = vrot.slane %v735_v62, 2 }
  0x93   :  { %v743_v18 = vrot.slane %v736_v20, 2  ;;  %v716_v23 = vmin.f32 %v5042_v27, %v711_v14  ;;  %v727_v24 = vsel %vm104_vm0, %v725_v17, %v726_v0  ;;  %v729_v34 = vsel %vm104_vm0, %v726_v0, %v728_v21 }
  0x94   :  { %v749_v31 = vadd.f32 %v718_v58, %v4629_v2  ;;  %v717_v35 = vmin.f32 %v5051_v40, %v713_v28  ;;  %v732_v25 = vmax.f32 %v5054_v51, %v727_v24  ;;  %v742_v29 = vsel %vm233_vm1, %v740_v22, %v741_v1 }
  0x95   :  { %v744_v37 = vsel %vm233_vm1, %v741_v1, %v743_v18  ;;  %v733_v32 = vmax.f32 %v5059_v59, %v729_v34  ;;  %v747_v33 = vmin.f32 %v5064_v61, %v742_v29  ;;  %v750_v27 = vadd.f32 %v718_v58, %v4634_v3 }
  0x96   :  { %v751_v39 = vadd.f32 %v718_v58, %v4647_v8  ;;  %v748_v38 = vmin.f32 %v5066_v54, %v744_v37  ;;  %v755_v30 = vrot.slane %v749_v31, 2  ;;  %v766_v43 = vstv %s5074_s29  ;;  %s5486_s29 = sld [smem:[#allocation2 + $0x1a]] }
  0x97   :  { %v782_v46 = vstv %s5076_s30  ;;  %v756_v40 = vrot.slane %v750_v27, 2  ;;  %v767_v51 = vadd.f32 %v766_v43, %v4629_v2  ;;  %v768_v52 = vadd.f32 %v766_v43, %v4634_v3  ;;  %s5499_s30 = sld [smem:[#allocation4 + $0x1a]] }
  0x98   :  { %v758_v50 = vrot.slane %v751_v39, 2  ;;  %v769_v55 = vadd.f32 %v766_v43, %v4647_v8  ;;  %v783_v56 = vadd.f32 %v5110_v36, %v782_v46  ;;  %v784_v57 = vadd.f32 %v5116_v45, %v782_v46 }
  0x99   :  { %v785_v2 = vadd.f32 %v782_v46, %v4647_v8  ;;  %v757_v3 = vsel %vm233_vm1, %v755_v30, %v756_v40  ;;  %v773_v59 = vrot.slane %v767_v51, 2  ;;  %v774_v44 = vrot.slane %v768_v52, 2  ;;  %v5130_v8 = vld [vmem:[%s7279_s1] sm:$0xff] }
  0x9a   :  { %v759_v58 = vsel %vm233_vm1, %v756_v40, %v758_v50  ;;  %v762_v53 = vmax.f32 %v5070_v6, %v757_v3  ;;  %v776_v63 = vrot.slane %v769_v55, 2  ;;  %v789_v61 = vrot.slane %v783_v56, 2  ;;  %v5138_v6 = vld [vmem:[%s7279_s1 + $0x8] sm:$0xff] }
  0x9b   :  { %v830_v54 = vstv %s5087_s11  ;;  %v775_v4 = vsel %vm233_vm1, %v773_v59, %v774_v44  ;;  %v790_v5 = vrot.slane %v784_v57, 2  ;;  %v792_v7 = vrot.slane %v785_v2, 2  ;;  %s5514_s11 = sld [smem:[#allocation2 + $0x1b]] }
  0x9c   :  { %v798_v9 = vadd.f32 %v5130_v8, %v766_v43  ;;  %v763_v11 = vmax.f32 %v5084_v26, %v759_v58  ;;  %v777_v13 = vsel %vm233_vm1, %v774_v44, %v776_v63  ;;  %v799_v12 = vadd.f32 %v5138_v6, %v766_v43 }
  0x9d   :  { %v800_v10 = vadd.f32 %v766_v43, %v4696_v49  ;;  %v780_v15 = vmin.f32 %v716_v23, %v775_v4  ;;  %v781_v16 = vmin.f32 %v717_v35, %v777_v13  ;;  %v791_v17 = vsel %vm233_vm1, %v789_v61, %v790_v5 }
  0x9e   :  { %v804_v62 = vrot.slane %v798_v9, 2  ;;  %v793_v20 = vsel %vm233_vm1, %v790_v5, %v792_v7  ;;  %v796_v14 = vmax.f32 %v732_v25, %v791_v17  ;;  %v805_v0 = vrot.slane %v799_v12, 2 }
  0x9f   :  { %v807_v21 = vrot.slane %v800_v10, 2  ;;  %v813_v22 = vadd.f32 %v5130_v8, %v782_v46  ;;  %v814_v26 = vadd.f32 %v5138_v6, %v782_v46  ;;  %v815_v28 = vadd.f32 %v782_v46, %v4696_v49 }
  0xa0   :  { %v831_v1 = vadd.f32 %v4794_v41, %v830_v54  ;;  %v806_v18 = vsel %vm233_vm1, %v804_v62, %v805_v0  ;;  %v832_v24 = vadd.f32 %v4799_v42, %v830_v54  ;;  %v835_v34 = vstv %s5120_s16  ;;  %s5560_s16 = sld [smem:[#allocation4 + $0x1c]] }
  0xa1   :  { %v808_v23 = vsel %vm233_vm1, %v805_v0, %v807_v21  ;;  %v797_v31 = vmax.f32 %v733_v32, %v793_v20  ;;  %v811_v35 = vmin.f32 %v747_v33, %v806_v18  ;;  %v819_v25 = vrot.slane %v813_v22, 2 }
  0xa2   :  { %v820_v29 = vrot.slane %v814_v26, 2  ;;  %v812_v37 = vmin.f32 %v748_v38, %v808_v23  ;;  %v822_v27 = vrot.slane %v815_v28, 2  ;;  %v833_v39 = vmin.f32 %v780_v15, %v831_v1 }
  0xa3   :  { %v836_v30 = vadd.f32 %v4794_v41, %v835_v34  ;;  %v837_v43 = vadd.f32 %v4799_v42, %v835_v34  ;;  %v840_v46 = vadd.f32 %v4807_v47, %v830_v54  ;;  %v841_v40 = vadd.f32 %v4812_v48, %v830_v54 }
  0xa4   :  { %v821_v49 = vsel %vm233_vm1, %v819_v25, %v820_v29  ;;  %v823_v32 = vsel %vm233_vm1, %v820_v29, %v822_v27  ;;  %v834_v38 = vmin.f32 %v781_v16, %v832_v24  ;;  %v844_v50 = vadd.f32 %v4807_v47, %v835_v34 }
  0xa5   :  { %v826_v33 = vmax.f32 %v762_v53, %v821_v49  ;;  %v827_v51 = vmax.f32 %v763_v11, %v823_v32  ;;  %v838_v52 = vmax.f32 %v796_v14, %v836_v30  ;;  %v839_v55 = vmax.f32 %v797_v31, %v837_v43 }
  0xa6   :  { %v842_v56 = vmin.f32 %v811_v35, %v840_v46  ;;  %v843_v57 = vmin.f32 %v812_v37, %v841_v40  ;;  %v845_v2 = vadd.f32 %v4812_v48, %v835_v34  ;;  %v850_v3 = vstv %s5144_s21  ;;  %s5871_s21 = sld [smem:[#allocation2 + $0x24]] }
  0xa7   :  { %v855_v58 = vstv %s5146_s2  ;;  %v846_v59 = vmax.f32 %v826_v33, %v844_v50  ;;  %v851_v44 = vadd.f32 %v4807_v47, %v850_v3  ;;  %v852_v63 = vadd.f32 %v4812_v48, %v850_v3  ;;  %s5873_s2 = sld [smem:[#allocation4 + $0x24]] }
  0xa8   :  { %v856_v53 = vadd.f32 %v4807_v47, %v855_v58  ;;  %v857_v61 = vadd.f32 %v4812_v48, %v855_v58  ;;  %v860_v54 = vadd.f32 %v4794_v41, %v850_v3  ;;  %v861_v4 = vadd.f32 %v4799_v42, %v850_v3 }
  0xa9   :  { %v862_v5 = vadd.f32 %v4837_v19, %v850_v3  ;;  %v847_v7 = vmax.f32 %v827_v51, %v845_v2  ;;  %v5177_v9 = vmin.f32 %v833_v39, %v851_v44  ;;  %v5179_v11 = vmin.f32 %v834_v38, %v852_v63 }
  0xaa   :  { %v5181_v13 = vmax.f32 %v838_v52, %v856_v53  ;;  %v866_v12 = vrot.slane %v860_v54, 1  ;;  %v867_v10 = vrot.slane %v861_v4, 1  ;;  %v875_v16 = vadd.f32 %v4794_v41, %v855_v58 }
  0xab   :  { %v869_v15 = vrot.slane %v862_v5, 1  ;;  %v876_v17 = vadd.f32 %v4799_v42, %v855_v58  ;;  %v877_v62 = vadd.f32 %v4837_v19, %v855_v58  ;;  %v892_v20 = vstv %s5161_s3  ;;  %s5395_s3 = sld [smem:[#allocation2 + $0x17]] }
  0xac   :  { %v908_v14 = vstv %s5163_s22  ;;  %v868_v0 = vsel %vm104_vm0, %v866_v12, %v867_v10  ;;  %v881_v22 = vrot.slane %v875_v16, 1  ;;  %v893_v26 = vadd.f32 %v4794_v41, %v892_v20  ;;  %s5404_s22 = sld [smem:[#allocation4 + $0x17]] }
  0xad   :  { %v870_v21 = vsel %vm104_vm0, %v867_v10, %v869_v15  ;;  %v5191_v28 = vmax.f32 %v839_v55, %v857_v61  ;;  %v5193_v1 = vmin.f32 %v842_v56, %v868_v0  ;;  %v882_v18 = vrot.slane %v876_v17, 1 }
  0xae   :  { %v884_v23 = vrot.slane %v877_v62, 1  ;;  %v894_v24 = vadd.f32 %v4799_v42, %v892_v20  ;;  %v895_v34 = vadd.f32 %v4837_v19, %v892_v20  ;;  %v899_v31 = vrot.slane %v893_v26, 1 }
  0xaf   :  { %v909_v35 = vadd.f32 %v4794_v41, %v908_v14  ;;  %v5202_v25 = vmin.f32 %v843_v57, %v870_v21  ;;  %v883_v29 = vsel %vm104_vm0, %v881_v22, %v882_v18  ;;  %v910_v37 = vadd.f32 %v4799_v42, %v908_v14 }
  0xb0   :  { %v911_v27 = vadd.f32 %v4837_v19, %v908_v14  ;;  %v885_v39 = vsel %vm104_vm0, %v882_v18, %v884_v23  ;;  %v5210_v30 = vmax.f32 %v846_v59, %v883_v29  ;;  %v900_v49 = vrot.slane %v894_v24, 1 }
  0xb1   :  { %v902_v43 = vrot.slane %v895_v34, 1  ;;  %v915_v46 = vrot.slane %v909_v35, 1  ;;  %v916_v40 = vrot.slane %v910_v37, 1  ;;  %v924_v33 = vadd.f32 %v4807_v47, %v892_v20 }
  0xb2   :  { %v918_v32 = vrot.slane %v911_v27, 1  ;;  %v901_v38 = vsel %vm104_vm0, %v899_v31, %v900_v49  ;;  %v925_v51 = vadd.f32 %v4812_v48, %v892_v20  ;;  %v926_v52 = vadd.f32 %v4875_v60, %v892_v20 }
  0xb3   :  { %v903_v50 = vsel %vm104_vm0, %v900_v49, %v902_v43  ;;  %v5217_v55 = vmax.f32 %v847_v7, %v885_v39  ;;  %v906_v56 = vmin.f32 %v5177_v9, %v901_v38  ;;  %v917_v57 = vsel %vm104_vm0, %v915_v46, %v916_v40 }
  0xb4   :  { %v919_v2 = vsel %vm104_vm0, %v916_v40, %v918_v32  ;;  %v907_v3 = vmin.f32 %v5179_v11, %v903_v50  ;;  %v922_v58 = vmax.f32 %v5181_v13, %v917_v57  ;;  %v930_v59 = vrot.slane %v924_v33, 1  ;;  %v5273_v50 = vld [vmem:[%s7278_s0 + $0x20] sm:$0xff] }
  0xb5   :  { %v931_v44 = vrot.slane %v925_v51, 1  ;;  %v933_v63 = vrot.slane %v926_v52, 1  ;;  %v939_v53 = vadd.f32 %v4807_v47, %v908_v14  ;;  %v940_v61 = vadd.f32 %v4812_v48, %v908_v14 }
  0xb6   :  { %v941_v54 = vadd.f32 %v4875_v60, %v908_v14  ;;  %v923_v4 = vmax.f32 %v5191_v28, %v919_v2  ;;  %v956_v7 = vstv %s5198_s23  ;;  %v972_v9 = vstv %s5200_s24  ;;  %s5659_s23 = sld [smem:[#allocation2 + $0x1f]] }
  0xb7   :  { %v932_v5 = vsel %vm104_vm0, %v930_v59, %v931_v44  ;;  %v934_v12 = vsel %vm104_vm0, %v931_v44, %v933_v63  ;;  %v945_v11 = vrot.slane %v939_v53, 1  ;;  %v946_v10 = vrot.slane %v940_v61, 1  ;;  %s5665_s24 = sld [smem:[#allocation4 + $0x1f]] }
  0xb8   :  { %v5233_v13 = vstv %s5207_s25  ;;  %v937_v15 = vmin.f32 %v5193_v1, %v932_v5  ;;  %v948_v16 = vrot.slane %v941_v54, 1  ;;  %v957_v17 = vadd.f32 %v4807_v47, %v956_v7  ;;  %s5444_s25 = sld [smem:[#allocation2 + $0x18]] }
  0xb9   :  { %v958_v62 = vadd.f32 %v4812_v48, %v956_v7  ;;  %v947_v20 = vsel %vm104_vm0, %v945_v11, %v946_v10  ;;  %v959_v14 = vadd.f32 %v4875_v60, %v956_v7  ;;  %v973_v0 = vadd.f32 %v4807_v47, %v972_v9 }
  0xba   :  { %v974_v21 = vadd.f32 %v4812_v48, %v972_v9  ;;  %v938_v22 = vmin.f32 %v5202_v25, %v934_v12  ;;  %v5244_v26 = vsel %vm104_vm0, %v946_v10, %v948_v16  ;;  %v963_v28 = vrot.slane %v957_v17, 1  ;;  %v5294_v12 = vld [vmem:[%s7279_s1 + $0x18] sm:$0xff] }
  0xbb   :  { %v964_v1 = vrot.slane %v958_v62, 1  ;;  %v952_v18 = vmax.f32 %v5210_v30, %v947_v20  ;;  %v966_v23 = vrot.slane %v959_v14, 1  ;;  %v975_v24 = vadd.f32 %v4875_v60, %v972_v9 }
  0xbc   :  { %v979_v34 = vrot.slane %v973_v0, 1  ;;  %v980_v47 = vrot.slane %v974_v21, 1  ;;  %v988_v48 = vadd.f32 %v4794_v41, %v956_v7  ;;  %v989_v35 = vadd.f32 %v4799_v42, %v956_v7  ;;  %v5266_v42 = vld [vmem:[%s7278_s0 + $0x18] sm:$0xff]  ;;  %v5309_v0 = vld [vmem:[%s7279_s1 + $0x20] sm:$0xff] }
  0xbd   :  { %v965_v31 = vsel %vm104_vm0, %v963_v28, %v964_v1  ;;  %v953_v25 = vmax.f32 %v5217_v55, %v5244_v26  ;;  %v967_v29 = vsel %vm104_vm0, %v964_v1, %v966_v23  ;;  %v982_v37 = vrot.slane %v975_v24, 1 }
  0xbe   :  { %v990_v27 = vadd.f32 %v4837_v19, %v956_v7  ;;  %v5257_v39 = vmin.f32 %v906_v56, %v965_v31  ;;  %v981_v30 = vsel %vm104_vm0, %v979_v34, %v980_v47  ;;  %v994_v49 = vrot.slane %v988_v48, 2 }
  0xbf   :  { %v995_v43 = vrot.slane %v989_v35, 2  ;;  %v5260_v46 = vmin.f32 %v907_v3, %v967_v29  ;;  %v983_v41 = vsel %vm104_vm0, %v980_v47, %v982_v37  ;;  %v1003_v32 = vadd.f32 %v5266_v42, %v972_v9 }
  0xc0   :  { %v997_v40 = vrot.slane %v990_v27, 2  ;;  %v986_v33 = vmax.f32 %v922_v58, %v981_v30  ;;  %v1004_v51 = vadd.f32 %v5273_v50, %v972_v9  ;;  %v1005_v52 = vadd.f32 %v4837_v19, %v972_v9 }
  0xc1   :  { %v996_v38 = vsel %vm233_vm1, %v994_v49, %v995_v43  ;;  %v987_v56 = vmax.f32 %v923_v4, %v983_v41  ;;  %v1009_v2 = vrot.slane %v1003_v32, 2  ;;  %v1021_v3 = vadd.f32 %v5266_v42, %v5233_v13 }
  0xc2   :  { %v998_v57 = vsel %vm233_vm1, %v995_v43, %v997_v40  ;;  %v5280_v58 = vmin.f32 %v937_v15, %v996_v38  ;;  %v1010_v59 = vrot.slane %v1004_v51, 2  ;;  %v1012_v44 = vrot.slane %v1005_v52, 2 }
  0xc3   :  { %v1022_v63 = vadd.f32 %v5273_v50, %v5233_v13  ;;  %v5284_v53 = vmin.f32 %v938_v22, %v998_v57  ;;  %v1023_v61 = vadd.f32 %v4837_v19, %v5233_v13  ;;  %v1027_v54 = vrot.slane %v1021_v3, 2 }
  0xc4   :  { %v1036_v4 = vstv %s5248_s26  ;;  %v1011_v5 = vsel %vm233_vm1, %v1009_v2, %v1010_v59  ;;  %v1052_v11 = vadd.f32 %v5294_v12, %v5233_v13  ;;  %v1013_v10 = vsel %vm233_vm1, %v1010_v59, %v1012_v44  ;;  %s5446_s26 = sld [smem:[#allocation4 + $0x18]] }
  0xc5   :  { %v1028_v7 = vrot.slane %v1022_v63, 2  ;;  %v1037_v9 = vadd.f32 %v5266_v42, %v1036_v4  ;;  %v1016_v15 = vmax.f32 %v952_v18, %v1011_v5  ;;  %v1030_v16 = vrot.slane %v1023_v61, 2 }
  0xc6   :  { %v1038_v17 = vadd.f32 %v5273_v50, %v1036_v4  ;;  %v1039_v20 = vadd.f32 %v4837_v19, %v1036_v4  ;;  %v1053_v21 = vadd.f32 %v5309_v0, %v5233_v13  ;;  %v1054_v18 = vadd.f32 %v4875_v60, %v5233_v13 }
  0xc7   :  { %v1029_v62 = vsel %vm233_vm1, %v1027_v54, %v1028_v7  ;;  %v1043_v14 = vrot.slane %v1037_v9, 2  ;;  %v1031_v22 = vsel %vm233_vm1, %v1028_v7, %v1030_v16  ;;  %v1058_v24 = vrot.slane %v1052_v11, 2  ;;  %v5368_v9 = vld [vmem:[%s7278_s0 + $0x10] sm:$0x3] }
  0xc8   :  { %v1034_v28 = vmin.f32 %v5257_v39, %v1029_v62  ;;  %v1044_v1 = vrot.slane %v1038_v17, 2  ;;  %v1035_v19 = vmin.f32 %v5260_v46, %v1031_v22  ;;  %v1046_v23 = vrot.slane %v1039_v20, 2 }
  0xc9   :  { %v1059_v34 = vrot.slane %v1053_v21, 2  ;;  %v1061_v47 = vrot.slane %v1054_v18, 2  ;;  %v1067_v48 = vadd.f32 %v5294_v12, %v1036_v4  ;;  %v1068_v35 = vadd.f32 %v5309_v0, %v1036_v4 }
  0xca   :  { %v1045_v31 = vsel %vm233_vm1, %v1043_v14, %v1044_v1  ;;  %v1047_v29 = vsel %vm233_vm1, %v1044_v1, %v1046_v23  ;;  %v1069_v13 = vadd.f32 %v4875_v60, %v1036_v4  ;;  %v1017_v39 = vmax.f32 %v953_v25, %v1013_v10 }
  0xcb   :  { %v1050_v37 = vmax.f32 %v986_v33, %v1045_v31  ;;  %v1060_v27 = vsel %vm233_vm1, %v1058_v24, %v1059_v34  ;;  %v1051_v30 = vmax.f32 %v987_v56, %v1047_v29  ;;  %v1062_v49 = vsel %vm233_vm1, %v1059_v34, %v1061_v47 }
  0xcc   :  { %v1073_v43 = vrot.slane %v1067_v48, 2  ;;  %v1065_v46 = vmin.f32 %v5280_v58, %v1060_v27  ;;  %v1074_v41 = vrot.slane %v1068_v35, 2  ;;  %v1076_v40 = vrot.slane %v1069_v13, 2 }
  0xcd   :  { %v1066_v32 = vmin.f32 %v5284_v53, %v1062_v49  ;;  %v1082_v33 = vadd.f32 %v1050_v37, %v1034_v28  ;;  %v1090_v38 = vstv %s5300_s13  ;;  %v1093_v51 = vstv %s5302_s14  ;;  %s5736_s14 = sld [smem:[#allocation4 + $0x20]]  ;;  %s6364_s13 = sld [smem:[#allocation2 + $0x31]] }
  0xce   :  { %v1075_v60 = vsel %vm233_vm1, %v1073_v43, %v1074_v41  ;;  %v1077_v52 = vsel %vm233_vm1, %v1074_v41, %v1076_v40  ;;  %v1083_v57 = vadd.f32 %v1051_v30, %v1035_v19  ;;  %v1102_v55 = vstv %s5313_s17  ;;  %s5812_s17 = sld [smem:[#allocation2 + $0x22]] }
  0xcf   :  { %v1080_v26 = vmax.f32 %v1016_v15, %v1075_v60  ;;  %v1081_v25 = vmax.f32 %v1017_v39, %v1077_v52  ;;  %v5338_v56 = vadd.f32 %v5110_v36, %v1090_v38  ;;  %v5341_v2 = vadd.f32 %v5116_v45, %v1090_v38 }
  0xd0   :  { %v5344_v3 = vadd.f32 %v5110_v36, %v1093_v51  ;;  %v5347_v58 = vadd.f32 %v5116_v45, %v1093_v51  ;;  %v5350_v59 = vadd.f32 %v5130_v8, %v1090_v38  ;;  %v5353_v44 = vadd.f32 %v5138_v6, %v1090_v38 }
  0xd1   :  { %v1084_v63 = vadd.f32 %v1080_v26, %v1065_v46  ;;  %v1085_v53 = vadd.f32 %v1081_v25, %v1066_v32  ;;  %v1103_v61 = vadd.f32 %v5130_v8, %v1102_v55  ;;  %v5361_v54 = vadd.f32 %v5138_v6, %v1102_v55 }
  0xd2   :  { %v1107_v4 = vstv %s4034_s18  ;;  %v1112_v5 = vadd.f32 %v5110_v36, %v1102_v55  ;;  %v1113_v7 = vadd.f32 %v5116_v45, %v1102_v55  ;;  %v1114_v11 = vadd.f32 %v5368_v9, %v1102_v55  ;;  %s5814_s18 = sld [smem:[#allocation4 + $0x22]] }
  0xd3   :  { %v1086_v10 = vadd.f32 %v1084_v63, %v1082_v33  ;;  %v1087_v15 = vadd.f32 %v1085_v53, %v1083_v57  ;;  %v5372_v16 = vadd.f32 %v5130_v8, %v1093_v51  ;;  %v5375_v17 = vadd.f32 %v5138_v6, %v1093_v51 }
  0xd4   :  { %v1108_v62 = vadd.f32 %v5130_v8, %v1107_v4  ;;  %v1109_v20 = vadd.f32 %v5138_v6, %v1107_v4  ;;  %v1118_v14 = vrot.slane %v1112_v5, 1  ;;  %v1119_v21 = vrot.slane %v1113_v7, 1 }
  0xd5   :  { %v4383_v22 = vpack.c.bf16 %v1087_v15, %v1086_v10  ;;  %v1121_v28 = vrot.slane %v1114_v11, 1  ;;  %v1127_v1 = vadd.f32 %v5110_v36, %v1107_v4  ;;  %v1128_v18 = vadd.f32 %v5116_v45, %v1107_v4 }
  0xd6   :  { %v1105_v19 = vmin.f32 %v5338_v56, %v1103_v61  ;;  %v1106_v23 = vmin.f32 %v5341_v2, %v5361_v54  ;;  %v1120_v24 = vsel %vm104_vm0, %v1118_v14, %v1119_v21  ;;  %v1129_v34 = vadd.f32 %v5368_v9, %v1107_v4 }
  0xd7   :  { %4384 = vmatprep.subr.bf16.mxu0 %v4383_v22  ;;  %v1110_v31 = vmax.f32 %v5344_v3, %v1108_v62  ;;  %v1122_v47 = vsel %vm104_vm0, %v1119_v21, %v1121_v28  ;;  %v1133_v48 = vrot.slane %v1127_v1, 1  ;;  %v1134_v35 = vrot.slane %v1128_v18, 1  ;;  %v5412_v3 = vld [vmem:[%s7279_s1 + $0x10] sm:$0x3] }
  0xd8   :  { %4386 = vmatpush3.bf16.msra.mxu0 %v4383_v22  ;;  %v1111_v29 = vmax.f32 %v5347_v58, %v1109_v20  ;;  %v1136_v37 = vrot.slane %v1129_v34, 1  ;;  %v1144_v27 = vstv %s5355_s19  ;;  %v1160_v13 = vstv %s5357_s20  ;;  %s5596_s19 = sld [smem:[#allocation2 + $0x1d]] }
  0xd9   :  { %v1125_v39 = vmin.f32 %v5350_v59, %v1120_v24  ;;  %v1145_v30 = vadd.f32 %v5110_v36, %v1144_v27  ;;  %v1146_v49 = vadd.f32 %v5116_v45, %v1144_v27  ;;  %v1147_v43 = vadd.f32 %v5368_v9, %v1144_v27  ;;  %s5598_s20 = sld [smem:[#allocation4 + $0x1d]] }
  0xda   :  { %v1126_v46 = vmin.f32 %v5353_v44, %v1122_v47  ;;  %v1135_v41 = vsel %vm104_vm0, %v1133_v48, %v1134_v35  ;;  %v1161_v40 = vadd.f32 %v5110_v36, %v1160_v13  ;;  %v1162_v32 = vadd.f32 %v5116_v45, %v1160_v13 }
  0xdb   :  { %v1137_v33 = vsel %vm104_vm0, %v1134_v35, %v1136_v37  ;;  %v1151_v38 = vrot.slane %v1145_v30, 1  ;;  %v1152_v51 = vrot.slane %v1146_v49, 1  ;;  %v1154_v60 = vrot.slane %v1147_v43, 1 }
  0xdc   :  { %v1163_v52 = vadd.f32 %v5368_v9, %v1160_v13  ;;  %v1167_v57 = vrot.slane %v1161_v40, 1  ;;  %v1168_v55 = vrot.slane %v1162_v32, 1  ;;  %v1176_v26 = vadd.f32 %v5130_v8, %v1144_v27 }
  0xdd   :  { %v1140_v25 = vmax.f32 %v5372_v16, %v1135_v41  ;;  %v1153_v56 = vsel %vm104_vm0, %v1151_v38, %v1152_v51  ;;  %v1177_v2 = vadd.f32 %v5138_v6, %v1144_v27  ;;  %v1178_v58 = vadd.f32 %v5412_v3, %v1144_v27 }
  0xde   :  { %v1141_v59 = vmax.f32 %v5375_v17, %v1137_v33  ;;  %v1155_v44 = vsel %vm104_vm0, %v1152_v51, %v1154_v60  ;;  %v1169_v63 = vsel %vm104_vm0, %v1167_v57, %v1168_v55  ;;  %v1170_v53 = vrot.slane %v1163_v52, 1 }
  0xdf   :  { %v5418_v61 = vmin.f32 %v1105_v19, %v1153_v56  ;;  %v1182_v54 = vrot.slane %v1176_v26, 1  ;;  %v1183_v4 = vrot.slane %v1177_v2, 1  ;;  %v1185_v5 = vrot.slane %v1178_v58, 1 }
  0xe0   :  { %v1171_v7 = vsel %vm104_vm0, %v1168_v55, %v1170_v53  ;;  %v1191_v11 = vadd.f32 %v5130_v8, %v1160_v13  ;;  %v1192_v10 = vadd.f32 %v5138_v6, %v1160_v13  ;;  %v1193_v15 = vadd.f32 %v5412_v3, %v1160_v13 }
  0xe1   :  { %v5424_v16 = vmin.f32 %v1106_v23, %v1155_v44  ;;  %v5426_v17 = vmax.f32 %v1110_v31, %v1169_v63  ;;  %v1184_v62 = vsel %vm104_vm0, %v1182_v54, %v1183_v4  ;;  %v1208_v20 = vstv %s5395_s3  ;;  %s5641_s3 = sld [smem:[#allocation2 + $0x1e]] }
  0xe2   :  { %v5430_v14 = vmax.f32 %v1111_v29, %v1171_v7  ;;  %v1186_v21 = vsel %vm104_vm0, %v1183_v4, %v1185_v5  ;;  %v1197_v22 = vrot.slane %v1191_v11, 1  ;;  %v1198_v28 = vrot.slane %v1192_v10, 1 }
  0xe3   :  { %v1200_v1 = vrot.slane %v1193_v15, 1  ;;  %v1209_v18 = vadd.f32 %v5130_v8, %v1208_v20  ;;  %v1210_v19 = vadd.f32 %v5138_v6, %v1208_v20  ;;  %v1211_v24 = vadd.f32 %v5412_v3, %v1208_v20 }
  0xe4   :  { %v5436_v23 = vmin.f32 %v1125_v39, %v1184_v62  ;;  %v1199_v34 = vsel %vm104_vm0, %v1197_v22, %v1198_v28  ;;  %v1224_v31 = vstv %s5404_s22  ;;  %v1240_v47 = vadd.f32 %v5110_v36, %v1208_v20  ;;  %s5651_s22 = sld [smem:[#allocation4 + $0x1e]] }
  0xe5   :  { %v5441_v48 = vmin.f32 %v1126_v46, %v1186_v21  ;;  %v1215_v35 = vrot.slane %v1209_v18, 1  ;;  %v1216_v29 = vrot.slane %v1210_v19, 1  ;;  %v1241_v37 = vadd.f32 %v5116_v45, %v1208_v20 }
  0xe6   :  { %v1201_v27 = vsel %vm104_vm0, %v1198_v28, %v1200_v1  ;;  %v1218_v13 = vrot.slane %v1211_v24, 1  ;;  %v1225_v39 = vadd.f32 %v5130_v8, %v1224_v31  ;;  %v1226_v30 = vadd.f32 %v5138_v6, %v1224_v31 }
  0xe7   :  { %v5451_v49 = vmax.f32 %v1140_v25, %v1199_v34  ;;  %v1217_v43 = vsel %vm104_vm0, %v1215_v35, %v1216_v29  ;;  %v1227_v46 = vadd.f32 %v5412_v3, %v1224_v31  ;;  %v1242_v41 = vadd.f32 %v5368_v9, %v1208_v20 }
  0xe8   :  { %v1219_v40 = vsel %vm104_vm0, %v1216_v29, %v1218_v13  ;;  %v1231_v32 = vrot.slane %v1225_v39, 1  ;;  %v1232_v33 = vrot.slane %v1226_v30, 1  ;;  %v1246_v38 = vrot.slane %v1240_v47, 2 }
  0xe9   :  { %v5457_v51 = vmax.f32 %v1141_v59, %v1201_v27  ;;  %v1234_v60 = vrot.slane %v1227_v46, 1  ;;  %v1247_v52 = vrot.slane %v1241_v37, 2  ;;  %v1249_v57 = vrot.slane %v1242_v41, 2 }
  0xea   :  { %v1233_v55 = vsel %vm104_vm0, %v1231_v32, %v1232_v33  ;;  %v1255_v26 = vadd.f32 %v5110_v36, %v1224_v31  ;;  %v1256_v25 = vadd.f32 %v5116_v45, %v1224_v31  ;;  %v1257_v56 = vadd.f32 %v5368_v9, %v1224_v31 }
  0xeb   :  { %v1222_v2 = vmin.f32 %v5418_v61, %v1217_v43  ;;  %v1223_v58 = vmin.f32 %v5424_v16, %v1219_v40  ;;  %v1235_v59 = vsel %vm104_vm0, %v1232_v33, %v1234_v60  ;;  %v1238_v44 = vmax.f32 %v5426_v17, %v1233_v55 }
  0xec   :  { %v1239_v63 = vmax.f32 %v5430_v14, %v1235_v59  ;;  %v1248_v53 = vsel %vm233_vm1, %v1246_v38, %v1247_v52  ;;  %v1250_v54 = vsel %vm233_vm1, %v1247_v52, %v1249_v57  ;;  %v1261_v4 = vrot.slane %v1255_v26, 2 }
  0xed   :  { %v1262_v5 = vrot.slane %v1256_v25, 2  ;;  %v1264_v7 = vrot.slane %v1257_v56, 2  ;;  %v1272_v11 = vstv %s5444_s25  ;;  %v1288_v10 = vstv %s5446_s26  ;;  %s5889_s25 = sld [smem:[#allocation2 + $0x25]] }
  0xee   :  { %v1273_v15 = vadd.f32 %v5110_v36, %v1272_v11  ;;  %v1274_v61 = vadd.f32 %v5116_v45, %v1272_v11  ;;  %v1275_v16 = vadd.f32 %v5368_v9, %v1272_v11  ;;  %v1289_v62 = vadd.f32 %v5110_v36, %v1288_v10  ;;  %s5891_s26 = sld [smem:[#allocation4 + $0x25]] }
  0xef   :  { %v1253_v17 = vmin.f32 %v5436_v23, %v1248_v53  ;;  %v1254_v20 = vmin.f32 %v5441_v48, %v1250_v54  ;;  %v1290_v14 = vadd.f32 %v5116_v45, %v1288_v10  ;;  %v1291_v21 = vadd.f32 %v5368_v9, %v1288_v10 }
  0xf0   :  { %v1263_v22 = vsel %vm233_vm1, %v1261_v4, %v1262_v5  ;;  %v1265_v28 = vsel %vm233_vm1, %v1262_v5, %v1264_v7  ;;  %v1279_v1 = vrot.slane %v1273_v15, 2  ;;  %v1280_v18 = vrot.slane %v1274_v61, 2 }
  0xf1   :  { %v1282_v36 = vrot.slane %v1275_v16, 2  ;;  %v1295_v19 = vrot.slane %v1289_v62, 2  ;;  %v1296_v24 = vrot.slane %v1290_v14, 2  ;;  %v1298_v34 = vrot.slane %v1291_v21, 2 }
  0xf2   :  { %v1281_v23 = vsel %vm233_vm1, %v1279_v1, %v1280_v18  ;;  %v1304_v31 = vadd.f32 %v5130_v8, %v1272_v11  ;;  %v1305_v45 = vadd.f32 %v5138_v6, %v1272_v11  ;;  %v1306_v47 = vadd.f32 %v5412_v3, %v1272_v11 }
  0xf3   :  { %v1268_v48 = vmax.f32 %v5451_v49, %v1263_v22  ;;  %v1269_v35 = vmax.f32 %v5457_v51, %v1265_v28  ;;  %v1283_v29 = vsel %vm233_vm1, %v1280_v18, %v1282_v36  ;;  %v1297_v37 = vsel %vm233_vm1, %v1295_v19, %v1296_v24 }
  0xf4   :  { %v1286_v27 = vmin.f32 %v1222_v2, %v1281_v23  ;;  %v1287_v13 = vmin.f32 %v1223_v58, %v1283_v29  ;;  %v1299_v39 = vsel %vm233_vm1, %v1296_v24, %v1298_v34  ;;  %v1310_v30 = vrot.slane %v1304_v31, 2  ;;  %v5534_v34 = vld [vmem:[%s7278_s0 + $0x28] sm:$0x3] }
  0xf5   :  { %v1311_v43 = vrot.slane %v1305_v45, 2  ;;  %v1313_v46 = vrot.slane %v1306_v47, 2  ;;  %v1319_v41 = vadd.f32 %v5130_v8, %v1288_v10  ;;  %v1320_v40 = vadd.f32 %v5138_v6, %v1288_v10 }
  0xf6   :  { %v1302_v49 = vmax.f32 %v1238_v44, %v1297_v37  ;;  %v1321_v32 = vadd.f32 %v5412_v3, %v1288_v10  ;;  %v1336_v33 = vstv %s5476_s27  ;;  %v1341_v38 = vstv %s5478_s28  ;;  %s6140_s27 = sld [smem:[#allocation2 + $0x2c]] }
  0xf7   :  { %v1312_v51 = vsel %vm233_vm1, %v1310_v30, %v1311_v43  ;;  %v1314_v60 = vsel %vm233_vm1, %v1311_v43, %v1313_v46  ;;  %v1325_v52 = vrot.slane %v1319_v41, 2  ;;  %v1326_v57 = vrot.slane %v1320_v40, 2 }
  0xf8   :  { %v1303_v55 = vmax.f32 %v1239_v63, %v1299_v39  ;;  %v1328_v26 = vrot.slane %v1321_v32, 2  ;;  %v1337_v25 = vadd.f32 %v5266_v42, %v1336_v33  ;;  %v1356_v8 = vstv %s5486_s29  ;;  %s5696_s29 = sld [smem:[#allocation2 + $0x20]] }
  0xf9   :  { %v1317_v56 = vmin.f32 %v1253_v17, %v1312_v51  ;;  %v1327_v6 = vsel %vm233_vm1, %v1325_v52, %v1326_v57  ;;  %v1338_v2 = vadd.f32 %v5273_v50, %v1336_v33  ;;  %v1342_v58 = vadd.f32 %v5266_v42, %v1341_v38 }
  0xfa   :  { %v1318_v59 = vmin.f32 %v1254_v20, %v1314_v60  ;;  %v1329_v44 = vsel %vm233_vm1, %v1326_v57, %v1328_v26  ;;  %v1343_v53 = vadd.f32 %v5273_v50, %v1341_v38  ;;  %v1346_v54 = vadd.f32 %v5294_v12, %v1336_v33 }
  0xfb   :  { %v1332_v63 = vmax.f32 %v1268_v48, %v1327_v6  ;;  %v1333_v4 = vmax.f32 %v1269_v35, %v1329_v44  ;;  %v1339_v5 = vmin.f32 %v1286_v27, %v1337_v25  ;;  %v1340_v7 = vmin.f32 %v1287_v13, %v1338_v2 }
  0xfc   :  { %v1344_v11 = vmax.f32 %v1302_v49, %v1342_v58  ;;  %v1347_v10 = vadd.f32 %v5309_v0, %v1336_v33  ;;  %v1350_v15 = vadd.f32 %v5294_v12, %v1341_v38  ;;  %v1351_v61 = vadd.f32 %v5309_v0, %v1341_v38 }
  0xfd   :  { %v1357_v16 = vadd.f32 %v5294_v12, %v1356_v8  ;;  %v1358_v62 = vadd.f32 %v5309_v0, %v1356_v8  ;;  %v1361_v17 = vstv %s5499_s30  ;;  %v1366_v20 = vadd.f32 %v5266_v42, %v1356_v8  ;;  %s6189_s30 = sld [smem:[#allocation4 + $0x2c]] }
  0xfe   :  { %v1345_v14 = vmax.f32 %v1303_v55, %v1343_v53  ;;  %v1348_v21 = vmin.f32 %v1317_v56, %v1346_v54  ;;  %v1349_v22 = vmin.f32 %v1318_v59, %v1347_v10  ;;  %v1362_v28 = vadd.f32 %v5294_v12, %v1361_v17  ;;  %v5574_v53 = vld [vmem:[%s7279_s1 + $0x28] sm:$0x3] }
  0xff   :  { %v1352_v1 = vmax.f32 %v1332_v63, %v1350_v15  ;;  %v1353_v18 = vmax.f32 %v1333_v4, %v1351_v61  ;;  %v5526_v36 = vmin.f32 %v1339_v5, %v1357_v16  ;;  %v1367_v19 = vadd.f32 %v5273_v50, %v1356_v8 }
 0x100   :  { %v5529_v24 = vmin.f32 %v1340_v7, %v1358_v62  ;;  %v1368_v23 = vadd.f32 %v5534_v34, %v1356_v8  ;;  %v1372_v31 = vrot.slane %v1366_v20, 1  ;;  %v1381_v45 = vadd.f32 %v5266_v42, %v1361_v17 }
 0x101   :  { %v1363_v47 = vadd.f32 %v5309_v0, %v1361_v17  ;;  %v1373_v48 = vrot.slane %v1367_v19, 1  ;;  %v1382_v35 = vadd.f32 %v5273_v50, %v1361_v17  ;;  %v1383_v29 = vadd.f32 %v5534_v34, %v1361_v17 }
 0x102   :  { %v5541_v37 = vmax.f32 %v1344_v11, %v1362_v28  ;;  %v1375_v27 = vrot.slane %v1368_v23, 1  ;;  %v1387_v13 = vrot.slane %v1381_v45, 1  ;;  %v1398_v39 = vstv %s5514_s11  ;;  %s6223_s11 = sld [smem:[#allocation2 + $0x2d]] }
 0x103   :  { %v1374_v30 = vsel %vm104_vm0, %v1372_v31, %v1373_v48  ;;  %v1388_v43 = vrot.slane %v1382_v35, 1  ;;  %v1390_v46 = vrot.slane %v1383_v29, 1  ;;  %v1399_v41 = vadd.f32 %v5266_v42, %v1398_v39 }
 0x104   :  { %v1376_v40 = vsel %vm104_vm0, %v1373_v48, %v1375_v27  ;;  %v1400_v49 = vadd.f32 %v5273_v50, %v1398_v39  ;;  %v1401_v32 = vadd.f32 %v5534_v34, %v1398_v39  ;;  %v1414_v33 = vstv %s5519_s12 }
 0x105   :  { %v5550_v38 = vmax.f32 %v1345_v14, %v1363_v47  ;;  %v1389_v51 = vsel %vm104_vm0, %v1387_v13, %v1388_v43  ;;  %v1391_v60 = vsel %vm104_vm0, %v1388_v43, %v1390_v46  ;;  %v1405_v52 = vrot.slane %v1399_v41, 1 }
 0x106   :  { %v5554_v57 = vmin.f32 %v1348_v21, %v1374_v30  ;;  %v5556_v55 = vmin.f32 %v1349_v22, %v1376_v40  ;;  %v1406_v26 = vrot.slane %v1400_v49, 1  ;;  %v1408_v25 = vrot.slane %v1401_v32, 1 }
 0x107   :  { %v1415_v8 = vadd.f32 %v5266_v42, %v1414_v33  ;;  %v1416_v56 = vadd.f32 %v5273_v50, %v1414_v33  ;;  %v1417_v6 = vadd.f32 %v5534_v34, %v1414_v33  ;;  %v1430_v2 = vadd.f32 %v5294_v12, %v1398_v39 }
 0x108   :  { %v5566_v58 = vmax.f32 %v1352_v1, %v1389_v51  ;;  %v5568_v59 = vmax.f32 %v1353_v18, %v1391_v60  ;;  %v1431_v44 = vadd.f32 %v5309_v0, %v1398_v39  ;;  %v1432_v54 = vadd.f32 %v5574_v53, %v1398_v39 }
 0x109   :  { %v1407_v63 = vsel %vm104_vm0, %v1405_v52, %v1406_v26  ;;  %v1409_v4 = vsel %vm104_vm0, %v1406_v26, %v1408_v25  ;;  %v1421_v5 = vrot.slane %v1415_v8, 1  ;;  %v1422_v7 = vrot.slane %v1416_v56, 1 }
 0x10a   :  { %v1424_v11 = vrot.slane %v1417_v6, 1  ;;  %v1436_v10 = vrot.slane %v1430_v2, 1  ;;  %v1437_v15 = vrot.slane %v1431_v44, 1  ;;  %v1439_v61 = vrot.slane %v1432_v54, 1 }
 0x10b   :  { %v1423_v16 = vsel %vm104_vm0, %v1421_v5, %v1422_v7  ;;  %v1445_v62 = vadd.f32 %v5294_v12, %v1414_v33  ;;  %v1446_v17 = vadd.f32 %v5309_v0, %v1414_v33  ;;  %v1447_v20 = vadd.f32 %v5574_v53, %v1414_v33  ;;  %v3128_v5 = vld [vmem:[%s7283_s5] sm:$0xff] }
 0x10c   :  { %v1412_v14 = vmin.f32 %v5526_v36, %v1407_v63  ;;  %v1413_v21 = vmin.f32 %v5529_v24, %v1409_v4  ;;  %v1425_v22 = vsel %vm104_vm0, %v1422_v7, %v1424_v11  ;;  %v1428_v28 = vmax.f32 %v5541_v37, %v1423_v16 }
 0x10d   :  { %v1429_v1 = vmax.f32 %v5550_v38, %v1425_v22  ;;  %v1438_v18 = vsel %vm104_vm0, %v1436_v10, %v1437_v15  ;;  %v1440_v19 = vsel %vm104_vm0, %v1437_v15, %v1439_v61  ;;  %v1451_v23 = vrot.slane %v1445_v62, 1 }
 0x10e   :  { %v1452_v31 = vrot.slane %v1446_v17, 1  ;;  %v1454_v45 = vrot.slane %v1447_v20, 1  ;;  %v1462_v47 = vstv %s5558_s15  ;;  %v1478_v48 = vstv %s5560_s16  ;;  %s5769_s15 = sld [smem:[#allocation2 + $0x21]] }
 0x10f   :  { %v1463_v35 = vadd.f32 %v5294_v12, %v1462_v47  ;;  %v1464_v36 = vadd.f32 %v5309_v0, %v1462_v47  ;;  %v1465_v24 = vadd.f32 %v5574_v53, %v1462_v47  ;;  %v1479_v29 = vadd.f32 %v5294_v12, %v1478_v48  ;;  %s5778_s16 = sld [smem:[#allocation4 + $0x21]] }
 0x110   :  { %v1443_v37 = vmin.f32 %v5554_v57, %v1438_v18  ;;  %v1444_v27 = vmin.f32 %v5556_v55, %v1440_v19  ;;  %v1480_v13 = vadd.f32 %v5309_v0, %v1478_v48  ;;  %v1481_v39 = vadd.f32 %v5574_v53, %v1478_v48 }
 0x111   :  { %v5605_v30 = vsel %vm104_vm0, %v1451_v23, %v1452_v31  ;;  %v5608_v43 = vsel %vm104_vm0, %v1452_v31, %v1454_v45  ;;  %v1469_v46 = vrot.slane %v1463_v35, 1  ;;  %v1470_v41 = vrot.slane %v1464_v36, 1 }
 0x112   :  { %v1472_v40 = vrot.slane %v1465_v24, 1  ;;  %v1485_v49 = vrot.slane %v1479_v29, 1  ;;  %v1486_v32 = vrot.slane %v1480_v13, 1  ;;  %v1488_v33 = vrot.slane %v1481_v39, 1 }
 0x113   :  { %v1471_v38 = vsel %vm104_vm0, %v1469_v46, %v1470_v41  ;;  %v1494_v51 = vadd.f32 %v5266_v42, %v1462_v47  ;;  %v1495_v60 = vadd.f32 %v5273_v50, %v1462_v47  ;;  %v1496_v52 = vadd.f32 %v5534_v34, %v1462_v47 }
 0x114   :  { %v1458_v57 = vmax.f32 %v5566_v58, %v5605_v30  ;;  %v1459_v55 = vmax.f32 %v5568_v59, %v5608_v43  ;;  %v1473_v26 = vsel %vm104_vm0, %v1470_v41, %v1472_v40  ;;  %v5619_v25 = vmin.f32 %v1412_v14, %v1471_v38  ;;  %v5690_v43 = vld [vmem:[%s7278_s0 + $0x8] sm:$0xff] }
 0x115   :  { %v5621_v8 = vmin.f32 %v1413_v21, %v1473_v26  ;;  %v1487_v56 = vsel %vm104_vm0, %v1485_v49, %v1486_v32  ;;  %v1489_v6 = vsel %vm104_vm0, %v1486_v32, %v1488_v33  ;;  %v1500_v2 = vrot.slane %v1494_v51, 2 }
 0x116   :  { %v1501_v44 = vrot.slane %v1495_v60, 2  ;;  %v1503_v54 = vrot.slane %v1496_v52, 2  ;;  %v1509_v63 = vadd.f32 %v5266_v42, %v1478_v48  ;;  %v1510_v4 = vadd.f32 %v5273_v50, %v1478_v48 }
 0x117   :  { %v1511_v7 = vadd.f32 %v5534_v34, %v1478_v48  ;;  %v1526_v11 = vstv %s5596_s19  ;;  %v1542_v10 = vstv %s5598_s20  ;;  %v4554_v17 = vmov 0   ;;  %s5827_s19 = sld [smem:[#allocation2 + $0x23]] }
 0x118   :  { %v1502_v15 = vsel %vm233_vm1, %v1500_v2, %v1501_v44  ;;  %v1504_v61 = vsel %vm233_vm1, %v1501_v44, %v1503_v54  ;;  %v1515_v16 = vrot.slane %v1509_v63, 2  ;;  %v1516_v62 = vrot.slane %v1510_v4, 2  ;;  %4486 = vset.pattern.permute.xlu0 %v4554_v17  ;;  %4487 = vset.pattern.permute.xlu1 %v4554_v17  ;;  %s5856_s20 = sld [smem:[#allocation4 + $0x23]] }
 0x119   :  { %v1492_v20 = vmax.f32 %v1428_v28, %v1487_v56  ;;  %v1493_v14 = vmax.f32 %v1429_v1, %v1489_v6  ;;  %v1518_v21 = vrot.slane %v1511_v7, 2  ;;  %v1527_v22 = vadd.f32 %v5266_v42, %v1526_v11  ;;  %3146 = vperm.xlu0 %4486, %v3128_v5  }
 0x11a   :  { %v5636_v18 = vmin.f32 %v1443_v37, %v1502_v15  ;;  %v1528_v19 = vadd.f32 %v5273_v50, %v1526_v11  ;;  %v1529_v23 = vadd.f32 %v5534_v34, %v1526_v11  ;;  %v1543_v31 = vadd.f32 %v5266_v42, %v1542_v10 }
 0x11b   :  { %v5643_v45 = vmin.f32 %v1444_v27, %v1504_v61  ;;  %v1517_v47 = vsel %vm233_vm1, %v1515_v16, %v1516_v62  ;;  %v1533_v28 = vrot.slane %v1527_v22, 2  ;;  %v1544_v1 = vadd.f32 %v5273_v50, %v1542_v10  ;;  %v5702_v61 = vld [vmem:[%s7279_s1] sm:$0xff] }
 0x11c   :  { %v1519_v48 = vsel %vm233_vm1, %v1516_v62, %v1518_v21  ;;  %v1534_v35 = vrot.slane %v1528_v19, 2  ;;  %v1536_v36 = vrot.slane %v1529_v23, 2  ;;  %v1545_v24 = vadd.f32 %v5534_v34, %v1542_v10  ;;  %v5710_v62 = vld [vmem:[%s7279_s1 + $0x8] sm:$0xff] }
 0x11d   :  { %v1549_v29 = vrot.slane %v1543_v31, 2  ;;  %v1550_v37 = vrot.slane %v1544_v1, 2  ;;  %v1558_v13 = vadd.f32 %v5294_v12, %v1526_v11  ;;  %v1559_v42 = vadd.f32 %v5309_v0, %v1526_v11 }
 0x11e   :  { %v1535_v27 = vsel %vm233_vm1, %v1533_v28, %v1534_v35  ;;  %v1537_v39 = vsel %vm233_vm1, %v1534_v35, %v1536_v36  ;;  %v1552_v46 = vrot.slane %v1545_v24, 2  ;;  %v1560_v50 = vadd.f32 %v5574_v53, %v1526_v11 }
 0x11f   :  { %v1540_v41 = vmin.f32 %v5619_v25, %v1535_v27  ;;  %v1541_v40 = vmin.f32 %v5621_v8, %v1537_v39  ;;  %v1551_v49 = vsel %vm233_vm1, %v1549_v29, %v1550_v37  ;;  %v1564_v32 = vrot.slane %v1558_v13, 2 }
 0x120   :  { %v1553_v33 = vsel %vm233_vm1, %v1550_v37, %v1552_v46  ;;  %v1556_v38 = vmax.f32 %v1492_v20, %v1551_v49  ;;  %v1565_v51 = vrot.slane %v1559_v42, 2  ;;  %v1567_v60 = vrot.slane %v1560_v50, 2 }
 0x121   :  { %v1557_v52 = vmax.f32 %v1493_v14, %v1553_v33  ;;  %v1573_v26 = vadd.f32 %v5294_v12, %v1542_v10  ;;  %v1574_v56 = vadd.f32 %v5309_v0, %v1542_v10  ;;  %v1575_v25 = vadd.f32 %v5574_v53, %v1542_v10 }
 0x122   :  { %v1522_v8 = vmax.f32 %v1458_v57, %v1517_v47  ;;  %v1566_v6 = vsel %vm233_vm1, %v1564_v32, %v1565_v51  ;;  %v1568_v2 = vsel %vm233_vm1, %v1565_v51, %v1567_v60  ;;  %v1596_v44 = vstv %s5641_s3  ;;  %v5682_v57 = vld [vmem:[%s7278_s0] sm:$0xff]  ;;  %s6068_s3 = sld [smem:[#allocation2 + $0x2a]] }
 0x123   :  { %v1523_v12 = vmax.f32 %v1459_v55, %v1519_v48  ;;  %v1579_v54 = vrot.slane %v1573_v26, 2  ;;  %v1580_v0 = vrot.slane %v1574_v56, 2  ;;  %v1588_v63 = vadd.f32 %v1556_v38, %v1540_v41 }
 0x124   :  { %v1571_v4 = vmin.f32 %v5636_v18, %v1566_v6  ;;  %v1572_v5 = vmin.f32 %v5643_v45, %v1568_v2  ;;  %v1582_v7 = vrot.slane %v1575_v25, 2  ;;  %v1589_v58 = vadd.f32 %v1557_v52, %v1541_v40 }
 0x125   :  { %v1581_v30 = vsel %vm233_vm1, %v1579_v54, %v1580_v0  ;;  %v5685_v59 = vadd.f32 %v5682_v57, %v1596_v44  ;;  %v5693_v55 = vadd.f32 %v5690_v43, %v1596_v44  ;;  %v1599_v11 = vstv %s5651_s22  ;;  %s6070_s22 = sld [smem:[#allocation4 + $0x2a]] }
 0x126   :  { %v1583_v10 = vsel %vm233_vm1, %v1580_v0, %v1582_v7  ;;  %v1586_v15 = vmax.f32 %v1522_v8, %v1581_v30  ;;  %v5705_v16 = vadd.f32 %v5702_v61, %v1596_v44  ;;  %v5713_v17 = vadd.f32 %v5710_v62, %v1596_v44 }
 0x127   :  { %v1587_v20 = vmax.f32 %v1523_v12, %v1583_v10  ;;  %v5716_v14 = vadd.f32 %v5682_v57, %v1599_v11  ;;  %v5719_v21 = vadd.f32 %v5690_v43, %v1599_v11  ;;  %v1608_v22 = vstv %s5659_s23 }
 0x128   :  { %v1590_v18 = vadd.f32 %v1586_v15, %v1571_v4  ;;  %v5723_v19 = vadd.f32 %v5702_v61, %v1599_v11  ;;  %v5726_v23 = vadd.f32 %v5702_v61, %v1608_v22  ;;  %v5729_v31 = vadd.f32 %v5710_v62, %v1608_v22 }
 0x129   :  { %v1591_v45 = vadd.f32 %v1587_v20, %v1572_v5  ;;  %v5732_v47 = vadd.f32 %v5710_v62, %v1599_v11  ;;  %v1613_v28 = vstv %s5665_s24  ;;  %v1618_v1 = vadd.f32 %v5682_v57, %v1608_v22  ;;  %s6436_s24 = sld [smem:[#allocation4 + $0x31]] }
 0x12a   :  { %v1592_v48 = vadd.f32 %v1590_v18, %v1588_v63  ;;  %v5739_v35 = vadd.f32 %v5702_v61, %v1613_v28  ;;  %v5742_v36 = vadd.f32 %v5710_v62, %v1613_v28  ;;  %v1619_v24 = vadd.f32 %v5690_v43, %v1608_v22 }
 0x12b   :  { %v1593_v29 = vadd.f32 %v1591_v45, %v1589_v58  ;;  %v1611_v37 = vmin.f32 %v5685_v59, %v5726_v23  ;;  %v1612_v13 = vmin.f32 %v5693_v55, %v5729_v31  ;;  %v1620_v42 = vadd.f32 %v5368_v9, %v1608_v22 }
 0x12c   :  { %v1624_v27 = vrot.slane %v1618_v1, 1  ;;  %v1625_v39 = vrot.slane %v1619_v24, 1  ;;  %v1633_v46 = vadd.f32 %v5682_v57, %v1613_v28  ;;  %v1634_v50 = vadd.f32 %v5690_v43, %v1613_v28 }
 0x12d   :  { %v4387_v41 = vpack.c.bf16 %v1593_v29, %v1592_v48  ;;  %v1627_v40 = vrot.slane %v1620_v42, 1  ;;  %v1635_v49 = vadd.f32 %v5368_v9, %v1613_v28  ;;  %v1650_v32 = vstv %s5696_s29  ;;  %s6348_s29 = sld [smem:[#allocation2 + $0x30]] }
 0x12e   :  { %v1626_v33 = vsel %vm104_vm0, %v1624_v27, %v1625_v39  ;;  %v1639_v38 = vrot.slane %v1633_v46, 1  ;;  %v1640_v51 = vrot.slane %v1634_v50, 1  ;;  %v1651_v60 = vadd.f32 %v5682_v57, %v1650_v32 }
 0x12f   :  { %4388 = vmatprep.subr.bf16.mxu0 %v4387_v41  ;;  %v1616_v52 = vmax.f32 %v5716_v14, %v5739_v35  ;;  %v1628_v26 = vsel %vm104_vm0, %v1625_v39, %v1627_v40  ;;  %v1642_v56 = vrot.slane %v1635_v49, 1  ;;  %v1652_v25 = vadd.f32 %v5690_v43, %v1650_v32 }
 0x130   :  { %4390 = vmatpush3.bf16.msra.mxu0 %v4387_v41  ;;  %v1617_v8 = vmax.f32 %v5719_v21, %v5742_v36  ;;  %v1641_v6 = vsel %vm104_vm0, %v1639_v38, %v1640_v51  ;;  %v1653_v2 = vadd.f32 %v5368_v9, %v1650_v32  ;;  %v1657_v44 = vrot.slane %v1651_v60, 1 }
 0x131   :  { %v1631_v12 = vmin.f32 %v5705_v16, %v1626_v33  ;;  %v5766_v54 = vsel %vm104_vm0, %v1640_v51, %v1642_v56  ;;  %v1658_v0 = vrot.slane %v1652_v25, 1  ;;  %v1666_v63 = vstv %s5736_s14  ;;  %s7000_s14 = sld [smem:[#allocation2 + $0x3b]] }
 0x132   :  { %v1632_v4 = vmin.f32 %v5713_v17, %v1628_v26  ;;  %v1660_v5 = vrot.slane %v1653_v2, 1  ;;  %v1667_v7 = vadd.f32 %v5682_v57, %v1666_v63  ;;  %v1668_v58 = vadd.f32 %v5690_v43, %v1666_v63 }
 0x133   :  { %v1646_v30 = vmax.f32 %v5723_v19, %v1641_v6  ;;  %v1669_v59 = vadd.f32 %v5368_v9, %v1666_v63  ;;  %v1682_v55 = vadd.f32 %v5702_v61, %v1650_v32  ;;  %v1683_v11 = vadd.f32 %v5710_v62, %v1650_v32 }
 0x134   :  { %v1647_v10 = vmax.f32 %v5732_v47, %v5766_v54  ;;  %v1659_v15 = vsel %vm104_vm0, %v1657_v44, %v1658_v0  ;;  %v1673_v16 = vrot.slane %v1667_v7, 1  ;;  %v1674_v17 = vrot.slane %v1668_v58, 1 }
 0x135   :  { %v1661_v20 = vsel %vm104_vm0, %v1658_v0, %v1660_v5  ;;  %v1676_v14 = vrot.slane %v1669_v59, 1  ;;  %v1684_v21 = vadd.f32 %v5412_v3, %v1650_v32  ;;  %v1688_v22 = vrot.slane %v1682_v55, 1 }
 0x136   :  { %v1675_v18 = vsel %vm104_vm0, %v1673_v16, %v1674_v17  ;;  %v1689_v19 = vrot.slane %v1683_v11, 1  ;;  %v1697_v23 = vadd.f32 %v5702_v61, %v1666_v63  ;;  %v1698_v31 = vadd.f32 %v5710_v62, %v1666_v63 }
 0x137   :  { %v5788_v45 = vmin.f32 %v1611_v37, %v1659_v15  ;;  %v1677_v47 = vsel %vm104_vm0, %v1674_v17, %v1676_v14  ;;  %v1691_v28 = vrot.slane %v1684_v21, 1  ;;  %v1699_v1 = vadd.f32 %v5412_v3, %v1666_v63 }
 0x138   :  { %v5792_v48 = vmin.f32 %v1612_v13, %v1661_v20  ;;  %v1690_v35 = vsel %vm104_vm0, %v1688_v22, %v1689_v19  ;;  %v1703_v36 = vrot.slane %v1697_v23, 1  ;;  %v1704_v24 = vrot.slane %v1698_v31, 1 }
 0x139   :  { %v5795_v29 = vmax.f32 %v1616_v52, %v1675_v18  ;;  %v1692_v42 = vsel %vm104_vm0, %v1689_v19, %v1691_v28  ;;  %v1706_v27 = vrot.slane %v1699_v1, 1  ;;  %v1714_v39 = vstv %s5769_s15  ;;  %s5957_s15 = sld [smem:[#allocation2 + $0x26]] }
 0x13a   :  { %v5799_v37 = vmax.f32 %v1617_v8, %v1677_v47  ;;  %v5801_v46 = vmin.f32 %v1631_v12, %v1690_v35  ;;  %v1715_v50 = vadd.f32 %v5702_v61, %v1714_v39  ;;  %v1716_v41 = vadd.f32 %v5710_v62, %v1714_v39 }
 0x13b   :  { %v5805_v13 = vmin.f32 %v1632_v4, %v1692_v42  ;;  %v1705_v40 = vsel %vm104_vm0, %v1703_v36, %v1704_v24  ;;  %v1717_v49 = vadd.f32 %v5412_v3, %v1714_v39  ;;  %v1730_v32 = vstv %s5778_s16  ;;  %s5970_s16 = sld [smem:[#allocation4 + $0x26]] }
 0x13c   :  { %v1707_v33 = vsel %vm104_vm0, %v1704_v24, %v1706_v27  ;;  %v1721_v38 = vrot.slane %v1715_v50, 1  ;;  %v1722_v51 = vrot.slane %v1716_v41, 1  ;;  %v1731_v60 = vadd.f32 %v5702_v61, %v1730_v32 }
 0x13d   :  { %v1724_v52 = vrot.slane %v1717_v49, 1  ;;  %v1732_v26 = vadd.f32 %v5710_v62, %v1730_v32  ;;  %v1733_v56 = vadd.f32 %v5412_v3, %v1730_v32  ;;  %v1746_v25 = vadd.f32 %v5682_v57, %v1714_v39 }
 0x13e   :  { %v5819_v8 = vmax.f32 %v1646_v30, %v1705_v40  ;;  %v1737_v6 = vrot.slane %v1731_v60, 1  ;;  %v1747_v2 = vadd.f32 %v5690_v43, %v1714_v39  ;;  %v1748_v44 = vadd.f32 %v5368_v9, %v1714_v39 }
 0x13f   :  { %v1723_v12 = vsel %vm104_vm0, %v1721_v38, %v1722_v51  ;;  %v1725_v54 = vsel %vm104_vm0, %v1722_v51, %v1724_v52  ;;  %v1738_v0 = vrot.slane %v1732_v26, 1  ;;  %v1740_v63 = vrot.slane %v1733_v56, 1 }
 0x140   :  { %v5825_v4 = vmax.f32 %v1647_v10, %v1707_v33  ;;  %v1752_v5 = vrot.slane %v1746_v25, 2  ;;  %v1753_v7 = vrot.slane %v1747_v2, 2  ;;  %v1755_v58 = vrot.slane %v1748_v44, 2 }
 0x141   :  { %v5830_v30 = vsel %vm104_vm0, %v1737_v6, %v1738_v0  ;;  %v5833_v59 = vsel %vm104_vm0, %v1738_v0, %v1740_v63  ;;  %v1761_v55 = vadd.f32 %v5682_v57, %v1730_v32  ;;  %v1762_v11 = vadd.f32 %v5690_v43, %v1730_v32  ;;  %v5886_v63 = vld [vmem:[%s7278_s0 + $0x20] sm:$0xff] }
 0x142   :  { %v1728_v10 = vmin.f32 %v5788_v45, %v1723_v12  ;;  %v1729_v15 = vmin.f32 %v5792_v48, %v1725_v54  ;;  %v1744_v16 = vmax.f32 %v5795_v29, %v5830_v30  ;;  %v1754_v17 = vsel %vm233_vm1, %v1752_v5, %v1753_v7  ;;  %v5880_v54 = vld [vmem:[%s7278_s0 + $0x18] sm:$0xff] }
 0x143   :  { %v1745_v20 = vmax.f32 %v5799_v37, %v5833_v59  ;;  %v1756_v14 = vsel %vm233_vm1, %v1753_v7, %v1755_v58  ;;  %v1763_v21 = vadd.f32 %v5368_v9, %v1730_v32  ;;  %v1767_v22 = vrot.slane %v1761_v55, 2 }
 0x144   :  { %v1759_v18 = vmin.f32 %v5801_v46, %v1754_v17  ;;  %v1768_v19 = vrot.slane %v1762_v11, 2  ;;  %v1778_v23 = vstv %s5812_s17  ;;  %v1794_v31 = vstv %s5814_s18  ;;  %s6000_s17 = sld [smem:[#allocation2 + $0x27]] }
 0x145   :  { %v1770_v45 = vrot.slane %v1763_v21, 2  ;;  %v1779_v47 = vadd.f32 %v5682_v57, %v1778_v23  ;;  %v1780_v28 = vadd.f32 %v5690_v43, %v1778_v23  ;;  %v1781_v1 = vadd.f32 %v5368_v9, %v1778_v23  ;;  %s6007_s18 = sld [smem:[#allocation4 + $0x27]] }
 0x146   :  { %v1760_v48 = vmin.f32 %v5805_v13, %v1756_v14  ;;  %v1795_v35 = vadd.f32 %v5682_v57, %v1794_v31  ;;  %v1796_v36 = vadd.f32 %v5690_v43, %v1794_v31  ;;  %v1797_v24 = vadd.f32 %v5368_v9, %v1794_v31 }
 0x147   :  { %v1769_v29 = vsel %vm233_vm1, %v1767_v22, %v1768_v19  ;;  %v1771_v42 = vsel %vm233_vm1, %v1768_v19, %v1770_v45  ;;  %v1785_v27 = vrot.slane %v1779_v47, 2  ;;  %v1786_v39 = vrot.slane %v1780_v28, 2 }
 0x148   :  { %v1788_v37 = vrot.slane %v1781_v1, 2  ;;  %v1801_v46 = vrot.slane %v1795_v35, 2  ;;  %v1802_v50 = vrot.slane %v1796_v36, 2  ;;  %v1842_v41 = vstv %s5827_s19  ;;  %s6034_s19 = sld [smem:[#allocation2 + $0x28]] }
 0x149   :  { %v1787_v13 = vsel %vm233_vm1, %v1785_v27, %v1786_v39  ;;  %v1804_v40 = vrot.slane %v1797_v24, 2  ;;  %v1810_v49 = vadd.f32 %v5702_v61, %v1778_v23  ;;  %v1811_v32 = vadd.f32 %v5710_v62, %v1778_v23 }
 0x14a   :  { %v1774_v9 = vmax.f32 %v5819_v8, %v1769_v29  ;;  %v1775_v33 = vmax.f32 %v5825_v4, %v1771_v42  ;;  %v1789_v38 = vsel %vm233_vm1, %v1786_v39, %v1788_v37  ;;  %v1812_v51 = vadd.f32 %v5412_v3, %v1778_v23 }
 0x14b   :  { %v1792_v60 = vmin.f32 %v1728_v10, %v1787_v13  ;;  %v1793_v52 = vmin.f32 %v1729_v15, %v1789_v38  ;;  %v1803_v26 = vsel %vm233_vm1, %v1801_v46, %v1802_v50  ;;  %v1816_v56 = vrot.slane %v1810_v49, 2 }
 0x14c   :  { %v1805_v25 = vsel %vm233_vm1, %v1802_v50, %v1804_v40  ;;  %v1817_v6 = vrot.slane %v1811_v32, 2  ;;  %v1819_v2 = vrot.slane %v1812_v51, 2  ;;  %v1825_v44 = vadd.f32 %v5702_v61, %v1794_v31 }
 0x14d   :  { %v1826_v8 = vadd.f32 %v5710_v62, %v1794_v31  ;;  %v1827_v12 = vadd.f32 %v5412_v3, %v1794_v31  ;;  %v1843_v0 = vadd.f32 %v5880_v54, %v1842_v41  ;;  %v1844_v4 = vadd.f32 %v5886_v63, %v1842_v41 }
 0x14e   :  { %v1818_v3 = vsel %vm233_vm1, %v1816_v56, %v1817_v6  ;;  %v1820_v5 = vsel %vm233_vm1, %v1817_v6, %v1819_v2  ;;  %v1831_v7 = vrot.slane %v1825_v44, 2  ;;  %v1847_v58 = vstv %s5856_s20  ;;  %s6039_s20 = sld [smem:[#allocation4 + $0x28]] }
 0x14f   :  { %v1808_v30 = vmax.f32 %v1744_v16, %v1803_v26  ;;  %v1809_v59 = vmax.f32 %v1745_v20, %v1805_v25  ;;  %v1832_v55 = vrot.slane %v1826_v8, 2  ;;  %v1834_v11 = vrot.slane %v1827_v12, 2  ;;  %v5907_v16 = vld [vmem:[%s7279_s1 + $0x18] sm:$0xff] }
 0x150   :  { %v5896_v10 = vmin.f32 %v1759_v18, %v1818_v3  ;;  %v5898_v15 = vmin.f32 %v1760_v48, %v1820_v5  ;;  %v1848_v17 = vadd.f32 %v5880_v54, %v1847_v58  ;;  %v1849_v14 = vadd.f32 %v5886_v63, %v1847_v58  ;;  %v5913_v18 = vld [vmem:[%s7279_s1 + $0x20] sm:$0xff] }
 0x151   :  { %v1833_v21 = vsel %vm233_vm1, %v1831_v7, %v1832_v55  ;;  %v1835_v22 = vsel %vm233_vm1, %v1832_v55, %v1834_v11  ;;  %v1852_v20 = vadd.f32 %v5907_v16, %v1842_v41  ;;  %v1853_v19 = vadd.f32 %v5913_v18, %v1842_v41  ;;  %v3130_v55 = vld [vmem:[%s7283_s5 + $0x10] sm:$0xff]  ;;  %v3129_v11 = vld [vmem:[%s7283_s5 + $0x8] sm:$0xff] }
 0x152   :  { %v1838_v23 = vmax.f32 %v1774_v9, %v1833_v21  ;;  %v1839_v31 = vmax.f32 %v1775_v33, %v1835_v22  ;;  %v1845_v45 = vmin.f32 %v1792_v60, %v1843_v0  ;;  %v1846_v47 = vmin.f32 %v1793_v52, %v1844_v4  ;;  %3156 = vperm.xlu1 %4487, %v3130_v55  }
 0x153   :  { %v1850_v28 = vmax.f32 %v1808_v30, %v1848_v17  ;;  %v1851_v1 = vmax.f32 %v1809_v59, %v1849_v14  ;;  %v1856_v48 = vadd.f32 %v5907_v16, %v1847_v58  ;;  %v1857_v35 = vadd.f32 %v5913_v18, %v1847_v58  ;;  %3151 = vperm.xlu0 %4486, %v3129_v11  }
 0x154   :  { %v1854_v36 = vmin.f32 %v5896_v10, %v1852_v20  ;;  %v1855_v24 = vmin.f32 %v5898_v15, %v1853_v19  ;;  %v1862_v29 = vstv %s5871_s21  ;;  %v1867_v42 = vstv %s5873_s2  ;;  %s6045_s21 = sld [smem:[#allocation2 + $0x29]] }
 0x155   :  { %v1863_v27 = vadd.f32 %v5907_v16, %v1862_v29  ;;  %v1864_v39 = vadd.f32 %v5913_v18, %v1862_v29  ;;  %v1904_v37 = vstv %s5889_s25  ;;  %v1920_v46 = vstv %s5891_s26  ;;  %s6054_s2 = sld [smem:[#allocation4 + $0x29]]  ;;  %s6133_s25 = sld [smem:[#allocation2 + $0x2b]] }
 0x156   :  { %v1858_v50 = vmax.f32 %v1838_v23, %v1856_v48  ;;  %v1868_v41 = vadd.f32 %v5907_v16, %v1867_v42  ;;  %v1872_v13 = vadd.f32 %v5880_v54, %v1862_v29  ;;  %v1873_v40 = vadd.f32 %v5886_v63, %v1862_v29  ;;  %s6135_s26 = sld [smem:[#allocation4 + $0x2b]] }
 0x157   :  { %v1859_v49 = vmax.f32 %v1839_v31, %v1857_v35  ;;  %v1869_v32 = vadd.f32 %v5913_v18, %v1867_v42  ;;  %v1874_v9 = vadd.f32 %v5534_v34, %v1862_v29  ;;  %v1887_v33 = vadd.f32 %v5880_v54, %v1867_v42 }
 0x158   :  { %v5932_v38 = vmin.f32 %v1845_v45, %v1863_v27  ;;  %v5934_v51 = vmin.f32 %v1846_v47, %v1864_v39  ;;  %v1878_v60 = vrot.slane %v1872_v13, 1  ;;  %v1879_v52 = vrot.slane %v1873_v40, 1 }
 0x159   :  { %v1881_v26 = vrot.slane %v1874_v9, 1  ;;  %v1888_v56 = vadd.f32 %v5886_v63, %v1867_v42  ;;  %v1889_v25 = vadd.f32 %v5534_v34, %v1867_v42  ;;  %v1893_v6 = vrot.slane %v1887_v33, 1 }
 0x15a   :  { %v5938_v2 = vmax.f32 %v1850_v28, %v1868_v41  ;;  %v1905_v44 = vadd.f32 %v5880_v54, %v1904_v37  ;;  %v1906_v8 = vadd.f32 %v5886_v63, %v1904_v37  ;;  %v1907_v12 = vadd.f32 %v5534_v34, %v1904_v37 }
 0x15b   :  { %v1880_v0 = vsel %vm104_vm0, %v1878_v60, %v1879_v52  ;;  %v1882_v4 = vsel %vm104_vm0, %v1879_v52, %v1881_v26  ;;  %v1894_v3 = vrot.slane %v1888_v56, 1  ;;  %v1896_v5 = vrot.slane %v1889_v25, 1 }
 0x15c   :  { %v5945_v7 = vmax.f32 %v1851_v1, %v1869_v32  ;;  %v1911_v58 = vrot.slane %v1905_v44, 1  ;;  %v1912_v30 = vrot.slane %v1906_v8, 1  ;;  %v1914_v59 = vrot.slane %v1907_v12, 1 }
 0x15d   :  { %v1895_v10 = vsel %vm104_vm0, %v1893_v6, %v1894_v3  ;;  %v1897_v15 = vsel %vm104_vm0, %v1894_v3, %v1896_v5  ;;  %v1921_v17 = vadd.f32 %v5880_v54, %v1920_v46  ;;  %v1922_v14 = vadd.f32 %v5886_v63, %v1920_v46 }
 0x15e   :  { %v5959_v21 = vmin.f32 %v1854_v36, %v1880_v0  ;;  %v5961_v22 = vmin.f32 %v1855_v24, %v1882_v4  ;;  %v5963_v20 = vmax.f32 %v1858_v50, %v1895_v10  ;;  %v5965_v19 = vmax.f32 %v1859_v49, %v1897_v15 }
 0x15f   :  { %v1913_v23 = vsel %vm104_vm0, %v1911_v58, %v1912_v30  ;;  %v1915_v31 = vsel %vm104_vm0, %v1912_v30, %v1914_v59  ;;  %v1923_v45 = vadd.f32 %v5534_v34, %v1920_v46  ;;  %v1927_v47 = vrot.slane %v1921_v17, 1 }
 0x160   :  { %v1928_v28 = vrot.slane %v1922_v14, 1  ;;  %v1936_v1 = vadd.f32 %v5907_v16, %v1904_v37  ;;  %v1937_v48 = vadd.f32 %v5913_v18, %v1904_v37  ;;  %v1938_v35 = vadd.f32 %v5574_v53, %v1904_v37 }
 0x161   :  { %v1930_v36 = vrot.slane %v1923_v45, 1  ;;  %v1951_v24 = vadd.f32 %v5907_v16, %v1920_v46  ;;  %v1952_v29 = vadd.f32 %v5913_v18, %v1920_v46  ;;  %v1953_v42 = vadd.f32 %v5574_v53, %v1920_v46 }
 0x162   :  { %v1929_v27 = vsel %vm104_vm0, %v1927_v47, %v1928_v28  ;;  %v1942_v39 = vrot.slane %v1936_v1, 1  ;;  %v1943_v50 = vrot.slane %v1937_v48, 1  ;;  %v1945_v41 = vrot.slane %v1938_v35, 1 }
 0x163   :  { %v1918_v13 = vmin.f32 %v5932_v38, %v1913_v23  ;;  %v1931_v40 = vsel %vm104_vm0, %v1928_v28, %v1930_v36  ;;  %v1957_v49 = vrot.slane %v1951_v24, 1  ;;  %v1958_v37 = vrot.slane %v1952_v29, 1 }
 0x164   :  { %v1919_v32 = vmin.f32 %v5934_v51, %v1915_v31  ;;  %v1944_v9 = vsel %vm104_vm0, %v1942_v39, %v1943_v50  ;;  %v1946_v33 = vsel %vm104_vm0, %v1943_v50, %v1945_v41  ;;  %v1960_v46 = vrot.slane %v1953_v42, 1 }
 0x165   :  { %v1934_v60 = vmax.f32 %v5938_v2, %v1929_v27  ;;  %v1935_v52 = vmax.f32 %v5945_v7, %v1931_v40  ;;  %v1949_v26 = vmin.f32 %v5959_v21, %v1944_v9  ;;  %v1968_v56 = vstv %s5957_s15  ;;  %s6719_s15 = sld [smem:[#allocation2 + $0x36]] }
 0x166   :  { %v1950_v38 = vmin.f32 %v5961_v22, %v1946_v33  ;;  %v5990_v25 = vsel %vm104_vm0, %v1957_v49, %v1958_v37  ;;  %v1969_v6 = vadd.f32 %v5907_v16, %v1968_v56  ;;  %v1970_v51 = vadd.f32 %v5913_v18, %v1968_v56 }
 0x167   :  { %v5995_v44 = vsel %vm104_vm0, %v1958_v37, %v1960_v46  ;;  %v1971_v8 = vadd.f32 %v5574_v53, %v1968_v56  ;;  %v1984_v2 = vstv %s5970_s16  ;;  %v2000_v12 = vadd.f32 %v5880_v54, %v1968_v56  ;;  %s6249_s16 = sld [smem:[#allocation4 + $0x2d]] }
 0x168   :  { %v1975_v0 = vrot.slane %v1969_v6, 1  ;;  %v1976_v4 = vrot.slane %v1970_v51, 1  ;;  %v1985_v3 = vadd.f32 %v5907_v16, %v1984_v2  ;;  %v1986_v5 = vadd.f32 %v5913_v18, %v1984_v2 }
 0x169   :  { %v1978_v7 = vrot.slane %v1971_v8, 1  ;;  %v1987_v58 = vadd.f32 %v5574_v53, %v1984_v2  ;;  %v2001_v30 = vadd.f32 %v5886_v63, %v1968_v56  ;;  %v2002_v59 = vadd.f32 %v5534_v34, %v1968_v56 }
 0x16a   :  { %v1977_v55 = vsel %vm104_vm0, %v1975_v0, %v1976_v4  ;;  %v1991_v11 = vrot.slane %v1985_v3, 1  ;;  %v1992_v10 = vrot.slane %v1986_v5, 1  ;;  %v2006_v15 = vrot.slane %v2000_v12, 2 }
 0x16b   :  { %v1964_v17 = vmax.f32 %v5963_v20, %v5990_v25  ;;  %v1979_v14 = vsel %vm104_vm0, %v1976_v4, %v1978_v7  ;;  %v1994_v21 = vrot.slane %v1987_v58, 1  ;;  %v2007_v22 = vrot.slane %v2001_v30, 2 }
 0x16c   :  { %v1965_v23 = vmax.f32 %v5965_v19, %v5995_v44  ;;  %v1993_v31 = vsel %vm104_vm0, %v1991_v11, %v1992_v10  ;;  %v2009_v45 = vrot.slane %v2002_v59, 2  ;;  %v2015_v47 = vadd.f32 %v5880_v54, %v1984_v2 }
 0x16d   :  { %v1982_v28 = vmin.f32 %v1918_v13, %v1977_v55  ;;  %v1983_v1 = vmin.f32 %v1919_v32, %v1979_v14  ;;  %v1995_v48 = vsel %vm104_vm0, %v1992_v10, %v1994_v21  ;;  %v2016_v20 = vadd.f32 %v5886_v63, %v1984_v2 }
 0x16e   :  { %v1998_v35 = vmax.f32 %v1934_v60, %v1993_v31  ;;  %v2008_v36 = vsel %vm233_vm1, %v2006_v15, %v2007_v22  ;;  %v2010_v24 = vsel %vm233_vm1, %v2007_v22, %v2009_v45  ;;  %v2017_v29 = vadd.f32 %v5534_v34, %v1984_v2 }
 0x16f   :  { %v1999_v19 = vmax.f32 %v1935_v52, %v1995_v48  ;;  %v2021_v42 = vrot.slane %v2015_v47, 2  ;;  %v2022_v27 = vrot.slane %v2016_v20, 2  ;;  %v2032_v39 = vstv %s6000_s17 }
 0x170   :  { %v2024_v50 = vrot.slane %v2017_v29, 2  ;;  %v2033_v41 = vadd.f32 %v5880_v54, %v2032_v39  ;;  %v2034_v13 = vadd.f32 %v5886_v63, %v2032_v39  ;;  %v2035_v40 = vadd.f32 %v5534_v34, %v2032_v39 }
 0x171   :  { %v6026_v49 = vmin.f32 %v1949_v26, %v2008_v36  ;;  %v6028_v37 = vmin.f32 %v1950_v38, %v2010_v24  ;;  %v2048_v32 = vstv %s6007_s18  ;;  %v2064_v9 = vadd.f32 %v5907_v16, %v2032_v39  ;;  %s6725_s18 = sld [smem:[#allocation4 + $0x36]] }
 0x172   :  { %v2023_v33 = vsel %vm233_vm1, %v2021_v42, %v2022_v27  ;;  %v2039_v46 = vrot.slane %v2033_v41, 2  ;;  %v2040_v60 = vrot.slane %v2034_v13, 2  ;;  %v2065_v52 = vadd.f32 %v5913_v18, %v2032_v39 }
 0x173   :  { %v2025_v56 = vsel %vm233_vm1, %v2022_v27, %v2024_v50  ;;  %v2042_v25 = vrot.slane %v2035_v40, 2  ;;  %v2049_v6 = vadd.f32 %v5880_v54, %v2048_v32  ;;  %v2050_v26 = vadd.f32 %v5886_v63, %v2048_v32 }
 0x174   :  { %v2041_v38 = vsel %vm233_vm1, %v2039_v46, %v2040_v60  ;;  %v2051_v51 = vadd.f32 %v5534_v34, %v2048_v32  ;;  %v2066_v44 = vadd.f32 %v5574_v53, %v2032_v39  ;;  %v2070_v8 = vrot.slane %v2064_v9, 2 }
 0x175   :  { %v2043_v2 = vsel %vm233_vm1, %v2040_v60, %v2042_v25  ;;  %v2046_v12 = vmin.f32 %v1982_v28, %v2041_v38  ;;  %v2055_v0 = vrot.slane %v2049_v6, 2  ;;  %v2056_v4 = vrot.slane %v2050_v26, 2 }
 0x176   :  { %v2047_v3 = vmin.f32 %v1983_v1, %v2043_v2  ;;  %v2058_v5 = vrot.slane %v2051_v51, 2  ;;  %v2071_v7 = vrot.slane %v2065_v52, 2  ;;  %v2073_v58 = vrot.slane %v2066_v44, 2  ;;  %v6111_v44 = vld [vmem:[%s7278_s0 + $0x10] sm:$0x3] }
 0x177   :  { %v2057_v30 = vsel %vm233_vm1, %v2055_v0, %v2056_v4  ;;  %v2079_v59 = vadd.f32 %v5907_v16, %v2048_v32  ;;  %v2080_v34 = vadd.f32 %v5913_v18, %v2048_v32  ;;  %v2081_v55 = vadd.f32 %v5574_v53, %v2048_v32 }
 0x178   :  { %v2059_v11 = vsel %vm233_vm1, %v2056_v4, %v2058_v5  ;;  %v2062_v10 = vmax.f32 %v1998_v35, %v2057_v30  ;;  %v2072_v15 = vsel %vm233_vm1, %v2070_v8, %v2071_v7  ;;  %v2074_v14 = vsel %vm233_vm1, %v2071_v7, %v2073_v58 }
 0x179   :  { %v2028_v21 = vmax.f32 %v1964_v17, %v2023_v33  ;;  %v2029_v22 = vmax.f32 %v1965_v23, %v2025_v56  ;;  %v2063_v31 = vmax.f32 %v1999_v19, %v2059_v11  ;;  %v2085_v45 = vrot.slane %v2079_v59, 2 }
 0x17a   :  { %v2077_v47 = vmin.f32 %v6026_v49, %v2072_v15  ;;  %v2086_v28 = vrot.slane %v2080_v34, 2  ;;  %v2088_v1 = vrot.slane %v2081_v55, 2  ;;  %v2102_v48 = vstv %s6034_s19  ;;  %s6261_s19 = sld [smem:[#allocation2 + $0x2e]] }
 0x17b   :  { %v2078_v53 = vmin.f32 %v6028_v37, %v2074_v14  ;;  %v2094_v20 = vadd.f32 %v2062_v10, %v2046_v12  ;;  %v2095_v35 = vadd.f32 %v2063_v31, %v2047_v3  ;;  %v2105_v36 = vstv %s6039_s20 }
 0x17c   :  { %v2087_v24 = vsel %vm233_vm1, %v2085_v45, %v2086_v28  ;;  %v2089_v29 = vsel %vm233_vm1, %v2086_v28, %v2088_v1  ;;  %v6063_v17 = vadd.f32 %v5682_v57, %v2102_v48  ;;  %v6066_v23 = vadd.f32 %v5690_v43, %v2102_v48 }
 0x17d   :  { %v2092_v19 = vmax.f32 %v2028_v21, %v2087_v24  ;;  %v2093_v42 = vmax.f32 %v2029_v22, %v2089_v29  ;;  %v6073_v27 = vadd.f32 %v5682_v57, %v2105_v36  ;;  %v6076_v39 = vadd.f32 %v5690_v43, %v2105_v36 }
 0x17e   :  { %v6079_v50 = vadd.f32 %v5702_v61, %v2102_v48  ;;  %v6082_v41 = vadd.f32 %v5710_v62, %v2102_v48  ;;  %v6085_v13 = vadd.f32 %v5702_v61, %v2105_v36  ;;  %v2114_v40 = vstv %s6045_s21  ;;  %s6736_s21 = sld [smem:[#allocation4 + $0x37]] }
 0x17f   :  { %v2096_v49 = vadd.f32 %v2092_v19, %v2077_v47  ;;  %v2097_v37 = vadd.f32 %v2093_v42, %v2078_v53  ;;  %v6089_v32 = vadd.f32 %v5702_v61, %v2114_v40  ;;  %v6092_v9 = vadd.f32 %v5710_v62, %v2114_v40 }
 0x180   :  { %v6095_v33 = vadd.f32 %v5710_v62, %v2105_v36  ;;  %v2119_v46 = vstv %s6054_s2  ;;  %v2124_v60 = vadd.f32 %v5682_v57, %v2114_v40  ;;  %v2125_v52 = vadd.f32 %v5690_v43, %v2114_v40  ;;  %s6273_s2 = sld [smem:[#allocation4 + $0x2e]] }
 0x181   :  { %v2098_v56 = vadd.f32 %v2096_v49, %v2094_v20  ;;  %v2099_v25 = vadd.f32 %v2097_v37, %v2095_v35  ;;  %v2120_v6 = vadd.f32 %v5702_v61, %v2119_v46  ;;  %v6102_v26 = vadd.f32 %v5710_v62, %v2119_v46 }
 0x182   :  { %v2117_v38 = vmin.f32 %v6063_v17, %v6089_v32  ;;  %v2118_v51 = vmin.f32 %v6066_v23, %v6092_v9  ;;  %v2126_v8 = vadd.f32 %v6111_v44, %v2114_v40  ;;  %v2130_v2 = vrot.slane %v2124_v60, 1  ;;  %v6152_v40 = vld [vmem:[%s7279_s1 + $0x10] sm:$0x3] }
 0x183   :  { %v4391_v12 = vpack.c.bf16 %v2099_v25, %v2098_v56  ;;  %v2131_v0 = vrot.slane %v2125_v52, 1  ;;  %v2139_v4 = vadd.f32 %v5682_v57, %v2119_v46  ;;  %v2140_v3 = vadd.f32 %v5690_v43, %v2119_v46 }
 0x184   :  { %v2133_v5 = vrot.slane %v2126_v8, 1  ;;  %v2141_v7 = vadd.f32 %v6111_v44, %v2119_v46  ;;  %v2156_v58 = vstv %s6068_s3  ;;  %v2172_v30 = vstv %s6070_s22  ;;  %s6289_s3 = sld [smem:[#allocation2 + $0x2f]] }
 0x185   :  { %4392 = vmatprep.subr.bf16.mxu0 %v4391_v12  ;;  %v2132_v59 = vsel %vm104_vm0, %v2130_v2, %v2131_v0  ;;  %v2145_v34 = vrot.slane %v2139_v4, 1  ;;  %v2146_v55 = vrot.slane %v2140_v3, 1  ;;  %v2157_v11 = vadd.f32 %v5682_v57, %v2156_v58  ;;  %s6291_s22 = sld [smem:[#allocation4 + $0x2f]] }
 0x186   :  { %4394 = vmatpush3.bf16.msra.mxu0 %v4391_v12  ;;  %v2122_v10 = vmax.f32 %v6073_v27, %v2120_v6  ;;  %v2134_v15 = vsel %vm104_vm0, %v2131_v0, %v2133_v5  ;;  %v2148_v14 = vrot.slane %v2141_v7, 1  ;;  %v2158_v21 = vadd.f32 %v5690_v43, %v2156_v58 }
 0x187   :  { %v2123_v22 = vmax.f32 %v6076_v39, %v6102_v26  ;;  %v6127_v31 = vsel %vm104_vm0, %v2145_v34, %v2146_v55  ;;  %v2159_v45 = vadd.f32 %v6111_v44, %v2156_v58  ;;  %v2163_v47 = vrot.slane %v2157_v11, 1 }
 0x188   :  { %v2137_v28 = vmin.f32 %v6079_v50, %v2132_v59  ;;  %v2138_v1 = vmin.f32 %v6082_v41, %v2134_v15  ;;  %v2164_v48 = vrot.slane %v2158_v21, 1  ;;  %v2173_v53 = vadd.f32 %v5682_v57, %v2172_v30 }
 0x189   :  { %v2149_v20 = vsel %vm104_vm0, %v2146_v55, %v2148_v14  ;;  %v2166_v35 = vrot.slane %v2159_v45, 1  ;;  %v2174_v36 = vadd.f32 %v5690_v43, %v2172_v30  ;;  %v2175_v24 = vadd.f32 %v6111_v44, %v2172_v30 }
 0x18a   :  { %v2152_v29 = vmax.f32 %v6085_v13, %v6127_v31  ;;  %v2179_v17 = vrot.slane %v2173_v53, 1  ;;  %v2188_v23 = vadd.f32 %v5702_v61, %v2156_v58  ;;  %v2189_v19 = vadd.f32 %v5710_v62, %v2156_v58 }
 0x18b   :  { %v2165_v42 = vsel %vm104_vm0, %v2163_v47, %v2164_v48  ;;  %v2167_v27 = vsel %vm104_vm0, %v2164_v48, %v2166_v35  ;;  %v2180_v39 = vrot.slane %v2174_v36, 1  ;;  %v2182_v50 = vrot.slane %v2175_v24, 1 }
 0x18c   :  { %v2153_v41 = vmax.f32 %v6095_v33, %v2149_v20  ;;  %v2190_v13 = vadd.f32 %v6152_v40, %v2156_v58  ;;  %v2194_v49 = vrot.slane %v2188_v23, 1  ;;  %v2195_v37 = vrot.slane %v2189_v19, 1 }
 0x18d   :  { %v2181_v32 = vsel %vm104_vm0, %v2179_v17, %v2180_v39  ;;  %v2183_v9 = vsel %vm104_vm0, %v2180_v39, %v2182_v50  ;;  %v2203_v46 = vadd.f32 %v5702_v61, %v2172_v30  ;;  %v2204_v60 = vadd.f32 %v5710_v62, %v2172_v30 }
 0x18e   :  { %v6159_v33 = vmin.f32 %v2117_v38, %v2165_v42  ;;  %v6161_v52 = vmin.f32 %v2118_v51, %v2167_v27  ;;  %v2196_v56 = vsel %vm104_vm0, %v2194_v49, %v2195_v37  ;;  %v2197_v25 = vrot.slane %v2190_v13, 1 }
 0x18f   :  { %v6164_v6 = vmax.f32 %v2122_v10, %v2181_v32  ;;  %v2205_v26 = vadd.f32 %v6152_v40, %v2172_v30  ;;  %v2209_v8 = vrot.slane %v2203_v46, 1  ;;  %v2210_v2 = vrot.slane %v2204_v60, 1 }
 0x190   :  { %v6167_v12 = vmax.f32 %v2123_v22, %v2183_v9  ;;  %v2198_v0 = vsel %vm104_vm0, %v2195_v37, %v2197_v25  ;;  %v2220_v4 = vstv %s6133_s25  ;;  %v2236_v3 = vstv %s6135_s26  ;;  %s6533_s25 = sld [smem:[#allocation2 + $0x33]]  ;;  %s6545_s26 = sld [smem:[#allocation2 + $0x34]] }
 0x191   :  { %v6172_v5 = vmin.f32 %v2137_v28, %v2196_v56  ;;  %v2212_v38 = vrot.slane %v2205_v26, 1  ;;  %v2221_v51 = vadd.f32 %v5702_v61, %v2220_v4  ;;  %v6176_v7 = vstv %s6140_s27 }
 0x192   :  { %v6178_v58 = vmin.f32 %v2138_v1, %v2198_v0  ;;  %v2222_v59 = vadd.f32 %v5710_v62, %v2220_v4  ;;  %v2223_v30 = vadd.f32 %v6152_v40, %v2220_v4  ;;  %v2237_v34 = vadd.f32 %v5702_v61, %v2236_v3 }
 0x193   :  { %v2211_v55 = vsel %vm104_vm0, %v2209_v8, %v2210_v2  ;;  %v2227_v11 = vrot.slane %v2221_v51, 1  ;;  %v2238_v10 = vadd.f32 %v5710_v62, %v2236_v3  ;;  %v2239_v15 = vadd.f32 %v6152_v40, %v2236_v3  ;;  %v6240_v51 = vld [vmem:[%s7278_s0] sm:$0xff] }
 0x194   :  { %v2213_v14 = vsel %vm104_vm0, %v2210_v2, %v2212_v38  ;;  %v2228_v21 = vrot.slane %v2222_v59, 1  ;;  %v2230_v22 = vrot.slane %v2223_v30, 1  ;;  %v2243_v31 = vrot.slane %v2237_v34, 1  ;;  %v6255_v30 = vld [vmem:[%s7279_s1 + $0x8] sm:$0xff] }
 0x195   :  { %v2244_v45 = vrot.slane %v2238_v10, 1  ;;  %v2246_v47 = vrot.slane %v2239_v15, 1  ;;  %v2252_v28 = vadd.f32 %v5682_v57, %v2220_v4  ;;  %v2253_v1 = vadd.f32 %v5690_v43, %v2220_v4 }
 0x196   :  { %v6192_v48 = vsel %vm104_vm0, %v2227_v11, %v2228_v21  ;;  %v6195_v62 = vsel %vm104_vm0, %v2228_v21, %v2230_v22  ;;  %v2254_v53 = vadd.f32 %v6111_v44, %v2220_v4  ;;  %v2267_v20 = vadd.f32 %v5682_v57, %v2236_v3 }
 0x197   :  { %v6199_v35 = vmax.f32 %v2152_v29, %v2211_v55  ;;  %v6201_v36 = vmax.f32 %v2153_v41, %v2213_v14  ;;  %v2234_v24 = vmin.f32 %v6159_v33, %v6192_v48  ;;  %v6206_v17 = vsel %vm104_vm0, %v2243_v31, %v2244_v45  ;;  %v6266_v14 = vld [vmem:[%s7279_s1] sm:$0xff] }
 0x198   :  { %v2235_v23 = vmin.f32 %v6161_v52, %v6195_v62  ;;  %v2247_v19 = vsel %vm104_vm0, %v2244_v45, %v2246_v47  ;;  %v2258_v42 = vrot.slane %v2252_v28, 2  ;;  %v2259_v27 = vrot.slane %v2253_v1, 2 }
 0x199   :  { %v2261_v39 = vrot.slane %v2254_v53, 2  ;;  %v2268_v50 = vadd.f32 %v5690_v43, %v2236_v3  ;;  %v2269_v29 = vadd.f32 %v6111_v44, %v2236_v3  ;;  %v2273_v41 = vrot.slane %v2267_v20, 2 }
 0x19a   :  { %v2250_v13 = vmax.f32 %v6164_v6, %v6206_v17  ;;  %v2285_v49 = vadd.f32 %v5682_v57, %v6176_v7  ;;  %v2286_v37 = vadd.f32 %v5690_v43, %v6176_v7  ;;  %v2287_v32 = vadd.f32 %v6111_v44, %v6176_v7 }
 0x19b   :  { %v2260_v9 = vsel %vm233_vm1, %v2258_v42, %v2259_v27  ;;  %v2262_v46 = vsel %vm233_vm1, %v2259_v27, %v2261_v39  ;;  %v2274_v60 = vrot.slane %v2268_v50, 2  ;;  %v2276_v33 = vrot.slane %v2269_v29, 2 }
 0x19c   :  { %v2251_v52 = vmax.f32 %v6167_v12, %v2247_v19  ;;  %v2291_v56 = vrot.slane %v2285_v49, 2  ;;  %v2292_v25 = vrot.slane %v2286_v37, 2  ;;  %v2294_v6 = vrot.slane %v2287_v32, 2 }
 0x19d   :  { %v2275_v57 = vsel %vm233_vm1, %v2273_v41, %v2274_v60  ;;  %v2277_v43 = vsel %vm233_vm1, %v2274_v60, %v2276_v33  ;;  %v2300_v26 = vstv %s6189_s30  ;;  %v2316_v8 = vadd.f32 %v5702_v61, %v6176_v7  ;;  %v6246_v61 = vld [vmem:[%s7278_s0 + $0x8] sm:$0xff]  ;;  %s6350_s30 = sld [smem:[#allocation4 + $0x30]] }
 0x19e   :  { %v2265_v2 = vmin.f32 %v6172_v5, %v2260_v9  ;;  %v2266_v0 = vmin.f32 %v6178_v58, %v2262_v46  ;;  %v2280_v4 = vmax.f32 %v6199_v35, %v2275_v57  ;;  %v2281_v3 = vmax.f32 %v6201_v36, %v2277_v43 }
 0x19f   :  { %v2293_v12 = vsel %vm233_vm1, %v2291_v56, %v2292_v25  ;;  %v2295_v38 = vsel %vm233_vm1, %v2292_v25, %v2294_v6  ;;  %v2301_v59 = vadd.f32 %v6240_v51, %v2300_v26  ;;  %v2302_v5 = vadd.f32 %v6246_v61, %v2300_v26 }
 0x1a0   :  { %v2303_v58 = vadd.f32 %v6111_v44, %v2300_v26  ;;  %v2317_v34 = vadd.f32 %v6255_v30, %v6176_v7  ;;  %v2318_v55 = vadd.f32 %v6152_v40, %v6176_v7  ;;  %v2322_v11 = vrot.slane %v2316_v8, 2 }
 0x1a1   :  { %v2307_v10 = vrot.slane %v2301_v59, 2  ;;  %v2308_v15 = vrot.slane %v2302_v5, 2  ;;  %v2331_v21 = vadd.f32 %v6266_v14, %v2300_v26  ;;  %v2332_v22 = vadd.f32 %v6255_v30, %v2300_v26 }
 0x1a2   :  { %v2310_v31 = vrot.slane %v2303_v58, 2  ;;  %v2323_v45 = vrot.slane %v2317_v34, 2  ;;  %v2325_v47 = vrot.slane %v2318_v55, 2  ;;  %v2333_v28 = vadd.f32 %v6152_v40, %v2300_v26  ;;  %v6314_v34 = vld [vmem:[%s7278_s0 + $0x28] sm:$0x3] }
 0x1a3   :  { %v2309_v7 = vsel %vm233_vm1, %v2307_v10, %v2308_v15  ;;  %v2337_v1 = vrot.slane %v2331_v21, 2  ;;  %v2338_v48 = vrot.slane %v2332_v22, 2  ;;  %v2348_v62 = vstv %s6223_s11 }
 0x1a4   :  { %v2298_v53 = vmin.f32 %v2234_v24, %v2293_v12  ;;  %v2311_v20 = vsel %vm233_vm1, %v2308_v15, %v2310_v31  ;;  %v2324_v35 = vsel %vm233_vm1, %v2322_v11, %v2323_v45  ;;  %v2326_v36 = vsel %vm233_vm1, %v2323_v45, %v2325_v47 }
 0x1a5   :  { %v2299_v17 = vmin.f32 %v2235_v23, %v2295_v38  ;;  %v2314_v19 = vmax.f32 %v2250_v13, %v2309_v7  ;;  %v2315_v42 = vmax.f32 %v2251_v52, %v2311_v20  ;;  %v2339_v27 = vsel %vm233_vm1, %v2337_v1, %v2338_v48 }
 0x1a6   :  { %v2329_v39 = vmin.f32 %v2265_v2, %v2324_v35  ;;  %v2340_v50 = vrot.slane %v2333_v28, 2  ;;  %v2349_v29 = vadd.f32 %v5880_v54, %v2348_v62  ;;  %v2350_v41 = vadd.f32 %v5886_v63, %v2348_v62 }
 0x1a7   :  { %v2330_v49 = vmin.f32 %v2266_v0, %v2326_v36  ;;  %v2353_v24 = vstv %s6249_s16  ;;  %v2358_v37 = vadd.f32 %v5907_v16, %v2348_v62  ;;  %v2359_v32 = vadd.f32 %v5913_v18, %v2348_v62 }
 0x1a8   :  { %v2341_v9 = vsel %vm233_vm1, %v2338_v48, %v2340_v50  ;;  %v6285_v23 = vmax.f32 %v2280_v4, %v2339_v27  ;;  %v2354_v13 = vadd.f32 %v5880_v54, %v2353_v24  ;;  %v2368_v46 = vstv %s6261_s19  ;;  %s6611_s19 = sld [smem:[#allocation4 + $0x34]] }
 0x1a9   :  { %v6293_v60 = vmax.f32 %v2281_v3, %v2341_v9  ;;  %v2351_v33 = vmin.f32 %v2298_v53, %v2349_v29  ;;  %v2352_v52 = vmin.f32 %v2299_v17, %v2350_v41  ;;  %v2355_v56 = vadd.f32 %v5886_v63, %v2353_v24  ;;  %v3131_v41 = vld [vmem:[%s7283_s5 + $0x18] sm:$0xff] }
 0x1aa   :  { %v2360_v25 = vmin.f32 %v2329_v39, %v2358_v37  ;;  %v2362_v6 = vadd.f32 %v5907_v16, %v2353_v24  ;;  %v6298_v57 = vadd.f32 %v5913_v18, %v2353_v24  ;;  %v2369_v43 = vadd.f32 %v5907_v16, %v2368_v46  ;;  %3161 = vperm.xlu1 %4487, %v3131_v41  }
 0x1ab   :  { %v2361_v26 = vmin.f32 %v2330_v49, %v2359_v32  ;;  %v2370_v8 = vadd.f32 %v5913_v18, %v2368_v46  ;;  %v2373_v2 = vstv %s6273_s2  ;;  %v2378_v0 = vadd.f32 %v5880_v54, %v2368_v46  ;;  %v3132_v49 = vld [vmem:[%s7283_s5 + $0x20] sm:$0xff]  ;;  %s6518_s2 = sld [smem:[#allocation4 + $0x32]] }
 0x1ac   :  { %v2356_v4 = vmax.f32 %v2314_v19, %v2354_v13  ;;  %v2357_v3 = vmax.f32 %v2315_v42, %v2355_v56  ;;  %v2364_v12 = vmax.f32 %v6285_v23, %v2362_v6  ;;  %v2365_v38 = vmax.f32 %v6293_v60, %v6298_v57  ;;  %3166 = vperm.xlu0 %4486, %v3132_v49  }
 0x1ad   :  { %v6307_v59 = vmin.f32 %v2351_v33, %v2369_v43  ;;  %v2374_v5 = vadd.f32 %v5907_v16, %v2373_v2  ;;  %v2379_v58 = vadd.f32 %v5886_v63, %v2368_v46  ;;  %v2380_v55 = vadd.f32 %v6314_v34, %v2368_v46 }
 0x1ae   :  { %v2375_v11 = vadd.f32 %v5913_v18, %v2373_v2  ;;  %v2384_v10 = vrot.slane %v2378_v0, 1  ;;  %v2393_v15 = vadd.f32 %v5880_v54, %v2373_v2  ;;  %v2394_v21 = vadd.f32 %v5886_v63, %v2373_v2  ;;  %v3134_v0 = vld [vmem:[%s7283_s5 + $0x30] sm:$0xff] }
 0x1af   :  { %v6320_v22 = vmin.f32 %v2352_v52, %v2370_v8  ;;  %v2385_v31 = vrot.slane %v2379_v58, 1  ;;  %v2387_v45 = vrot.slane %v2380_v55, 1  ;;  %v2395_v47 = vadd.f32 %v6314_v34, %v2373_v2  ;;  %v3133_v2 = vld [vmem:[%s7283_s5 + $0x28] sm:$0xff] }
 0x1b0   :  { %v2399_v28 = vrot.slane %v2393_v15, 1  ;;  %v2400_v7 = vrot.slane %v2394_v21, 1  ;;  %v2410_v1 = vstv %s6289_s3  ;;  %v2426_v48 = vstv %s6291_s22  ;;  %3171 = vperm.xlu1 %4487, %v3133_v2   ;;  %3176 = vperm.xlu0 %4486, %v3134_v0   ;;  %v3139_v0 = vld [vmem:[%s7283_s5 + $0x58] sm:$0xff]  ;;  %s6638_s22 = sld [smem:[#allocation2 + $0x35]]  ;;  %s6878_s3 = sld [smem:[#allocation4 + $0x39]] }
 0x1b1   :  { %v2386_v62 = vsel %vm104_vm0, %v2384_v10, %v2385_v31  ;;  %v2388_v53 = vsel %vm104_vm0, %v2385_v31, %v2387_v45  ;;  %v2402_v20 = vrot.slane %v2395_v47, 1  ;;  %v2411_v35 = vadd.f32 %v5880_v54, %v2410_v1 }
 0x1b2   :  { %v6328_v36 = vmax.f32 %v2356_v4, %v2374_v5  ;;  %v6330_v17 = vmax.f32 %v2357_v3, %v2375_v11  ;;  %v6332_v19 = vmin.f32 %v2360_v25, %v2386_v62  ;;  %v2412_v42 = vadd.f32 %v5886_v63, %v2410_v1  ;;  %v6361_v25 = vld [vmem:[%s7279_s1 + $0x28] sm:$0x3] }
 0x1b3   :  { %v6335_v27 = vmin.f32 %v2361_v26, %v2388_v53  ;;  %v2401_v39 = vsel %vm104_vm0, %v2399_v28, %v2400_v7  ;;  %v2413_v50 = vadd.f32 %v6314_v34, %v2410_v1  ;;  %v2417_v29 = vrot.slane %v2411_v35, 1 }
 0x1b4   :  { %v2403_v24 = vsel %vm104_vm0, %v2400_v7, %v2402_v20  ;;  %v2418_v37 = vrot.slane %v2412_v42, 1  ;;  %v2427_v32 = vadd.f32 %v5880_v54, %v2426_v48  ;;  %v2428_v9 = vadd.f32 %v5886_v63, %v2426_v48  ;;  %v3136_v7 = vld [vmem:[%s7283_s5 + $0x40] sm:$0xff] }
 0x1b5   :  { %v2420_v23 = vrot.slane %v2413_v50, 1  ;;  %v2429_v13 = vadd.f32 %v6314_v34, %v2426_v48  ;;  %v2442_v46 = vadd.f32 %v5907_v16, %v2410_v1  ;;  %v2443_v60 = vadd.f32 %v5913_v18, %v2410_v1  ;;  %3186 = vperm.xlu0 %4486, %v3136_v7  }
 0x1b6   :  { %v6356_v33 = vsel %vm104_vm0, %v2417_v29, %v2418_v37  ;;  %v2433_v52 = vrot.slane %v2427_v32, 1  ;;  %v2434_v56 = vrot.slane %v2428_v9, 1  ;;  %v2444_v6 = vadd.f32 %v6361_v25, %v2410_v1  ;;  %v3138_v32 = vld [vmem:[%s7283_s5 + $0x50] sm:$0xff] }
 0x1b7   :  { %v6366_v57 = vmax.f32 %v2364_v12, %v2401_v39  ;;  %v6369_v43 = vsel %vm104_vm0, %v2418_v37, %v2420_v23  ;;  %v2436_v26 = vrot.slane %v2429_v13, 1  ;;  %v2448_v8 = vrot.slane %v2442_v46, 1  ;;  %v3137_v37 = vld [vmem:[%s7283_s5 + $0x48] sm:$0xff] }
 0x1b8   :  { %v6377_v4 = vmax.f32 %v2365_v38, %v2403_v24  ;;  %v6380_v3 = vsel %vm104_vm0, %v2433_v52, %v2434_v56  ;;  %v2449_v12 = vrot.slane %v2443_v60, 1  ;;  %v2451_v5 = vrot.slane %v2444_v6, 1 }
 0x1b9   :  { %v2424_v58 = vmin.f32 %v6307_v59, %v6356_v33  ;;  %v6385_v55 = vsel %vm104_vm0, %v2434_v56, %v2436_v26  ;;  %v2457_v11 = vadd.f32 %v5907_v16, %v2426_v48  ;;  %v2458_v38 = vadd.f32 %v5913_v18, %v2426_v48  ;;  %3196 = vperm.xlu0 %4486, %v3138_v32  }
 0x1ba   :  { %v2425_v10 = vmin.f32 %v6320_v22, %v6369_v43  ;;  %v6392_v15 = vsel %vm104_vm0, %v2448_v8, %v2449_v12  ;;  %v6395_v21 = vsel %vm104_vm0, %v2449_v12, %v2451_v5  ;;  %v2459_v59 = vadd.f32 %v6361_v25, %v2426_v48  ;;  %v3135_v22 = vld [vmem:[%s7283_s5 + $0x38] sm:$0xff] }
 0x1bb   :  { %v2440_v31 = vmax.f32 %v6328_v36, %v6380_v3  ;;  %v2441_v45 = vmax.f32 %v6330_v17, %v6385_v55  ;;  %v2463_v47 = vrot.slane %v2457_v11, 1  ;;  %v2464_v28 = vrot.slane %v2458_v38, 1  ;;  %3181 = vperm.xlu1 %4487, %v3135_v22   ;;  %v6459_v12 = vld [vmem:[%s7278_s0 + $0x18] sm:$0xff] }
 0x1bc   :  { %v2455_v1 = vmin.f32 %v6332_v19, %v6392_v15  ;;  %v2466_v48 = vrot.slane %v2459_v59, 1  ;;  %v2474_v62 = vstv %s6348_s29  ;;  %v2490_v53 = vstv %s6350_s30  ;;  %v6510_v19 = vld [vmem:[%s7279_s1 + $0x20] sm:$0xff] }
 0x1bd   :  { %v2456_v20 = vmin.f32 %v6335_v27, %v6395_v21  ;;  %v2475_v35 = vadd.f32 %v5907_v16, %v2474_v62  ;;  %v2476_v36 = vadd.f32 %v5913_v18, %v2474_v62  ;;  %v2477_v17 = vadd.f32 %v6361_v25, %v2474_v62 }
 0x1be   :  { %v6418_v42 = vsel %vm104_vm0, %v2463_v47, %v2464_v28  ;;  %v2491_v39 = vadd.f32 %v5907_v16, %v2490_v53  ;;  %v2492_v50 = vadd.f32 %v5913_v18, %v2490_v53  ;;  %v6423_v29 = vstv %s6364_s13  ;;  %s6479_s13 = sld [smem:[#allocation2 + $0x32]] }
 0x1bf   :  { %v6426_v41 = vsel %vm104_vm0, %v2464_v28, %v2466_v48  ;;  %v2481_v49 = vrot.slane %v2475_v35, 1  ;;  %v2482_v27 = vrot.slane %v2476_v36, 1  ;;  %v2484_v24 = vrot.slane %v2477_v17, 1  ;;  %3191 = vperm.xlu1 %4487, %v3137_v37   ;;  %v3141_v36 = vld [vmem:[%s7283_s5 + $0x68] sm:$0xff] }
 0x1c0   :  { %v2493_v16 = vadd.f32 %v6361_v25, %v2490_v53  ;;  %v2497_v9 = vrot.slane %v2491_v39, 1  ;;  %v2498_v18 = vrot.slane %v2492_v50, 1  ;;  %v2506_v23 = vadd.f32 %v5880_v54, %v2474_v62  ;;  %v6502_v50 = vld [vmem:[%s7279_s1 + $0x18] sm:$0xff] }
 0x1c1   :  { %v2470_v13 = vmax.f32 %v6366_v57, %v6418_v42  ;;  %v2483_v46 = vsel %vm104_vm0, %v2481_v49, %v2482_v27  ;;  %v2507_v60 = vadd.f32 %v5886_v63, %v2474_v62  ;;  %v2508_v33 = vadd.f32 %v6314_v34, %v2474_v62  ;;  %v3140_v63 = vld [vmem:[%s7283_s5 + $0x60] sm:$0xff] }
 0x1c2   :  { %v2471_v52 = vmax.f32 %v6377_v4, %v6426_v41  ;;  %v2485_v56 = vsel %vm104_vm0, %v2482_v27, %v2484_v24  ;;  %v6446_v6 = vmin.f32 %v2424_v58, %v2483_v46  ;;  %v2500_v54 = vrot.slane %v2493_v16, 1  ;;  %v6465_v58 = vld [vmem:[%s7278_s0 + $0x20] sm:$0xff]  ;;  %3206 = vperm.xlu0 %4486, %v3140_v63  }
 0x1c3   :  { %v2499_v43 = vsel %vm104_vm0, %v2497_v9, %v2498_v18  ;;  %v2512_v26 = vrot.slane %v2506_v23, 2  ;;  %v2513_v8 = vrot.slane %v2507_v60, 2  ;;  %v2515_v2 = vrot.slane %v2508_v33, 2  ;;  %3201 = vperm.xlu1 %4487, %v3139_v0   ;;  %v3143_v60 = vld [vmem:[%s7283_s5 + $0x78] sm:$0xff]  ;;  %v3450_v33 = vld [vmem:[%s7285_s7] sm:$0xff] }
 0x1c4   :  { %v2501_v3 = vsel %vm104_vm0, %v2498_v18, %v2500_v54  ;;  %v2521_v5 = vadd.f32 %v6459_v12, %v2490_v53  ;;  %v2522_v55 = vadd.f32 %v6465_v58, %v2490_v53  ;;  %v2523_v11 = vadd.f32 %v6314_v34, %v2490_v53 }
 0x1c5   :  { %v6469_v38 = vmin.f32 %v2425_v10, %v2485_v56  ;;  %v2514_v21 = vsel %vm233_vm1, %v2512_v26, %v2513_v8  ;;  %v2516_v59 = vsel %vm233_vm1, %v2513_v8, %v2515_v2  ;;  %v2539_v47 = vadd.f32 %v6459_v12, %v6423_v29 }
 0x1c6   :  { %v6475_v28 = vmax.f32 %v2440_v31, %v2499_v43  ;;  %v6477_v22 = vmax.f32 %v2441_v45, %v2501_v3  ;;  %v2527_v7 = vrot.slane %v2521_v5, 2  ;;  %v2528_v48 = vrot.slane %v2522_v55, 2  ;;  %v3142_v31 = vld [vmem:[%s7283_s5 + $0x70] sm:$0xff]  ;;  %s6543_s5 = sld [smem:[#allocation4 + $0x33]] }
 0x1c7   :  { %v2530_v62 = vrot.slane %v2523_v11, 2  ;;  %v2540_v10 = vadd.f32 %v6465_v58, %v6423_v29  ;;  %v2541_v53 = vadd.f32 %v6314_v34, %v6423_v29  ;;  %v2545_v35 = vrot.slane %v2539_v47, 2  ;;  %3211 = vperm.xlu1 %4487, %v3141_v36   ;;  %3216 = vperm.xlu0 %4486, %v3142_v31   ;;  %v3452_v47 = vld [vmem:[%s7285_s7 + $0x10] sm:$0xff] }
 0x1c8   :  { %v6494_v45 = vmin.f32 %v2455_v1, %v2514_v21  ;;  %v6496_v17 = vmin.f32 %v2456_v20, %v2516_v59  ;;  %v2554_v39 = vstv %s6436_s24  ;;  %v2570_v49 = vadd.f32 %v6502_v50, %v6423_v29  ;;  %v3451_v59 = vld [vmem:[%s7285_s7 + $0x8] sm:$0xff] }
 0x1c9   :  { %v2529_v27 = vsel %vm233_vm1, %v2527_v7, %v2528_v48  ;;  %v2546_v24 = vrot.slane %v2540_v10, 2  ;;  %v2548_v37 = vrot.slane %v2541_v53, 2  ;;  %v2571_v15 = vadd.f32 %v6510_v19, %v6423_v29 }
 0x1ca   :  { %v2531_v1 = vsel %vm233_vm1, %v2528_v48, %v2530_v62  ;;  %v2555_v20 = vadd.f32 %v6459_v12, %v2554_v39  ;;  %v2556_v32 = vadd.f32 %v6465_v58, %v2554_v39  ;;  %v2557_v16 = vadd.f32 %v6314_v34, %v2554_v39 }
 0x1cb   :  { %v2547_v9 = vsel %vm233_vm1, %v2545_v35, %v2546_v24  ;;  %v2549_v18 = vsel %vm233_vm1, %v2546_v24, %v2548_v37  ;;  %v2572_v23 = vadd.f32 %v6361_v25, %v6423_v29  ;;  %v2576_v46 = vrot.slane %v2570_v49, 2  ;;  %3221 = vperm.xlu1 %4487, %v3143_v60   ;;  %3468 = vperm.xlu0 %4486, %v3450_v33  }
 0x1cc   :  { %v2552_v56 = vmin.f32 %v6446_v6, %v2547_v9  ;;  %v2553_v54 = vmin.f32 %v6469_v38, %v2549_v18  ;;  %v2561_v43 = vrot.slane %v2555_v20, 2  ;;  %v2562_v26 = vrot.slane %v2556_v32, 2  ;;  %v3455_v32 = vld [vmem:[%s7285_s7 + $0x28] sm:$0xff] }
 0x1cd   :  { %v2564_v8 = vrot.slane %v2557_v16, 2  ;;  %v2577_v2 = vrot.slane %v2571_v15, 2  ;;  %v2579_v29 = vrot.slane %v2572_v23, 2  ;;  %v2585_v0 = vadd.f32 %v6502_v50, %v2554_v39 }
 0x1ce   :  { %v2563_v63 = vsel %vm233_vm1, %v2561_v43, %v2562_v26  ;;  %v2586_v3 = vadd.f32 %v6510_v19, %v2554_v39  ;;  %v2587_v5 = vadd.f32 %v6361_v25, %v2554_v39  ;;  %v2608_v6 = vstv %s6479_s13  ;;  %s6951_s13 = sld [smem:[#allocation2 + $0x3a]] }
 0x1cf   :  { %v2565_v55 = vsel %vm233_vm1, %v2562_v26, %v2564_v8  ;;  %v2568_v11 = vmax.f32 %v6475_v28, %v2563_v63  ;;  %v2578_v38 = vsel %vm233_vm1, %v2576_v46, %v2577_v2  ;;  %v2580_v21 = vsel %vm233_vm1, %v2577_v2, %v2579_v29  ;;  %3473 = vperm.xlu1 %4487, %v3451_v59   ;;  %v3456_v46 = vld [vmem:[%s7285_s7 + $0x30] sm:$0xff] }
 0x1d0   :  { %v2534_v28 = vmax.f32 %v2470_v13, %v2529_v27  ;;  %v2535_v7 = vmax.f32 %v2471_v52, %v2531_v1  ;;  %v2569_v48 = vmax.f32 %v6477_v22, %v2565_v55  ;;  %v2591_v62 = vrot.slane %v2585_v0, 2  ;;  %3478 = vperm.xlu0 %4486, %v3452_v47   ;;  %v3453_v22 = vld [vmem:[%s7285_s7 + $0x18] sm:$0xff] }
 0x1d1   :  { %v2583_v10 = vmin.f32 %v6494_v45, %v2578_v38  ;;  %v2584_v53 = vmin.f32 %v6496_v17, %v2580_v21  ;;  %v2592_v35 = vrot.slane %v2586_v3, 2  ;;  %v2594_v36 = vrot.slane %v2587_v5, 2  ;;  %v3454_v45 = vld [vmem:[%s7285_s7 + $0x20] sm:$0xff]  ;;  %v3457_v5 = vld [vmem:[%s7285_s7 + $0x38] sm:$0xff] }
 0x1d2   :  { %v2600_v31 = vadd.f32 %v2568_v11, %v2552_v56  ;;  %v2601_v39 = vadd.f32 %v2569_v48, %v2553_v54  ;;  %v6563_v57 = vadd.f32 %v6240_v51, %v2608_v6  ;;  %v2611_v42 = vstv %s6518_s2  ;;  %v3458_v21 = vld [vmem:[%s7285_s7 + $0x40] sm:$0xff]  ;;  %s6876_s2 = sld [smem:[#allocation2 + $0x39]] }
 0x1d3   :  { %v2593_v4 = vsel %vm233_vm1, %v2591_v62, %v2592_v35  ;;  %v2595_v41 = vsel %vm233_vm1, %v2592_v35, %v2594_v36  ;;  %v6569_v13 = vadd.f32 %v6246_v61, %v2608_v6  ;;  %v6572_v52 = vadd.f32 %v6266_v14, %v2608_v6  ;;  %3483 = vperm.xlu1 %4487, %v3453_v22  }
 0x1d4   :  { %v2598_v17 = vmax.f32 %v2534_v28, %v2593_v4  ;;  %v2599_v49 = vmax.f32 %v2535_v7, %v2595_v41  ;;  %v6581_v27 = vadd.f32 %v6240_v51, %v2611_v42  ;;  %v6584_v24 = vadd.f32 %v6246_v61, %v2611_v42  ;;  %3488 = vperm.xlu0 %4486, %v3454_v45  }
 0x1d5   :  { %v6587_v37 = vadd.f32 %v6255_v30, %v2608_v6  ;;  %v6590_v15 = vadd.f32 %v6266_v14, %v2611_v42  ;;  %v6593_v1 = vadd.f32 %v6255_v30, %v2611_v42  ;;  %v2620_v20 = vstv %s6533_s25  ;;  %v3459_v42 = vld [vmem:[%s7285_s7 + $0x48] sm:$0xff] }
 0x1d6   :  { %v2602_v16 = vadd.f32 %v2598_v17, %v2583_v10  ;;  %v2603_v9 = vadd.f32 %v2599_v49, %v2584_v53  ;;  %v6600_v18 = vadd.f32 %v6266_v14, %v2620_v20  ;;  %v6603_v23 = vadd.f32 %v6255_v30, %v2620_v20  ;;  %v3460_v17 = vld [vmem:[%s7285_s7 + $0x50] sm:$0xff] }
 0x1d7   :  { %v2625_v60 = vstv %s6543_s5  ;;  %v2630_v33 = vadd.f32 %v6240_v51, %v2620_v20  ;;  %v2631_v56 = vadd.f32 %v6246_v61, %v2620_v20  ;;  %v2662_v54 = vstv %s6545_s26  ;;  %3493 = vperm.xlu1 %4487, %v3455_v32   ;;  %s6670_s26 = sld [smem:[#allocation4 + $0x35]] }
 0x1d8   :  { %v2604_v43 = vadd.f32 %v2602_v16, %v2600_v31  ;;  %v2605_v26 = vadd.f32 %v2603_v9, %v2601_v39  ;;  %v6615_v8 = vadd.f32 %v6266_v14, %v2625_v60  ;;  %v6618_v2 = vadd.f32 %v6255_v30, %v2625_v60  ;;  %3498 = vperm.xlu0 %4486, %v3456_v46  }
 0x1d9   :  { %v2623_v29 = vmin.f32 %v6563_v57, %v6600_v18  ;;  %v2624_v0 = vmin.f32 %v6569_v13, %v6603_v23  ;;  %v2632_v63 = vadd.f32 %v6111_v44, %v2620_v20  ;;  %v2636_v3 = vrot.slane %v2630_v33, 1 }
 0x1da   :  { %v4395_v6 = vpack.c.bf16 %v2605_v26, %v2604_v43  ;;  %v2637_v55 = vrot.slane %v2631_v56, 1  ;;  %v2645_v11 = vadd.f32 %v6240_v51, %v2625_v60  ;;  %v2646_v38 = vadd.f32 %v6246_v61, %v2625_v60 }
 0x1db   :  { %v2639_v59 = vrot.slane %v2632_v63, 1  ;;  %v2647_v47 = vadd.f32 %v6111_v44, %v2625_v60  ;;  %v2663_v28 = vadd.f32 %v6240_v51, %v2662_v54  ;;  %v2664_v7 = vadd.f32 %v6246_v61, %v2662_v54  ;;  %3503 = vperm.xlu1 %4487, %v3457_v5   ;;  %v3462_v63 = vld [vmem:[%s7285_s7 + $0x60] sm:$0xff] }
 0x1dc   :  { %4396 = vmatprep.subr.bf16.mxu0 %v4395_v6  ;;  %v2638_v48 = vsel %vm104_vm0, %v2636_v3, %v2637_v55  ;;  %v2651_v62 = vrot.slane %v2645_v11, 1  ;;  %v2652_v10 = vrot.slane %v2646_v38, 1  ;;  %v2665_v53 = vadd.f32 %v6111_v44, %v2662_v54  ;;  %3508 = vperm.xlu0 %4486, %v3458_v21  }
 0x1dd   :  { %4398 = vmatpush3.bf16.msra.mxu0 %v4395_v6  ;;  %v2628_v35 = vmax.f32 %v6581_v27, %v6615_v8  ;;  %v2640_v36 = vsel %vm104_vm0, %v2637_v55, %v2639_v59  ;;  %v2654_v31 = vrot.slane %v2647_v47, 1  ;;  %v2669_v39 = vrot.slane %v2663_v28, 1 }
 0x1de   :  { %v2629_v4 = vmax.f32 %v6584_v24, %v6618_v2  ;;  %v6649_v41 = vsel %vm104_vm0, %v2651_v62, %v2652_v10  ;;  %v2670_v22 = vrot.slane %v2664_v7, 1  ;;  %v2672_v45 = vrot.slane %v2665_v53, 1 }
 0x1df   :  { %v2643_v49 = vmin.f32 %v6572_v52, %v2638_v48  ;;  %v6656_v27 = vsel %vm104_vm0, %v2652_v10, %v2654_v31  ;;  %v2678_v20 = vstv %s6611_s19  ;;  %v2694_v32 = vadd.f32 %v6266_v14, %v2662_v54  ;;  %3513 = vperm.xlu1 %4487, %v3459_v42   ;;  %v3463_v48 = vld [vmem:[%s7285_s7 + $0x68] sm:$0xff]  ;;  %v3464_v31 = vld [vmem:[%s7285_s7 + $0x70] sm:$0xff] }
 0x1e0   :  { %v2644_v16 = vmin.f32 %v6587_v37, %v2640_v36  ;;  %v2658_v24 = vmax.f32 %v6590_v15, %v6649_v41  ;;  %v2659_v9 = vmax.f32 %v6593_v1, %v6656_v27  ;;  %v2679_v46 = vadd.f32 %v6240_v51, %v2678_v20  ;;  %3518 = vperm.xlu0 %4486, %v3460_v17   ;;  %v3461_v37 = vld [vmem:[%s7285_s7 + $0x58] sm:$0xff]  ;;  %v3724_v15 = vld [vmem:[%s7287_s9 + $0x8] sm:$0xff]  ;;  %v3725_v1 = vld [vmem:[%s7287_s9 + $0x10] sm:$0xff] }
 0x1e1   :  { %v2671_v60 = vsel %vm104_vm0, %v2669_v39, %v2670_v22  ;;  %v2673_v52 = vsel %vm104_vm0, %v2670_v22, %v2672_v45  ;;  %v2680_v33 = vadd.f32 %v6246_v61, %v2678_v20  ;;  %v2681_v56 = vadd.f32 %v6111_v44, %v2678_v20  ;;  %v3465_v17 = vld [vmem:[%s7285_s7 + $0x78] sm:$0xff]  ;;  %s6734_s7 = sld [smem:[#allocation2 + $0x37]] }
 0x1e2   :  { %v2685_v43 = vrot.slane %v2679_v46, 1  ;;  %v2695_v26 = vadd.f32 %v6255_v30, %v2662_v54  ;;  %v2696_v8 = vadd.f32 %v6152_v40, %v2662_v54  ;;  %v2700_v2 = vrot.slane %v2694_v32, 1  ;;  %v3723_v46 = vld [vmem:[%s7287_s9] sm:$0xff] }
 0x1e3   :  { %v2686_v3 = vrot.slane %v2680_v33, 1  ;;  %v2688_v5 = vrot.slane %v2681_v56, 1  ;;  %v2709_v6 = vadd.f32 %v6266_v14, %v2678_v20  ;;  %v2710_v55 = vadd.f32 %v6255_v30, %v2678_v20  ;;  %3523 = vperm.xlu1 %4487, %v3461_v37  }
 0x1e4   :  { %v2701_v11 = vrot.slane %v2695_v26, 1  ;;  %v2703_v38 = vrot.slane %v2696_v8, 1  ;;  %v2711_v21 = vadd.f32 %v6152_v40, %v2678_v20  ;;  %v2726_v59 = vstv %s6638_s22  ;;  %3528 = vperm.xlu0 %4486, %v3462_v63  }
 0x1e5   :  { %v2687_v47 = vsel %vm104_vm0, %v2685_v43, %v2686_v3  ;;  %v2689_v54 = vsel %vm104_vm0, %v2686_v3, %v2688_v5  ;;  %v2715_v28 = vrot.slane %v2709_v6, 1  ;;  %v2716_v7 = vrot.slane %v2710_v55, 1  ;;  %v4520_v55 = vld [vmem:[%s7278_s0 + $0x10] sm:$0x3] }
 0x1e6   :  { %v6692_v62 = vmin.f32 %v2623_v29, %v2671_v60  ;;  %v6697_v10 = vmin.f32 %v2624_v0, %v2673_v52  ;;  %v2702_v53 = vsel %vm104_vm0, %v2700_v2, %v2701_v11  ;;  %v2704_v36 = vsel %vm104_vm0, %v2701_v11, %v2703_v38 }
 0x1e7   :  { %v6704_v39 = vmax.f32 %v2628_v35, %v2687_v47  ;;  %v6706_v42 = vmax.f32 %v2629_v4, %v2689_v54  ;;  %v6708_v57 = vmin.f32 %v2643_v49, %v2702_v53  ;;  %v2718_v18 = vrot.slane %v2711_v21, 1  ;;  %3533 = vperm.xlu1 %4487, %v3463_v48  }
 0x1e8   :  { %v6710_v29 = vmin.f32 %v2644_v16, %v2704_v36  ;;  %v2727_v13 = vadd.f32 %v6266_v14, %v2726_v59  ;;  %v2728_v23 = vadd.f32 %v6255_v30, %v2726_v59  ;;  %v2729_v0 = vadd.f32 %v6152_v40, %v2726_v59  ;;  %3538 = vperm.xlu0 %4486, %v3464_v31  }
 0x1e9   :  { %v2717_v22 = vsel %vm104_vm0, %v2715_v28, %v2716_v7  ;;  %v2742_v45 = vstv %s6670_s26  ;;  %v2758_v35 = vadd.f32 %v6240_v51, %v2726_v59  ;;  %v2759_v4 = vadd.f32 %v6246_v61, %v2726_v59 }
 0x1ea   :  { %v2719_v49 = vsel %vm104_vm0, %v2716_v7, %v2718_v18  ;;  %v2733_v20 = vrot.slane %v2727_v13, 1  ;;  %v2734_v32 = vrot.slane %v2728_v23, 1  ;;  %v2736_v16 = vrot.slane %v2729_v0, 1 }
 0x1eb   :  { %v2743_v60 = vadd.f32 %v6266_v14, %v2742_v45  ;;  %v2744_v52 = vadd.f32 %v6255_v30, %v2742_v45  ;;  %v2745_v33 = vadd.f32 %v6152_v40, %v2742_v45  ;;  %v2760_v56 = vadd.f32 %v6111_v44, %v2726_v59  ;;  %3543 = vperm.xlu1 %4487, %v3465_v17  }
 0x1ec   :  { %v6741_v37 = vmax.f32 %v2658_v24, %v2717_v22  ;;  %v6744_v43 = vsel %vm104_vm0, %v2733_v20, %v2734_v32  ;;  %v2764_v26 = vrot.slane %v2758_v35, 2  ;;  %v2765_v8 = vrot.slane %v2759_v4, 2  ;;  %3741 = vperm.xlu0 %4486, %v3723_v46  }
 0x1ed   :  { %v6749_v40 = vmax.f32 %v2659_v9, %v2719_v49  ;;  %v6752_v44 = vsel %vm104_vm0, %v2734_v32, %v2736_v16  ;;  %v2749_v2 = vrot.slane %v2743_v60, 1  ;;  %v2750_v63 = vrot.slane %v2744_v52, 1  ;;  %v3728_v32 = vld [vmem:[%s7287_s9 + $0x28] sm:$0xff] }
 0x1ee   :  { %v2752_v41 = vrot.slane %v2745_v33, 1  ;;  %v6758_v24 = vsel %vm233_vm1, %v2764_v26, %v2765_v8  ;;  %v2767_v3 = vrot.slane %v2760_v56, 2  ;;  %v2773_v5 = vadd.f32 %v6240_v51, %v2742_v45 }
 0x1ef   :  { %v2740_v27 = vmin.f32 %v6692_v62, %v6744_v43  ;;  %v2751_v9 = vsel %vm104_vm0, %v2749_v2, %v2750_v63  ;;  %v2774_v6 = vadd.f32 %v6246_v61, %v2742_v45  ;;  %v2775_v11 = vadd.f32 %v4520_v55, %v2742_v45  ;;  %3746 = vperm.xlu1 %4487, %v3724_v15   ;;  %v3726_v62 = vld [vmem:[%s7287_s9 + $0x18] sm:$0xff]  ;;  %v4521_v43 = vld [vmem:[%s7279_s1 + $0x10] sm:$0x3] }
 0x1f0   :  { %v2741_v38 = vmin.f32 %v6697_v10, %v6752_v44  ;;  %v6774_v21 = vsel %vm104_vm0, %v2750_v63, %v2752_v41  ;;  %v6777_v59 = vsel %vm233_vm1, %v2765_v8, %v2767_v3  ;;  %v2779_v47 = vrot.slane %v2773_v5, 2  ;;  %3751 = vperm.xlu0 %4486, %v3725_v1  }
 0x1f1   :  { %v2756_v54 = vmax.f32 %v6704_v39, %v2751_v9  ;;  %v2771_v28 = vmin.f32 %v6708_v57, %v6758_v24  ;;  %v2780_v7 = vrot.slane %v2774_v6, 2  ;;  %v2782_v48 = vrot.slane %v2775_v11, 2  ;;  %v3727_v39 = vld [vmem:[%s7287_s9 + $0x20] sm:$0xff]  ;;  %v3733_v57 = vld [vmem:[%s7287_s9 + $0x50] sm:$0xff] }
 0x1f2   :  { %v2757_v10 = vmax.f32 %v6706_v42, %v6774_v21  ;;  %v2772_v53 = vmin.f32 %v6710_v29, %v6777_v59  ;;  %v2790_v36 = vstv %s6719_s15  ;;  %v2806_v31 = vstv %s6725_s18  ;;  %s6827_s15 = sld [smem:[#allocation2 + $0x38]] }
 0x1f3   :  { %v2791_v18 = vadd.f32 %v6240_v51, %v2790_v36  ;;  %v2792_v13 = vadd.f32 %v6246_v61, %v2790_v36  ;;  %v2854_v23 = vstv %s6734_s7  ;;  %v6798_v0 = vstv %s6736_s21  ;;  %3756 = vperm.xlu1 %4487, %v3726_v62   ;;  %s6837_s18 = sld [smem:[#allocation4 + $0x38]] }
 0x1f4   :  { %v6801_v22 = vsel %vm233_vm1, %v2779_v47, %v2780_v7  ;;  %v6804_v42 = vsel %vm233_vm1, %v2780_v7, %v2782_v48  ;;  %v2793_v45 = vadd.f32 %v4520_v55, %v2790_v36  ;;  %v2807_v35 = vadd.f32 %v6240_v51, %v2806_v31  ;;  %3761 = vperm.xlu0 %4486, %v3727_v39   ;;  %v3729_v51 = vld [vmem:[%s7287_s9 + $0x30] sm:$0xff] }
 0x1f5   :  { %v2797_v4 = vrot.slane %v2791_v18, 2  ;;  %v2798_v17 = vrot.slane %v2792_v13, 2  ;;  %v2808_v49 = vadd.f32 %v6246_v61, %v2806_v31  ;;  %v2809_v20 = vadd.f32 %v4520_v55, %v2806_v31 }
 0x1f6   :  { %v2800_v16 = vrot.slane %v2793_v45, 2  ;;  %v2813_v46 = vrot.slane %v2807_v35, 2  ;;  %v2822_v60 = vadd.f32 %v6266_v14, %v2790_v36  ;;  %v2823_v52 = vadd.f32 %v6255_v30, %v2790_v36 }
 0x1f7   :  { %v2799_v33 = vsel %vm233_vm1, %v2797_v4, %v2798_v17  ;;  %v2814_v56 = vrot.slane %v2808_v49, 2  ;;  %v2816_v61 = vrot.slane %v2809_v20, 2  ;;  %v2824_v26 = vadd.f32 %v4521_v43, %v2790_v36  ;;  %3766 = vperm.xlu1 %4487, %v3728_v32  }
 0x1f8   :  { %v2786_v8 = vmax.f32 %v6741_v37, %v6801_v22  ;;  %v2801_v44 = vsel %vm233_vm1, %v2798_v17, %v2800_v16  ;;  %v2828_v2 = vrot.slane %v2822_v60, 2  ;;  %v2829_v63 = vrot.slane %v2823_v52, 2  ;;  %3771 = vperm.xlu0 %4486, %v3729_v51   ;;  %v3730_v37 = vld [vmem:[%s7287_s9 + $0x38] sm:$0xff] }
 0x1f9   :  { %v2787_v15 = vmax.f32 %v6749_v40, %v6804_v42  ;;  %v2815_v41 = vsel %vm233_vm1, %v2813_v46, %v2814_v56  ;;  %v2817_v3 = vsel %vm233_vm1, %v2814_v56, %v2816_v61  ;;  %v2831_v5 = vrot.slane %v2824_v26, 2  ;;  %v3731_v40 = vld [vmem:[%s7287_s9 + $0x40] sm:$0xff]  ;;  %v3734_v17 = vld [vmem:[%s7287_s9 + $0x58] sm:$0xff] }
 0x1fa   :  { %v2804_v1 = vmin.f32 %v2740_v27, %v2799_v33  ;;  %v6832_v9 = vmin.f32 %v2741_v38, %v2801_v44  ;;  %v6834_v6 = vmax.f32 %v2756_v54, %v2815_v41  ;;  %v2837_v55 = vadd.f32 %v6266_v14, %v2806_v31 }
 0x1fb   :  { %v2830_v11 = vsel %vm233_vm1, %v2828_v2, %v2829_v63  ;;  %v2832_v21 = vsel %vm233_vm1, %v2829_v63, %v2831_v5  ;;  %v2838_v47 = vadd.f32 %v6255_v30, %v2806_v31  ;;  %v2839_v7 = vadd.f32 %v4521_v43, %v2806_v31  ;;  %3776 = vperm.xlu1 %4487, %v3730_v37   ;;  %v3732_v30 = vld [vmem:[%s7287_s9 + $0x48] sm:$0xff]  ;;  %v3737_v37 = vld [vmem:[%s7287_s9 + $0x70] sm:$0xff] }
 0x1fc   :  { %v6845_v27 = vmax.f32 %v2757_v10, %v2817_v3  ;;  %v2843_v38 = vrot.slane %v2837_v55, 2  ;;  %v2855_v54 = vadd.f32 %v6459_v12, %v2854_v23  ;;  %v2856_v14 = vadd.f32 %v6465_v58, %v2854_v23  ;;  %3781 = vperm.xlu0 %4486, %v3731_v40   ;;  %v3736_v63 = vld [vmem:[%s7287_s9 + $0x68] sm:$0xff] }
 0x1fd   :  { %v2844_v48 = vrot.slane %v2838_v47, 2  ;;  %v2846_v62 = vrot.slane %v2839_v7, 2  ;;  %v6851_v36 = vadd.f32 %v6459_v12, %v6798_v0  ;;  %v6855_v39 = vadd.f32 %v6465_v58, %v6798_v0 }
 0x1fe   :  { %v6863_v10 = vmin.f32 %v2771_v28, %v2830_v11  ;;  %v6868_v31 = vmin.f32 %v2772_v53, %v2832_v21  ;;  %v6871_v18 = vadd.f32 %v6502_v50, %v2854_v23  ;;  %v6874_v13 = vadd.f32 %v6510_v19, %v2854_v23 }
 0x1ff   :  { %v2845_v24 = vsel %vm233_vm1, %v2843_v38, %v2844_v48  ;;  %v2847_v29 = vsel %vm233_vm1, %v2844_v48, %v2846_v62  ;;  %v2857_v59 = vmin.f32 %v2804_v1, %v2855_v54  ;;  %v2858_v23 = vmin.f32 %v6832_v9, %v2856_v14  ;;  %3786 = vperm.xlu1 %4487, %v3732_v30   ;;  %v3738_v14 = vld [vmem:[%s7287_s9 + $0x78] sm:$0xff] }
 0x200   :  { %v6885_v28 = vmax.f32 %v2786_v8, %v2845_v24  ;;  %v6887_v53 = vmax.f32 %v2787_v15, %v2847_v29  ;;  %v2862_v22 = vmax.f32 %v6834_v6, %v6851_v36  ;;  %v2863_v42 = vmax.f32 %v6845_v27, %v6855_v39  ;;  %3791 = vperm.xlu0 %4486, %v3733_v57  }
 0x201   :  { %v2868_v45 = vadd.f32 %v6502_v50, %v6798_v0  ;;  %v6898_v35 = vadd.f32 %v6510_v19, %v6798_v0  ;;  %v2874_v4 = vstv %s6827_s15  ;;  %v2866_v49 = vmin.f32 %v6863_v10, %v6871_v18  ;;  %v3735_v0 = vld [vmem:[%s7287_s9 + $0x60] sm:$0xff]  ;;  %s6961_s9 = sld [smem:[#allocation4 + $0x3a]]  ;;  %s7002_s15 = sld [smem:[#allocation4 + $0x3b]] }
 0x202   :  { %v2867_v20 = vmin.f32 %v6868_v31, %v6874_v13  ;;  %v2875_v32 = vadd.f32 %v6502_v50, %v2874_v4  ;;  %v2879_v16 = vstv %s6837_s18  ;;  %v2876_v46 = vadd.f32 %v6510_v19, %v2874_v4 }
 0x203   :  { %v2880_v60 = vadd.f32 %v6502_v50, %v2879_v16  ;;  %v2884_v52 = vadd.f32 %v6459_v12, %v2874_v4  ;;  %v2885_v51 = vadd.f32 %v6465_v58, %v2874_v4  ;;  %v2870_v33 = vmax.f32 %v6885_v28, %v2868_v45  ;;  %3796 = vperm.xlu1 %4487, %v3734_v17  }
 0x204   :  { %v2871_v56 = vmax.f32 %v6887_v53, %v6898_v35  ;;  %v6920_v61 = vmin.f32 %v2857_v59, %v2875_v32  ;;  %v2881_v43 = vadd.f32 %v6510_v19, %v2879_v16  ;;  %v2886_v26 = vadd.f32 %v6314_v34, %v2874_v4  ;;  %3801 = vperm.xlu0 %4486, %v3735_v0  }
 0x205   :  { %v2890_v8 = vrot.slane %v2884_v52, 1  ;;  %v2891_v44 = vrot.slane %v2885_v51, 1  ;;  %v2899_v2 = vadd.f32 %v6459_v12, %v2879_v16  ;;  %v2900_v15 = vadd.f32 %v6465_v58, %v2879_v16 }
 0x206   :  { %v2901_v41 = vadd.f32 %v6314_v34, %v2879_v16  ;;  %v2916_v3 = vstv %s6876_s2  ;;  %v2932_v5 = vstv %s6878_s3  ;;  %v6935_v1 = vmin.f32 %v2858_v23, %v2876_v46 }
 0x207   :  { %v2893_v9 = vrot.slane %v2886_v26, 1  ;;  %v2905_v6 = vrot.slane %v2899_v2, 1  ;;  %v2917_v55 = vadd.f32 %v6459_v12, %v2916_v3  ;;  %v2892_v40 = vsel %vm104_vm0, %v2890_v8, %v2891_v44  ;;  %3806 = vperm.xlu1 %4487, %v3736_v63  }
 0x208   :  { %v2906_v11 = vrot.slane %v2900_v15, 1  ;;  %v2908_v21 = vrot.slane %v2901_v41, 1  ;;  %v2918_v47 = vadd.f32 %v6465_v58, %v2916_v3  ;;  %v2919_v27 = vadd.f32 %v6314_v34, %v2916_v3  ;;  %3811 = vperm.xlu0 %4486, %v3737_v37  }
 0x209   :  { %v2894_v7 = vsel %vm104_vm0, %v2891_v44, %v2893_v9  ;;  %v2923_v38 = vrot.slane %v2917_v55, 1  ;;  %v2933_v54 = vadd.f32 %v6459_v12, %v2932_v5  ;;  %v6946_v48 = vmax.f32 %v2862_v22, %v2880_v60 }
 0x20a   :  { %v6948_v62 = vmax.f32 %v2863_v42, %v2881_v43  ;;  %v2907_v36 = vsel %vm104_vm0, %v2905_v6, %v2906_v11  ;;  %v2924_v39 = vrot.slane %v2918_v47, 1  ;;  %v6953_v30 = vmin.f32 %v2866_v49, %v2892_v40 }
 0x20b   :  { %v6955_v10 = vmin.f32 %v2867_v20, %v2894_v7  ;;  %v2926_v31 = vrot.slane %v2919_v27, 1  ;;  %v2934_v18 = vadd.f32 %v6465_v58, %v2932_v5  ;;  %v2909_v13 = vsel %vm104_vm0, %v2906_v11, %v2908_v21  ;;  %3816 = vperm.xlu1 %4487, %v3738_v14   ;;  %v4522_v27 = vld [vmem:[%s7278_s0 + $0x28] sm:$0x3] }
 0x20c   :  { %v2935_v57 = vadd.f32 %v6314_v34, %v2932_v5  ;;  %v2939_v24 = vrot.slane %v2933_v54, 1  ;;  %v2948_v29 = vadd.f32 %v6502_v50, %v2916_v3  ;;  %v6963_v59 = vmax.f32 %v2870_v33, %v2907_v36 }
 0x20d   :  { %v2925_v28 = vsel %vm104_vm0, %v2923_v38, %v2924_v39  ;;  %v2940_v53 = vrot.slane %v2934_v18, 1  ;;  %v2949_v23 = vadd.f32 %v6510_v19, %v2916_v3  ;;  %v2927_v22 = vsel %vm104_vm0, %v2924_v39, %v2926_v31 }
 0x20e   :  { %v2942_v42 = vrot.slane %v2935_v57, 1  ;;  %v2950_v45 = vadd.f32 %v6361_v25, %v2916_v3  ;;  %v2954_v35 = vrot.slane %v2948_v29, 1  ;;  %v2963_v17 = vadd.f32 %v6502_v50, %v2932_v5 }
 0x20f   :  { %v2941_v34 = vsel %vm104_vm0, %v2939_v24, %v2940_v53  ;;  %v2955_v4 = vrot.slane %v2949_v23, 1  ;;  %v2964_v49 = vadd.f32 %v6510_v19, %v2932_v5  ;;  %v6972_v20 = vmax.f32 %v2871_v56, %v2909_v13 }
 0x210   :  { %v2943_v32 = vsel %vm104_vm0, %v2940_v53, %v2942_v42  ;;  %v2957_v16 = vrot.slane %v2950_v45, 1  ;;  %v2965_v0 = vadd.f32 %v6361_v25, %v2932_v5  ;;  %v2930_v46 = vmin.f32 %v6920_v61, %v2925_v28  ;;  %v3112_v28 = vld [vmem:[%s7282_s4] sm:$0xff] }
 0x211   :  { %v6978_v60 = vsel %vm104_vm0, %v2954_v35, %v2955_v4  ;;  %v2969_v52 = vrot.slane %v2963_v17, 1  ;;  %v2970_v51 = vrot.slane %v2964_v49, 1  ;;  %v2931_v33 = vmin.f32 %v6935_v1, %v2927_v22  ;;  %4243 = vmatprep.mubr.msk.f32.mxu0 %vm3224_vm2, %v3112_v28  ;;  %v3113_v28 = vld [vmem:[%s7282_s4 + $0x8] sm:$0xff] }
 0x212   :  { %v2946_v43 = vmax.f32 %v6946_v48, %v2941_v34  ;;  %v2972_v26 = vrot.slane %v2965_v0, 1  ;;  %v2980_v56 = vstv %s6951_s13  ;;  %v2947_v8 = vmax.f32 %v6948_v62, %v2943_v32 }
 0x213   :  { %v6985_v44 = vsel %vm104_vm0, %v2955_v4, %v2957_v16  ;;  %v2981_v2 = vadd.f32 %v6502_v50, %v2980_v56  ;;  %v2982_v61 = vadd.f32 %v6510_v19, %v2980_v56  ;;  %v2961_v63 = vmin.f32 %v6953_v30, %v6978_v60 }
 0x214   :  { %v6992_v15 = vsel %vm104_vm0, %v2969_v52, %v2970_v51  ;;  %v2983_v41 = vadd.f32 %v6361_v25, %v2980_v56  ;;  %v2996_v3 = vstv %s6961_s9  ;;  %v6997_v5 = vsel %vm104_vm0, %v2970_v51, %v2972_v26 }
 0x215   :  { %v2987_v37 = vrot.slane %v2981_v2, 1  ;;  %v2988_v1 = vrot.slane %v2982_v61, 1  ;;  %v2997_v9 = vadd.f32 %v6502_v50, %v2996_v3  ;;  %v2998_v55 = vadd.f32 %v6510_v19, %v2996_v3 }
 0x216   :  { %v2990_v6 = vrot.slane %v2983_v41, 1  ;;  %v2999_v40 = vadd.f32 %v6361_v25, %v2996_v3  ;;  %v3012_v11 = vadd.f32 %v6459_v12, %v2980_v56  ;;  %v2962_v21 = vmin.f32 %v6955_v10, %v6985_v44  ;;  %v4523_v41 = vld [vmem:[%s7279_s1 + $0x28] sm:$0x3] }
 0x217   :  { %v3003_v47 = vrot.slane %v2997_v9, 1  ;;  %v3013_v7 = vadd.f32 %v6465_v58, %v2980_v56  ;;  %v3014_v38 = vadd.f32 %v4522_v27, %v2980_v56  ;;  %v2989_v54 = vsel %vm104_vm0, %v2987_v37, %v2988_v1 }
 0x218   :  { %v2991_v14 = vsel %vm104_vm0, %v2988_v1, %v2990_v6  ;;  %v3004_v48 = vrot.slane %v2998_v55, 1  ;;  %v3006_v62 = vrot.slane %v2999_v40, 1  ;;  %v2976_v25 = vmax.f32 %v6963_v59, %v6992_v15 }
 0x219   :  { %v2977_v36 = vmax.f32 %v6972_v20, %v6997_v5  ;;  %v3018_v39 = vrot.slane %v3012_v11, 2  ;;  %v3019_v30 = vrot.slane %v3013_v7, 2  ;;  %v3027_v18 = vadd.f32 %v6459_v12, %v2996_v3 }
 0x21a   :  { %v3005_v10 = vsel %vm104_vm0, %v3003_v47, %v3004_v48  ;;  %v3007_v31 = vsel %vm104_vm0, %v3004_v48, %v3006_v62  ;;  %v3028_v13 = vadd.f32 %v6465_v58, %v2996_v3  ;;  %v7023_v57 = vmin.f32 %v2930_v46, %v2989_v54 }
 0x21b   :  { %v7025_v24 = vmin.f32 %v2931_v33, %v2991_v14  ;;  %v3010_v29 = vmax.f32 %v2946_v43, %v3005_v10  ;;  %v3021_v59 = vrot.slane %v3014_v38, 2  ;;  %v3011_v53 = vmax.f32 %v2947_v8, %v3007_v31 }
 0x21c   :  { %v3020_v23 = vsel %vm233_vm1, %v3018_v39, %v3019_v30  ;;  %v3029_v22 = vadd.f32 %v4522_v27, %v2996_v3  ;;  %v3033_v42 = vrot.slane %v3027_v18, 2  ;;  %v3034_v45 = vrot.slane %v3028_v13, 2 }
 0x21d   :  { %v3044_v35 = vstv %s7000_s14  ;;  %v3060_v34 = vstv %s7002_s15  ;;  %v3022_v32 = vsel %vm233_vm1, %v3019_v30, %v3021_v59  ;;  %v3025_v60 = vmin.f32 %v2961_v63, %v3020_v23  ;;  %v3115_v23 = vld [vmem:[%s7282_s4 + $0x18] sm:$0xff] }
 0x21e   :  { %v3036_v4 = vrot.slane %v3029_v22, 2  ;;  %v3045_v17 = vadd.f32 %v6459_v12, %v3044_v35  ;;  %v3046_v49 = vadd.f32 %v6465_v58, %v3044_v35  ;;  %v3047_v20 = vadd.f32 %v4522_v27, %v3044_v35  ;;  %v3116_v22 = vld [vmem:[%s7282_s4 + $0x20] sm:$0xff] }
 0x21f   :  { %v3061_v16 = vadd.f32 %v6459_v12, %v3060_v34  ;;  %v3062_v0 = vadd.f32 %v6465_v58, %v3060_v34  ;;  %v3063_v46 = vadd.f32 %v4522_v27, %v3060_v34  ;;  %v3035_v52 = vsel %vm233_vm1, %v3033_v42, %v3034_v45  ;;  %v3117_v42 = vld [vmem:[%s7282_s4 + $0x28] sm:$0xff] }
 0x220   :  { %v3051_v51 = vrot.slane %v3045_v17, 2  ;;  %v3052_v33 = vrot.slane %v3046_v49, 2  ;;  %v3037_v43 = vsel %vm233_vm1, %v3034_v45, %v3036_v4  ;;  %v3054_v26 = vrot.slane %v3047_v20, 2  ;;  %v3118_v45 = vld [vmem:[%s7282_s4 + $0x30] sm:$0xff]  ;;  %v3121_v4 = vld [vmem:[%s7282_s4 + $0x48] sm:$0xff]  ;;  %v3123_v49 = vld [vmem:[%s7282_s4 + $0x58] sm:$0xff] }
 0x221   :  { %v3067_v56 = vrot.slane %v3061_v16, 2  ;;  %v3068_v8 = vrot.slane %v3062_v0, 2  ;;  %v3070_v2 = vrot.slane %v3063_v46, 2  ;;  %v3076_v61 = vadd.f32 %v6502_v50, %v3044_v35  ;;  %v3122_v17 = vld [vmem:[%s7282_s4 + $0x50] sm:$0xff]  ;;  %v3124_v20 = vld [vmem:[%s7282_s4 + $0x60] sm:$0xff]  ;;  %v3127_v0 = vld [vmem:[%s7282_s4 + $0x78] sm:$0xff] }
 0x222   :  { %v3053_v44 = vsel %vm233_vm1, %v3051_v51, %v3052_v33  ;;  %v3077_v12 = vadd.f32 %v6510_v19, %v3044_v35  ;;  %v3026_v15 = vmin.f32 %v2962_v21, %v3022_v32  ;;  %v3055_v58 = vsel %vm233_vm1, %v3052_v33, %v3054_v26  ;;  %v3125_v32 = vld [vmem:[%s7282_s4 + $0x68] sm:$0xff]  ;;  %v3126_v16 = vld [vmem:[%s7282_s4 + $0x70] sm:$0xff]  ;;  %v3434_v46 = vld [vmem:[%s7284_s6] sm:$0xff] }
 0x223   :  { %v3069_v63 = vsel %vm233_vm1, %v3067_v56, %v3068_v8  ;;  %v3078_v3 = vadd.f32 %v4523_v41, %v3044_v35  ;;  %v3040_v5 = vmax.f32 %v2976_v25, %v3035_v52  ;;  %v3041_v37 = vmax.f32 %v2977_v36, %v3037_v43  ;;  %v3119_v35 = vld [vmem:[%s7282_s4 + $0x38] sm:$0xff]  ;;  %4299 = vmatprep.mubr.f32.mxu1 %v3434_v46  ;;  %v3147_v52 = vpop.permute.xlu0 %3146 }
 0x224   :  { %v3071_v1 = vsel %vm233_vm1, %v3068_v8, %v3070_v2  ;;  %v3082_v9 = vrot.slane %v3076_v61, 2  ;;  %v3058_v6 = vmin.f32 %v7023_v57, %v3053_v44  ;;  %v3083_v55 = vrot.slane %v3077_v12, 2 }
 0x225   :  { %v3085_v40 = vrot.slane %v3078_v3, 2  ;;  %v3091_v11 = vadd.f32 %v6502_v50, %v3060_v34  ;;  %v3059_v21 = vmin.f32 %v7025_v24, %v3055_v58  ;;  %v3074_v47 = vmax.f32 %v3010_v29, %v3069_v63 }
 0x226   :  { %v3092_v7 = vadd.f32 %v6510_v19, %v3060_v34  ;;  %v3093_v27 = vadd.f32 %v4523_v41, %v3060_v34  ;;  %v3075_v38 = vmax.f32 %v3011_v53, %v3071_v1  ;;  %v3084_v54 = vsel %vm233_vm1, %v3082_v9, %v3083_v55  ;;  %v3114_v53 = vld [vmem:[%s7282_s4 + $0x10] sm:$0xff]  ;;  %v3120_v34 = vld [vmem:[%s7282_s4 + $0x40] sm:$0xff] }
 0x227   :  { %v3086_v14 = vsel %vm233_vm1, %v3083_v55, %v3085_v40  ;;  %v3097_v48 = vrot.slane %v3091_v11, 2  ;;  %v3089_v36 = vmin.f32 %v3025_v60, %v3084_v54  ;;  %v3106_v18 = vadd.f32 %v3074_v47, %v3058_v6  ;;  %v3157_v60 = vpop.permute.xlu1 %3156  ;;  %v3152_v33 = vpop.permute.xlu0 %3151 }
 0x228   :  { %v3098_v62 = vrot.slane %v3092_v7, 2  ;;  %v3100_v25 = vrot.slane %v3093_v27, 2  ;;  %v3090_v39 = vmin.f32 %v3026_v15, %v3086_v14  ;;  %v3107_v13 = vadd.f32 %v3075_v38, %v3059_v21 }
 0x22a   :  { %v3099_v30 = vsel %vm233_vm1, %v3097_v48, %v3098_v62  ;;  %v3101_v50 = vsel %vm233_vm1, %v3098_v62, %v3100_v25 }
 0x22b   :  { %v3104_v10 = vmax.f32 %v3040_v5, %v3099_v30  ;;  %v3105_v31 = vmax.f32 %v3041_v37, %v3101_v50  ;;  %v3162_v51 = vpop.permute.xlu1 %3161  ;;  %v3167_v26 = vpop.permute.xlu0 %3166 }
 0x22d   :  { %v3108_v19 = vadd.f32 %v3104_v10, %v3089_v36  ;;  %v3109_v57 = vadd.f32 %v3105_v31, %v3090_v39 }
 0x22f   :  { %v3110_v24 = vadd.f32 %v3108_v19, %v3106_v18  ;;  %v3111_v29 = vadd.f32 %v3109_v57, %v3107_v13  ;;  %v3172_v43 = vpop.permute.xlu1 %3171  ;;  %v3177_v63 = vpop.permute.xlu0 %3176 }
 0x231   :  { %v4399_v59 = vpack.c.bf16 %v3111_v29, %v3110_v24 }
 0x233   :  { %4400 = vmatprep.subr.bf16.mxu0 %v4399_v59 }
 0x234   :  { %4402 = vmatpush3.bf16.msra.mxu0 %v4399_v59  ;;  %v3187_v7 = vpop.permute.xlu0 %3186 }
 0x237   :  { %4244 = vmatmul.mubr.msk.f32.vlgmr.msra.gmra.mrb[0].mxu0 %vm3224_vm2, %v3113_v28 }
 0x238   :  { %4246 = vmatprep.mubr.msk.f32.mxu0 %vm3224_vm2, %v3114_v53  ;;  %v3197_v10 = vpop.permute.xlu0 %3196 }
 0x23a   :  { %v3182_v12 = vpop.permute.xlu1 %3181 }
 0x23b   :  { %4247 = vmatmul.mubr.msk.f32.gmra.mrb[2].mxu0 %vm3224_vm2, %v3115_v23 }
 0x23c   :  { %4249 = vmatprep.mubr.msk.f32.mxu0 %vm3224_vm2, %v3116_v22 }
 0x23e   :  { %v3192_v11 = vpop.permute.xlu1 %3191 }
 0x23f   :  { %4250 = vmatmul.mubr.msk.f32.gmra.mrb[4].mxu0 %vm3224_vm2, %v3117_v42 }
 0x240   :  { %4252 = vmatprep.mubr.msk.f32.mxu0 %vm3224_vm2, %v3118_v45 }
 0x241   :  { %v3207_v42 = vpop.permute.xlu0 %3206 }
 0x242   :  { %v3202_v39 = vpop.permute.xlu1 %3201 }
 0x243   :  { %4253 = vmatmul.mubr.msk.f32.gmra.mrb[6].mxu0 %vm3224_vm2, %v3119_v35 }
 0x244   :  { %4255 = vmatprep.mubr.msk.f32.mxu0 %vm3224_vm2, %v3120_v34 }
 0x246   :  { %v3212_v53 = vpop.permute.xlu1 %3211 }
 0x247   :  { %4256 = vmatmul.mubr.msk.f32.gmra.mrb[8].mxu0 %vm3224_vm2, %v3121_v4 }
 0x248   :  { %4258 = vmatprep.mubr.msk.f32.mxu0 %vm3224_vm2, %v3122_v17 }
 0x24b   :  { %4259 = vmatmul.mubr.msk.f32.gmra.mrb[10].mxu0 %vm3224_vm2, %v3123_v49 }
 0x24c   :  { %4261 = vmatprep.mubr.msk.f32.mxu0 %vm3224_vm2, %v3124_v20 }
 0x24f   :  { %4262 = vmatmul.mubr.msk.f32.gmra.mrb[12].mxu0 %vm3224_vm2, %v3125_v32 }
 0x250   :  { %4264 = vmatprep.mubr.msk.f32.mxu0 %vm3224_vm2, %v3126_v16  ;;  %v3222_v16 = vpop.permute.xlu1 %3221 }
 0x253   :  { %4265 = vmatmul.mubr.msk.f32.gmra.mrb[14].mxu0 %vm3224_vm2, %v3127_v0 }
 0x30a   :  { %v4245_v56 = vpop.f32.mrb[0].mxu0 }
 0x30b   :  { %v3345_v8 = vadd.f32 %v4245_v56, %v3152_v33  ;;  %v3339_v44 = vpop.f32.mrb[1].mxu0 }
 0x30c   :  { %v3340_v2 = vadd.f32 %v3339_v44, %v3147_v52  ;;  %v3435_v44 = vld [vmem:[%s7284_s6 + $0x8] sm:$0xff] }
 0x30d   :  { %v3419_v61 = vmax.f32 %v3345_v8, 0.0 }
 0x30e   :  { %v3418_v15 = vmax.f32 %v3340_v2, 0.0  ;;  %v4248_v58 = vpop.f32.mrb[2].mxu0  ;;  %v3436_v2 = vld [vmem:[%s7284_s6 + $0x10] sm:$0xff] }
 0x30f   :  { %v3355_v41 = vadd.f32 %v4248_v58, %v3162_v51  ;;  %v3349_v3 = vpop.f32.mrb[3].mxu0  ;;  %v3440_v58 = vld [vmem:[%s7284_s6 + $0x30] sm:$0xff] }
 0x310   :  { %v3350_v5 = vadd.f32 %v3349_v3, %v3157_v60  ;;  %v4403_v37 = vpack.c.bf16 %v3419_v61, %v3418_v15  ;;  %v3217_v60 = vpop.permute.xlu0 %3216  ;;  %v3437_v61 = vld [vmem:[%s7284_s6 + $0x18] sm:$0xff]  ;;  %v3439_v15 = vld [vmem:[%s7284_s6 + $0x28] sm:$0xff] }
 0x311   :  { %v3421_v1 = vmax.f32 %v3355_v41, 0.0  ;;  %v3442_v41 = vld [vmem:[%s7284_s6 + $0x40] sm:$0xff]  ;;  %v3443_v3 = vld [vmem:[%s7284_s6 + $0x48] sm:$0xff] }
 0x312   :  { %v3420_v9 = vmax.f32 %v3350_v5, 0.0  ;;  %v4251_v6 = vpop.f32.mrb[4].mxu0  ;;  %4404 = vmatprep.subr.bf16.mxu1 %v4403_v37  ;;  %v3444_v5 = vld [vmem:[%s7284_s6 + $0x50] sm:$0xff] }
 0x313   :  { %v3365_v55 = vadd.f32 %v4251_v6, %v3172_v43  ;;  %v3359_v40 = vpop.f32.mrb[5].mxu0  ;;  %4406 = vmatpush3.bf16.msra.mxu1 %v4403_v37  ;;  %v3445_v37 = vld [vmem:[%s7284_s6 + $0x58] sm:$0xff]  ;;  %v3448_v6 = vld [vmem:[%s7284_s6 + $0x70] sm:$0xff] }
 0x314   :  { %v4407_v21 = vpack.c.bf16 %v3421_v1, %v3420_v9  ;;  %v3360_v47 = vadd.f32 %v3359_v40, %v3167_v26  ;;  %v3446_v1 = vld [vmem:[%s7284_s6 + $0x60] sm:$0xff]  ;;  %v3447_v9 = vld [vmem:[%s7284_s6 + $0x68] sm:$0xff] }
 0x315   :  { %v3423_v27 = vmax.f32 %v3365_v55, 0.0  ;;  %v3449_v55 = vld [vmem:[%s7284_s6 + $0x78] sm:$0xff]  ;;  %v3707_v40 = vld [vmem:[%s7286_s8] sm:$0xff] }
 0x316   :  { %v3422_v38 = vmax.f32 %v3360_v47, 0.0  ;;  %v4254_v54 = vpop.f32.mrb[6].mxu0  ;;  %4408 = vmatprep.subr.bf16.mxu1 %v4407_v21  ;;  %4355 = vmatprep.mubr.f32.mxu0 %v3707_v40  ;;  %v3469_v47 = vpop.permute.xlu0 %3468 }
 0x317   :  { %v3375_v14 = vadd.f32 %v4254_v54, %v3182_v12  ;;  %v3369_v48 = vpop.f32.mrb[7].mxu0  ;;  %4410 = vmatpush3.bf16.msra.mxu1 %v4407_v21  ;;  %v3438_v12 = vld [vmem:[%s7284_s6 + $0x20] sm:$0xff]  ;;  %v3474_v21 = vpop.permute.xlu1 %3473 }
 0x318   :  { %v4411_v62 = vpack.c.bf16 %v3423_v27, %v3422_v38  ;;  %v3370_v25 = vadd.f32 %v3369_v48, %v3177_v63  ;;  %v3441_v63 = vld [vmem:[%s7284_s6 + $0x38] sm:$0xff] }
 0x319   :  { %v3425_v36 = vmax.f32 %v3375_v14, 0.0 }
 0x31a   :  { %v3424_v30 = vmax.f32 %v3370_v25, 0.0  ;;  %v4257_v50 = vpop.f32.mrb[8].mxu0  ;;  %4412 = vmatprep.subr.bf16.mxu1 %v4411_v62  ;;  %v3479_v27 = vpop.permute.xlu0 %3478 }
 0x31b   :  { %v3385_v31 = vadd.f32 %v4257_v50, %v3192_v11  ;;  %v3379_v18 = vpop.f32.mrb[9].mxu0  ;;  %4414 = vmatpush3.bf16.msra.mxu1 %v4411_v62  ;;  %v3717_v11 = vld [vmem:[%s7286_s8 + $0x50] sm:$0xff] }
 0x31c   :  { %v4415_v13 = vpack.c.bf16 %v3425_v36, %v3424_v30  ;;  %v3380_v19 = vadd.f32 %v3379_v18, %v3187_v7  ;;  %v3484_v7 = vpop.permute.xlu1 %3483 }
 0x31d   :  { %v3427_v57 = vmax.f32 %v3385_v31, 0.0 }
 0x31e   :  { %v3426_v24 = vmax.f32 %v3380_v19, 0.0  ;;  %v4260_v29 = vpop.f32.mrb[10].mxu0  ;;  %4416 = vmatprep.subr.bf16.mxu1 %v4415_v13  ;;  %v3489_v54 = vpop.permute.xlu0 %3488 }
 0x31f   :  { %v3395_v59 = vadd.f32 %v4260_v29, %v3202_v39  ;;  %v3389_v28 = vpop.f32.mrb[11].mxu0  ;;  %4418 = vmatpush3.bf16.msra.mxu1 %v4415_v13 }
 0x320   :  { %v4419_v23 = vpack.c.bf16 %v3427_v57, %v3426_v24  ;;  %v3390_v22 = vadd.f32 %v3389_v28, %v3197_v10  ;;  %v3494_v38 = vpop.permute.xlu1 %3493 }
 0x321   :  { %v3429_v45 = vmax.f32 %v3395_v59, 0.0 }
 0x322   :  { %v3428_v35 = vmax.f32 %v3390_v22, 0.0  ;;  %v4263_v34 = vpop.f32.mrb[12].mxu0  ;;  %4420 = vmatprep.subr.bf16.mxu1 %v4419_v23  ;;  %v3499_v10 = vpop.permute.xlu0 %3498 }
 0x323   :  { %v3405_v4 = vadd.f32 %v4263_v34, %v3212_v53  ;;  %v3399_v17 = vpop.f32.mrb[13].mxu0  ;;  %4422 = vmatpush3.bf16.msra.mxu1 %v4419_v23 }
 0x324   :  { %v4423_v49 = vpack.c.bf16 %v3429_v45, %v3428_v35  ;;  %v3400_v20 = vadd.f32 %v3399_v17, %v3207_v42  ;;  %v3504_v39 = vpop.permute.xlu1 %3503 }
 0x325   :  { %v3431_v32 = vmax.f32 %v3405_v4, 0.0 }
 0x326   :  { %v3430_v0 = vmax.f32 %v3400_v20, 0.0  ;;  %v4266_v46 = vpop.f32.mrb[14].mxu0  ;;  %4424 = vmatprep.subr.bf16.mxu1 %v4423_v49  ;;  %v3509_v42 = vpop.permute.xlu0 %3508 }
 0x327   :  { %v3415_v52 = vadd.f32 %v4266_v46, %v3222_v16  ;;  %v3409_v51 = vpop.f32.mrb[15].mxu0  ;;  %4426 = vmatpush3.bf16.msra.mxu1 %v4423_v49 }
 0x328   :  { %v4427_v33 = vpack.c.bf16 %v3431_v32, %v3430_v0  ;;  %v3410_v43 = vadd.f32 %v3409_v51, %v3217_v60  ;;  %v3514_v53 = vpop.permute.xlu1 %3513 }
 0x329   :  { %v3433_v26 = vmax.f32 %v3415_v52, 0.0 }
 0x32a   :  { %v3432_v56 = vmax.f32 %v3410_v43, 0.0  ;;  %4428 = vmatprep.subr.bf16.mxu1 %v4427_v33  ;;  %v3519_v60 = vpop.permute.xlu0 %3518 }
 0x32b   :  { %4430 = vmatpush3.bf16.msra.mxu1 %v4427_v33 }
 0x32c   :  { %v4431_v8 = vpack.c.bf16 %v3433_v26, %v3432_v56  ;;  %v3524_v16 = vpop.permute.xlu1 %3523 }
 0x32e   :  { %4432 = vmatprep.subr.bf16.mxu1 %v4431_v8 }
 0x32f   :  { %4434 = vmatpush3.bf16.msra.mxu1 %v4431_v8 }
 0x332   :  { %4300 = vmatmul.mubr.f32.vlgmr.msra.gmra.mrb[0].mxu1 %v3435_v44 }
 0x333   :  { %4302 = vmatprep.mubr.f32.mxu1 %v3436_v2 }
 0x336   :  { %4303 = vmatmul.mubr.f32.gmra.mrb[2].mxu1 %v3437_v61  ;;  %v3534_v61 = vpop.permute.xlu1 %3533 }
 0x337   :  { %4305 = vmatprep.mubr.f32.mxu1 %v3438_v12 }
 0x33a   :  { %4306 = vmatmul.mubr.f32.gmra.mrb[4].mxu1 %v3439_v15 }
 0x33b   :  { %4308 = vmatprep.mubr.f32.mxu1 %v3440_v58  ;;  %v3529_v58 = vpop.permute.xlu0 %3528 }
 0x33e   :  { %4309 = vmatmul.mubr.f32.gmra.mrb[6].mxu1 %v3441_v63 }
 0x33f   :  { %4311 = vmatprep.mubr.f32.mxu1 %v3442_v41 }
 0x342   :  { %4312 = vmatmul.mubr.f32.gmra.mrb[8].mxu1 %v3443_v3 }
 0x343   :  { %4314 = vmatprep.mubr.f32.mxu1 %v3444_v5 }
 0x346   :  { %4315 = vmatmul.mubr.f32.gmra.mrb[10].mxu1 %v3445_v37 }
 0x347   :  { %4317 = vmatprep.mubr.f32.mxu1 %v3446_v1 }
 0x34a   :  { %4318 = vmatmul.mubr.f32.gmra.mrb[12].mxu1 %v3447_v9 }
 0x34b   :  { %4320 = vmatprep.mubr.f32.mxu1 %v3448_v6 }
 0x34e   :  { %4321 = vmatmul.mubr.f32.gmra.mrb[14].mxu1 %v3449_v55  ;;  %v3544_v55 = vpop.permute.xlu1 %3543 }
 0x34f   :  { %4370 = vmatprep.mubr.f32.mxu1 %v3717_v11 }
 0x405   :  { %v4301_v14 = vpop.f32.mrb[0].mxu1 }
 0x406   :  { %v3618_v48 = vadd.f32 %v4301_v14, %v3474_v21  ;;  %v3612_v62 = vpop.f32.mrb[1].mxu1  ;;  %v3539_v21 = vpop.permute.xlu0 %3538 }
 0x407   :  { %v3613_v25 = vadd.f32 %v3612_v62, %v3469_v47  ;;  %v3708_v62 = vld [vmem:[%s7286_s8 + $0x8] sm:$0xff] }
 0x408   :  { %v3692_v36 = vmax.f32 %v3618_v48, 0.0 }
 0x409   :  { %v3691_v30 = vmax.f32 %v3613_v25, 0.0  ;;  %v4304_v50 = vpop.f32.mrb[2].mxu1  ;;  %v3718_v25 = vld [vmem:[%s7286_s8 + $0x58] sm:$0xff] }
 0x40a   :  { %v3628_v31 = vadd.f32 %v4304_v50, %v3484_v7  ;;  %v3622_v18 = vpop.f32.mrb[3].mxu1  ;;  %v3720_v50 = vld [vmem:[%s7286_s8 + $0x68] sm:$0xff] }
 0x40b   :  { %v4435_v13 = vpack.c.bf16 %v3692_v36, %v3691_v30  ;;  %v3623_v19 = vadd.f32 %v3622_v18, %v3479_v27  ;;  %v3709_v36 = vld [vmem:[%s7286_s8 + $0x10] sm:$0xff]  ;;  %v3710_v30 = vld [vmem:[%s7286_s8 + $0x18] sm:$0xff]  ;;  %v3712_v18 = vld [vmem:[%s7286_s8 + $0x28] sm:$0xff] }
 0x40c   :  { %v3694_v57 = vmax.f32 %v3628_v31, 0.0  ;;  %v3721_v31 = vld [vmem:[%s7286_s8 + $0x70] sm:$0xff] }
 0x40d   :  { %v3693_v24 = vmax.f32 %v3623_v19, 0.0  ;;  %v4307_v29 = vpop.f32.mrb[4].mxu1  ;;  %4436 = vmatprep.subr.bf16.mxu0 %v4435_v13  ;;  %4467 = vmatprep.subr.bf16.mxu1 %v4435_v13  ;;  %v3713_v19 = vld [vmem:[%s7286_s8 + $0x30] sm:$0xff] }
 0x40e   :  { %v3638_v59 = vadd.f32 %v4307_v29, %v3494_v38  ;;  %v3632_v28 = vpop.f32.mrb[5].mxu1  ;;  %4438 = vmatpush3.bf16.msra.mxu0 %v4435_v13  ;;  %4475 = vmatpush3.bf16.msra.mxu1 %v4435_v13  ;;  %v3722_v13 = vld [vmem:[%s7286_s8 + $0x78] sm:$0xff]  ;;  %v3716_v29 = vld [vmem:[%s7286_s8 + $0x48] sm:$0xff] }
 0x40f   :  { %v4439_v23 = vpack.c.bf16 %v3694_v57, %v3693_v24  ;;  %v3633_v22 = vadd.f32 %v3632_v28, %v3489_v54  ;;  %v3714_v57 = vld [vmem:[%s7286_s8 + $0x38] sm:$0xff]  ;;  %v3715_v24 = vld [vmem:[%s7286_s8 + $0x40] sm:$0xff]  ;;  %v3747_v28 = vpop.permute.xlu1 %3746 }
 0x410   :  { %v3696_v45 = vmax.f32 %v3638_v59, 0.0  ;;  %v3742_v59 = vpop.permute.xlu0 %3741 }
 0x411   :  { %v3695_v35 = vmax.f32 %v3633_v22, 0.0  ;;  %v4310_v34 = vpop.f32.mrb[6].mxu1  ;;  %4440 = vmatprep.subr.bf16.mxu0 %v4439_v23  ;;  %4468 = vmatprep.subr.bf16.mxu1 %v4439_v23 }
 0x412   :  { %v3648_v4 = vadd.f32 %v4310_v34, %v3504_v39  ;;  %v3642_v17 = vpop.f32.mrb[7].mxu1  ;;  %4442 = vmatpush3.bf16.msra.mxu0 %v4439_v23  ;;  %4476 = vmatpush3.bf16.msra.mxu1 %v4439_v23  ;;  %v3719_v39 = vld [vmem:[%s7286_s8 + $0x60] sm:$0xff] }
 0x413   :  { %v4443_v49 = vpack.c.bf16 %v3696_v45, %v3695_v35  ;;  %v3643_v20 = vadd.f32 %v3642_v17, %v3499_v10  ;;  %v3711_v10 = vld [vmem:[%s7286_s8 + $0x20] sm:$0xff]  ;;  %v3757_v23 = vpop.permute.xlu1 %3756 }
 0x414   :  { %v3698_v32 = vmax.f32 %v3648_v4, 0.0 }
 0x415   :  { %v3697_v0 = vmax.f32 %v3643_v20, 0.0  ;;  %v4313_v46 = vpop.f32.mrb[8].mxu1  ;;  %4444 = vmatprep.subr.bf16.mxu0 %v4443_v49  ;;  %4469 = vmatprep.subr.bf16.mxu1 %v4443_v49 }
 0x416   :  { %v3658_v52 = vadd.f32 %v4313_v46, %v3514_v53  ;;  %v3652_v51 = vpop.f32.mrb[9].mxu1  ;;  %4446 = vmatpush3.bf16.msra.mxu0 %v4443_v49  ;;  %4477 = vmatpush3.bf16.msra.mxu1 %v4443_v49  ;;  %v3752_v53 = vpop.permute.xlu0 %3751 }
 0x417   :  { %v4447_v33 = vpack.c.bf16 %v3698_v32, %v3697_v0  ;;  %v3653_v43 = vadd.f32 %v3652_v51, %v3509_v42  ;;  %v3767_v42 = vpop.permute.xlu1 %3766 }
 0x418   :  { %v3700_v26 = vmax.f32 %v3658_v52, 0.0 }
 0x419   :  { %v3699_v56 = vmax.f32 %v3653_v43, 0.0  ;;  %v4316_v8 = vpop.f32.mrb[10].mxu1  ;;  %4448 = vmatprep.subr.bf16.mxu0 %v4447_v33  ;;  %4470 = vmatprep.subr.bf16.mxu1 %v4447_v33 }
 0x41a   :  { %v3668_v44 = vadd.f32 %v4316_v8, %v3524_v16  ;;  %v3662_v2 = vpop.f32.mrb[11].mxu1  ;;  %4450 = vmatpush3.bf16.msra.mxu0 %v4447_v33  ;;  %4478 = vmatpush3.bf16.msra.mxu1 %v4447_v33  ;;  %v3762_v22 = vpop.permute.xlu0 %3761 }
 0x41b   :  { %v4451_v12 = vpack.c.bf16 %v3700_v26, %v3699_v56  ;;  %v3663_v15 = vadd.f32 %v3662_v2, %v3519_v60  ;;  %v3777_v35 = vpop.permute.xlu1 %3776 }
 0x41c   :  { %v3702_v63 = vmax.f32 %v3668_v44, 0.0 }
 0x41d   :  { %v3701_v41 = vmax.f32 %v3663_v15, 0.0  ;;  %v4319_v3 = vpop.f32.mrb[12].mxu1  ;;  %4452 = vmatprep.subr.bf16.mxu0 %v4451_v12  ;;  %4471 = vmatprep.subr.bf16.mxu1 %v4451_v12 }
 0x41e   :  { %v3678_v5 = vadd.f32 %v4319_v3, %v3534_v61  ;;  %v3672_v37 = vpop.f32.mrb[13].mxu1  ;;  %4454 = vmatpush3.bf16.msra.mxu0 %v4451_v12  ;;  %4479 = vmatpush3.bf16.msra.mxu1 %v4451_v12  ;;  %v3772_v45 = vpop.permute.xlu0 %3771 }
 0x41f   :  { %v4455_v1 = vpack.c.bf16 %v3702_v63, %v3701_v41  ;;  %v3673_v9 = vadd.f32 %v3672_v37, %v3529_v58  ;;  %v3787_v4 = vpop.permute.xlu1 %3786 }
 0x420   :  { %v3704_v6 = vmax.f32 %v3678_v5, 0.0 }
 0x421   :  { %v3703_v40 = vmax.f32 %v3673_v9, 0.0  ;;  %v4322_v11 = vpop.f32.mrb[14].mxu1  ;;  %4456 = vmatprep.subr.bf16.mxu0 %v4455_v1  ;;  %4472 = vmatprep.subr.bf16.mxu1 %v4455_v1 }
 0x422   :  { %v3688_v47 = vadd.f32 %v4322_v11, %v3544_v55  ;;  %v3682_v7 = vpop.f32.mrb[15].mxu1  ;;  %4458 = vmatpush3.bf16.msra.mxu0 %v4455_v1  ;;  %4480 = vmatpush3.bf16.msra.mxu1 %v4455_v1  ;;  %v3782_v34 = vpop.permute.xlu0 %3781 }
 0x423   :  { %v4459_v27 = vpack.c.bf16 %v3704_v6, %v3703_v40  ;;  %v3683_v38 = vadd.f32 %v3682_v7, %v3539_v21  ;;  %v3797_v49 = vpop.permute.xlu1 %3796 }
 0x424   :  { %v3706_v54 = vmax.f32 %v3688_v47, 0.0 }
 0x425   :  { %v3705_v14 = vmax.f32 %v3683_v38, 0.0  ;;  %4460 = vmatprep.subr.bf16.mxu0 %v4459_v27  ;;  %4473 = vmatprep.subr.bf16.mxu1 %v4459_v27 }
 0x426   :  { %4462 = vmatpush3.bf16.msra.mxu0 %v4459_v27  ;;  %4481 = vmatpush3.bf16.msra.mxu1 %v4459_v27  ;;  %v3792_v17 = vpop.permute.xlu0 %3791 }
 0x427   :  { %v4463_v48 = vpack.c.bf16 %v3706_v54, %v3705_v14  ;;  %v3807_v32 = vpop.permute.xlu1 %3806 }
 0x429   :  { %4464 = vmatprep.subr.bf16.mxu0 %v4463_v48  ;;  %4474 = vmatprep.subr.bf16.mxu1 %v4463_v48 }
 0x42a   :  { %4466 = vmatpush3.bf16.msra.mxu0 %v4463_v48  ;;  %4482 = vmatpush3.bf16.msra.mxu1 %v4463_v48  ;;  %v3802_v20 = vpop.permute.xlu0 %3801 }
 0x42b   :  { %v3817_v63 = vpop.permute.xlu1 %3816 }
 0x42d   :  { %4356 = vmatmul.mubr.f32.vlgmr.msra.gmra.mrb[16].mxu0 %v3708_v62  ;;  %4371 = vmatmul.mubr.f32.vlgmr.msra.gmra.mrb[16].mxu1 %v3718_v25 }
 0x42e   :  { %4358 = vmatprep.mubr.f32.mxu0 %v3709_v36  ;;  %4373 = vmatprep.mubr.f32.mxu1 %v3719_v39  ;;  %v3812_v58 = vpop.permute.xlu0 %3811 }
 0x431   :  { %4359 = vmatmul.mubr.f32.gmra.mrb[18].mxu0 %v3710_v30  ;;  %4374 = vmatmul.mubr.f32.gmra.mrb[18].mxu1 %v3720_v50 }
 0x432   :  { %4361 = vmatprep.mubr.f32.mxu0 %v3711_v10  ;;  %4376 = vmatprep.mubr.f32.mxu1 %v3721_v31 }
 0x435   :  { %4362 = vmatmul.mubr.f32.gmra.mrb[20].mxu0 %v3712_v18  ;;  %4377 = vmatmul.mubr.f32.gmra.mrb[20].mxu1 %v3722_v13 }
 0x436   :  { %4364 = vmatprep.mubr.f32.mxu0 %v3713_v19 }
 0x439   :  { %4365 = vmatmul.mubr.f32.gmra.mrb[22].mxu0 %v3714_v57 }
 0x43a   :  { %4367 = vmatprep.mubr.f32.mxu0 %v3715_v24 }
 0x43d   :  { %4368 = vmatmul.mubr.f32.gmra.mrb[24].mxu0 %v3716_v29 }
 0x500   :  { %v4357_v16 = vpop.f32.mrb[16].mxu0  ;;  %v4372_v0 = vpop.f32.mrb[16].mxu1 }
 0x501   :  { %v3891_v46 = vadd.f32 %v4357_v16, %v3747_v28  ;;  %v3941_v60 = vadd.f32 %v4372_v0, %v3797_v49  ;;  %v3885_v52 = vpop.f32.mrb[17].mxu0  ;;  %v3935_v51 = vpop.f32.mrb[17].mxu1 }
 0x502   :  { %v3886_v33 = vadd.f32 %v3885_v52, %v3742_v59  ;;  %v3936_v43 = vadd.f32 %v3935_v51, %v3792_v17 }
 0x503   :  { %3966 = vst.msk [vmem:[%s7288_s10 + $0x8] sm:$0xff] %vm3964_vm3, %v3891_v46  ;;  %3976 = vst.msk [vmem:[%s7288_s10 + $0x58] sm:$0xff] %vm3964_vm3, %v3941_v60 }
 0x504   :  { %3965 = vst.msk [vmem:[%s7288_s10] sm:$0xff] %vm3964_vm3, %v3886_v33  ;;  %3975 = vst.msk [vmem:[%s7288_s10 + $0x50] sm:$0xff] %vm3964_vm3, %v3936_v43  ;;  %v4360_v26 = vpop.f32.mrb[18].mxu0  ;;  %v4375_v56 = vpop.f32.mrb[18].mxu1 }
 0x505   :  { %v3901_v8 = vadd.f32 %v4360_v26, %v3757_v23  ;;  %v3951_v44 = vadd.f32 %v4375_v56, %v3807_v32  ;;  %v3895_v2 = vpop.f32.mrb[19].mxu0  ;;  %v3945_v61 = vpop.f32.mrb[19].mxu1 }
 0x506   :  { %v3896_v12 = vadd.f32 %v3895_v2, %v3752_v53  ;;  %v3946_v15 = vadd.f32 %v3945_v61, %v3802_v20 }
 0x507   :  { %3968 = vst.msk [vmem:[%s7288_s10 + $0x18] sm:$0xff] %vm3964_vm3, %v3901_v8  ;;  %3978 = vst.msk [vmem:[%s7288_s10 + $0x68] sm:$0xff] %vm3964_vm3, %v3951_v44 }
 0x508   :  { %3967 = vst.msk [vmem:[%s7288_s10 + $0x10] sm:$0xff] %vm3964_vm3, %v3896_v12  ;;  %3977 = vst.msk [vmem:[%s7288_s10 + $0x60] sm:$0xff] %vm3964_vm3, %v3946_v15  ;;  %v4363_v41 = vpop.f32.mrb[20].mxu0  ;;  %v4378_v3 = vpop.f32.mrb[20].mxu1 }
 0x509   :  { %v3911_v5 = vadd.f32 %v4363_v41, %v3767_v42  ;;  %v3961_v37 = vadd.f32 %v4378_v3, %v3817_v63  ;;  %v3905_v1 = vpop.f32.mrb[21].mxu0  ;;  %v3955_v9 = vpop.f32.mrb[21].mxu1 }
 0x50a   :  { %v3906_v6 = vadd.f32 %v3905_v1, %v3762_v22  ;;  %v3956_v55 = vadd.f32 %v3955_v9, %v3812_v58 }
 0x50b   :  { %3970 = vst.msk [vmem:[%s7288_s10 + $0x28] sm:$0xff] %vm3964_vm3, %v3911_v5  ;;  %3980 = vst.msk [vmem:[%s7288_s10 + $0x78] sm:$0xff] %vm3964_vm3, %v3961_v37 }
 0x50c   :  { %3969 = vst.msk [vmem:[%s7288_s10 + $0x20] sm:$0xff] %vm3964_vm3, %v3906_v6  ;;  %3979 = vst.msk [vmem:[%s7288_s10 + $0x70] sm:$0xff] %vm3964_vm3, %v3956_v55  ;;  %v4366_v40 = vpop.f32.mrb[22].mxu0 }
 0x50d   :  { %v3921_v11 = vadd.f32 %v4366_v40, %v3777_v35  ;;  %v3915_v21 = vpop.f32.mrb[23].mxu0 }
 0x50e   :  { %v3916_v47 = vadd.f32 %v3915_v21, %v3772_v45 }
 0x50f   :  { %3972 = vst.msk [vmem:[%s7288_s10 + $0x38] sm:$0xff] %vm3964_vm3, %v3921_v11 }
 0x510   :  { %3971 = vst.msk [vmem:[%s7288_s10 + $0x30] sm:$0xff] %vm3964_vm3, %v3916_v47  ;;  %v4369_v7 = vpop.f32.mrb[24].mxu0 }
 0x511   :  { %v3931_v27 = vadd.f32 %v4369_v7, %v3787_v4  ;;  %v3925_v38 = vpop.f32.mrb[25].mxu0 }
 0x512   :  { %v3926_v54 = vadd.f32 %v3925_v38, %v3782_v34 }
 0x513   :  { %3974 = vst.msk [vmem:[%s7288_s10 + $0x48] sm:$0xff] %vm3964_vm3, %v3931_v27 }
 0x514   :  { %3973 = vst.msk [vmem:[%s7288_s10 + $0x40] sm:$0xff] %vm3964_vm3, %v3926_v54 }
 0x515   :  { %3985 = vsyncpa [#allocation3], 1 }
 0x516   :  { %3986 = vsyncpa [#allocation5], 1 }

</bundles_post_ra>
